<compile_context>
chip_gen: v5e
topology: v5e:2x2
jax: 0.10.0
libtpu: 0.0.40
codegen_flags: <defaults>
</compile_context>

<pallas_src>
import functools

import jax
import jax.numpy as jnp
from jax.experimental import pallas as pl
from jax.experimental.pallas import tpu as pltpu

NEGATIVE_SLOPE = 0.2
K0_PADDED = 512   # layer-0 input dim padded 400 -> 512 (lane aligned; zero rows)
TM_MAX = 512      # batch-tile rows: multiple of 128/256 -> good on v5e/v6e/v7x


def _round_up(n, m):
    return ((n + m - 1) // m) * m


def _leaky_linear(h_bf16, w_ref, b_ref, negative_slope):
    """bf16 MXU matmul with f32 accumulation + f32 bias/LeakyReLU epilogue."""
    y = jnp.dot(h_bf16, w_ref[...], preferred_element_type=jnp.float32)
    y = y + b_ref[...]                       # bias kept in f32
    return jnp.maximum(y, negative_slope * y)  # LeakyReLU(0.2), f32 math


def _generator_fused_kernel(
    x_ref,
    w0_ref, b0_ref,
    w1_ref, b1_ref,
    w2_ref, b2_ref,
    w3_ref, b3_ref,
    o_ref,
    *,
    negative_slope,
):
    """Fused 4-layer MLP for one (TM, 512) batch tile; weights VMEM-resident."""
    h = x_ref[...]                                                       # bf16
    h = _leaky_linear(h, w0_ref, b0_ref, negative_slope).astype(jnp.bfloat16)
    h = _leaky_linear(h, w1_ref, b1_ref, negative_slope).astype(jnp.bfloat16)
    h = _leaky_linear(h, w2_ref, b2_ref, negative_slope).astype(jnp.bfloat16)
    y = _leaky_linear(h, w3_ref, b3_ref, negative_slope)                 # f32
    o_ref[...] = y.astype(o_ref.dtype)


@functools.partial(jax.jit, static_argnames=("tm",))
def generator_forward(x, params, *, tm):
    """x: (M, 400) float. params: list of 4 (w_bf16 (K, N), b_f32 (1, N))."""
    M, F = x.shape
    n_out = params[-1][0].shape[1]

    # Cast + pad inside jit (no extra eager dispatch / HBM materialization):
    #   features 400 -> 512 (zeros align with zero weight rows in W0),
    #   batch M -> multiple of tm (tail rows computed then discarded).
    m_pad = (-M) % tm
    xb = jnp.pad(x.astype(jnp.bfloat16), ((0, m_pad), (0, K0_PADDED - F)))
    m_total = M + m_pad
    grid = (m_total // tm,)

    flat = []
    in_specs = [pl.BlockSpec((tm, K0_PADDED), lambda i: (i, 0))]
    for w, b in params:
        flat.extend((w, b))
        # Constant index_map -> weights/biases DMA'd once, reused every tile.
        in_specs.append(pl.BlockSpec(w.shape, lambda i: (0, 0)))
        in_specs.append(pl.BlockSpec(b.shape, lambda i: (0, 0)))

    kernel = functools.partial(
        _generator_fused_kernel, negative_slope=NEGATIVE_SLOPE
    )

    out = pl.pallas_call(
        kernel,
        out_shape=jax.ShapeDtypeStruct((m_total, n_out), jnp.float32),
        grid=grid,
        in_specs=in_specs,
        out_specs=pl.BlockSpec((tm, n_out), lambda i: (i, 0)),
        compiler_params=pltpu.CompilerParams(
            # v7x megacore: shard batch tiles across the 2 TensorCores.
            dimension_semantics=("parallel",),
            # Tiny footprint (~2.6 MiB weights + a few MiB of double-buffered
            # bf16/f32 tiles); 48 MiB leaves headroom even on v7x (64 MiB phys).
            vmem_limit_bytes=48 * 1024 * 1024,
        ),
    )(xb, *flat)
    return out[:M]


def init_linear_params(key, fan_in, fan_out, pad_in_to=None):
    """PyTorch nn.Linear-style init (uniform +/- 1/sqrt(fan_in)).

    Weight returned as (in, out) bf16 (optionally zero-padded along the input
    dim), bias as (1, out) f32.
    """
    kw, kb = jax.random.split(key)
    bound = 1.0 / jnp.sqrt(jnp.float32(fan_in))
    w = jax.random.uniform(
        kw, (fan_in, fan_out), jnp.float32, minval=-bound, maxval=bound
    )
    b = jax.random.uniform(
        kb, (fan_out,), jnp.float32, minval=-bound, maxval=bound
    )
    if pad_in_to is not None and pad_in_to > fan_in:
        # Zero rows contribute nothing; keeps the K dim lane-aligned (512).
        w = jnp.pad(w, ((0, pad_in_to - fan_in), (0, 0)))
    return w.astype(jnp.bfloat16), b.reshape(1, fan_out)


class GeneratorNetPallas:
    """Pallas TPU implementation of the 4-layer GeneratorNet MLP (fused, tiled)."""

    N_FEATURES = 400
    N_OUT = 512
    LAYER_DIMS = [(400, 256), (256, 512), (512, 1024), (1024, 512)]

    def __init__(self, key):
        keys = jax.random.split(key, len(self.LAYER_DIMS))
        self.params = []
        for i, (k, (fi, fo)) in enumerate(zip(keys, self.LAYER_DIMS)):
            pad_to = K0_PADDED if i == 0 else None
            self.params.append(init_linear_params(k, fi, fo, pad_in_to=pad_to))

    def __call__(self, x):
        M = x.shape[0]
        # Shrink the tile for small batches (block second-to-last dim must be a
        # multiple of 8); cap at TM_MAX for large batches.
        tm = min(TM_MAX, _round_up(max(M, 1), 8))
        return generator_forward(x, self.params, tm=tm)


if __name__ == "__main__":
    key = jax.random.PRNGKey(0)
    k_params, k_input = jax.random.split(key)

    model = GeneratorNetPallas(k_params)

    batch = 2
    x = jax.random.normal(k_input, (batch, 400), dtype=jnp.float32)

    out = jax.block_until_ready(model(x))

    assert out.shape == (batch, 512), out.shape
    assert out.dtype == jnp.float32, out.dtype
    assert bool(jnp.all(jnp.isfinite(out)))

    print("KERNEL_OK")
</pallas_src>

<mosaic_0001>
module attributes {stable_mosaic.version = 11 : i64} {
  func.func @_generator_fused_kernel(%arg0: i32, %arg1: memref<8x512xbf16, #tpu.memory_space<vmem>>, %arg2: memref<512x256xbf16, #tpu.memory_space<vmem>>, %arg3: memref<1x256xf32, #tpu.memory_space<vmem>>, %arg4: memref<256x512xbf16, #tpu.memory_space<vmem>>, %arg5: memref<1x512xf32, #tpu.memory_space<vmem>>, %arg6: memref<512x1024xbf16, #tpu.memory_space<vmem>>, %arg7: memref<1x1024xf32, #tpu.memory_space<vmem>>, %arg8: memref<1024x512xbf16, #tpu.memory_space<vmem>>, %arg9: memref<1x512xf32, #tpu.memory_space<vmem>>, %arg10: memref<8x512xf32, #tpu.memory_space<vmem>>) attributes {dimension_semantics = [#tpu.dimension_semantics<parallel>], iteration_bounds = array<i64: 1>, scalar_prefetch = 0 : i64, scratch_operands = 0 : i64, tpu.core_type = #tpu.core_type<tc>, window_params = [{transform_indices = @transform_0, window_bounds = array<i64: 8, 512>}, {pipeline_mode = #tpu.pipeline_mode<synchronous>, transform_indices = @transform_1, window_bounds = array<i64: 512, 256>}, {pipeline_mode = #tpu.pipeline_mode<synchronous>, transform_indices = @transform_2, window_bounds = array<i64: 1, 256>}, {pipeline_mode = #tpu.pipeline_mode<synchronous>, transform_indices = @transform_3, window_bounds = array<i64: 256, 512>}, {pipeline_mode = #tpu.pipeline_mode<synchronous>, transform_indices = @transform_4, window_bounds = array<i64: 1, 512>}, {pipeline_mode = #tpu.pipeline_mode<synchronous>, transform_indices = @transform_5, window_bounds = array<i64: 512, 1024>}, {pipeline_mode = #tpu.pipeline_mode<synchronous>, transform_indices = @transform_6, window_bounds = array<i64: 1, 1024>}, {pipeline_mode = #tpu.pipeline_mode<synchronous>, transform_indices = @transform_7, window_bounds = array<i64: 1024, 512>}, {pipeline_mode = #tpu.pipeline_mode<synchronous>, transform_indices = @transform_8, window_bounds = array<i64: 1, 512>}, {transform_indices = @transform_9, window_bounds = array<i64: 8, 512>}]} {
    %c0 = arith.constant 0 : index
    %c0_0 = arith.constant 0 : index
    %0 = vector.load %arg1[%c0, %c0_0] : memref<8x512xbf16, #tpu.memory_space<vmem>>, vector<8x512xbf16>
    %c0_1 = arith.constant 0 : index
    %c0_2 = arith.constant 0 : index
    %1 = vector.load %arg2[%c0_1, %c0_2] : memref<512x256xbf16, #tpu.memory_space<vmem>>, vector<512x256xbf16>
    %cst = arith.constant dense<0.000000e+00> : vector<8x256xf32>
    %2 = tpu.matmul %0, %1, %cst {dimension_numbers = #tpu.dot_dimension_numbers<[1], [0], [0], [1], [0, 0, 1, 1], [], []>} : vector<8x512xbf16>, vector<512x256xbf16>, vector<8x256xf32> -> vector<8x256xf32>
    %c0_3 = arith.constant 0 : index
    %c0_4 = arith.constant 0 : index
    %3 = vector.load %arg3[%c0_3, %c0_4] : memref<1x256xf32, #tpu.memory_space<vmem>>, vector<1x256xf32>
    %4 = vector.broadcast %3 : vector<1x256xf32> to vector<8x256xf32>
    %5 = arith.addf %2, %4 : vector<8x256xf32>
    %cst_5 = arith.constant 2.000000e-01 : f32
    %6 = vector.broadcast %cst_5 : f32 to vector<8x256xf32>
    %7 = arith.mulf %6, %5 : vector<8x256xf32>
    %8 = arith.maximumf %5, %7 : vector<8x256xf32>
    %9 = arith.truncf %8 : vector<8x256xf32> to vector<8x256xbf16>
    %c0_6 = arith.constant 0 : index
    %c0_7 = arith.constant 0 : index
    %10 = vector.load %arg4[%c0_6, %c0_7] : memref<256x512xbf16, #tpu.memory_space<vmem>>, vector<256x512xbf16>
    %cst_8 = arith.constant dense<0.000000e+00> : vector<8x512xf32>
    %11 = tpu.matmul %9, %10, %cst_8 {dimension_numbers = #tpu.dot_dimension_numbers<[1], [0], [0], [1], [0, 0, 1, 1], [], []>} : vector<8x256xbf16>, vector<256x512xbf16>, vector<8x512xf32> -> vector<8x512xf32>
    %c0_9 = arith.constant 0 : index
    %c0_10 = arith.constant 0 : index
    %12 = vector.load %arg5[%c0_9, %c0_10] : memref<1x512xf32, #tpu.memory_space<vmem>>, vector<1x512xf32>
    %13 = vector.broadcast %12 : vector<1x512xf32> to vector<8x512xf32>
    %14 = arith.addf %11, %13 : vector<8x512xf32>
    %cst_11 = arith.constant 2.000000e-01 : f32
    %15 = vector.broadcast %cst_11 : f32 to vector<8x512xf32>
    %16 = arith.mulf %15, %14 : vector<8x512xf32>
    %17 = arith.maximumf %14, %16 : vector<8x512xf32>
    %18 = arith.truncf %17 : vector<8x512xf32> to vector<8x512xbf16>
    %c0_12 = arith.constant 0 : index
    %c0_13 = arith.constant 0 : index
    %19 = vector.load %arg6[%c0_12, %c0_13] : memref<512x1024xbf16, #tpu.memory_space<vmem>>, vector<512x1024xbf16>
    %cst_14 = arith.constant dense<0.000000e+00> : vector<8x1024xf32>
    %20 = tpu.matmul %18, %19, %cst_14 {dimension_numbers = #tpu.dot_dimension_numbers<[1], [0], [0], [1], [0, 0, 1, 1], [], []>} : vector<8x512xbf16>, vector<512x1024xbf16>, vector<8x1024xf32> -> vector<8x1024xf32>
    %c0_15 = arith.constant 0 : index
    %c0_16 = arith.constant 0 : index
    %21 = vector.load %arg7[%c0_15, %c0_16] : memref<1x1024xf32, #tpu.memory_space<vmem>>, vector<1x1024xf32>
    %22 = vector.broadcast %21 : vector<1x1024xf32> to vector<8x1024xf32>
    %23 = arith.addf %20, %22 : vector<8x1024xf32>
    %cst_17 = arith.constant 2.000000e-01 : f32
    %24 = vector.broadcast %cst_17 : f32 to vector<8x1024xf32>
    %25 = arith.mulf %24, %23 : vector<8x1024xf32>
    %26 = arith.maximumf %23, %25 : vector<8x1024xf32>
    %27 = arith.truncf %26 : vector<8x1024xf32> to vector<8x1024xbf16>
    %c0_18 = arith.constant 0 : index
    %c0_19 = arith.constant 0 : index
    %28 = vector.load %arg8[%c0_18, %c0_19] : memref<1024x512xbf16, #tpu.memory_space<vmem>>, vector<1024x512xbf16>
    %cst_20 = arith.constant dense<0.000000e+00> : vector<8x512xf32>
    %29 = tpu.matmul %27, %28, %cst_20 {dimension_numbers = #tpu.dot_dimension_numbers<[1], [0], [0], [1], [0, 0, 1, 1], [], []>} : vector<8x1024xbf16>, vector<1024x512xbf16>, vector<8x512xf32> -> vector<8x512xf32>
    %c0_21 = arith.constant 0 : index
    %c0_22 = arith.constant 0 : index
    %30 = vector.load %arg9[%c0_21, %c0_22] : memref<1x512xf32, #tpu.memory_space<vmem>>, vector<1x512xf32>
    %31 = vector.broadcast %30 : vector<1x512xf32> to vector<8x512xf32>
    %32 = arith.addf %29, %31 : vector<8x512xf32>
    %cst_23 = arith.constant 2.000000e-01 : f32
    %33 = vector.broadcast %cst_23 : f32 to vector<8x512xf32>
    %34 = arith.mulf %33, %32 : vector<8x512xf32>
    %35 = arith.maximumf %32, %34 : vector<8x512xf32>
    %c0_24 = arith.constant 0 : index
    %c0_25 = arith.constant 0 : index
    %36 = vector.load %arg10[%c0_24, %c0_25] : memref<8x512xf32, #tpu.memory_space<vmem>>, vector<8x512xf32>
    tpu.vector_store %arg10[%c0_24, %c0_25], %35 {strides = array<i32>} : memref<8x512xf32, #tpu.memory_space<vmem>>, vector<8x512xf32>,
    return
  }
  func.func @transform_0(%arg0: i32) -> (i32, i32) {
    %c0_i32 = arith.constant 0 : i32
    %c0_i32_0 = arith.constant 0 : i32
    return %arg0, %c0_i32 : i32, i32
  }
  func.func @transform_1(%arg0: i32) -> (i32, i32) {
    %c0_i32 = arith.constant 0 : i32
    %c0_i32_0 = arith.constant 0 : i32
    %c0_i32_1 = arith.constant 0 : i32
    return %c0_i32, %c0_i32_0 : i32, i32
  }
  func.func @transform_2(%arg0: i32) -> (i32, i32) {
    %c0_i32 = arith.constant 0 : i32
    %c0_i32_0 = arith.constant 0 : i32
    %c0_i32_1 = arith.constant 0 : i32
    return %c0_i32, %c0_i32_0 : i32, i32
  }
  func.func @transform_3(%arg0: i32) -> (i32, i32) {
    %c0_i32 = arith.constant 0 : i32
    %c0_i32_0 = arith.constant 0 : i32
    %c0_i32_1 = arith.constant 0 : i32
    return %c0_i32, %c0_i32_0 : i32, i32
  }
  func.func @transform_4(%arg0: i32) -> (i32, i32) {
    %c0_i32 = arith.constant 0 : i32
    %c0_i32_0 = arith.constant 0 : i32
    %c0_i32_1 = arith.constant 0 : i32
    return %c0_i32, %c0_i32_0 : i32, i32
  }
  func.func @transform_5(%arg0: i32) -> (i32, i32) {
    %c0_i32 = arith.constant 0 : i32
    %c0_i32_0 = arith.constant 0 : i32
    %c0_i32_1 = arith.constant 0 : i32
    return %c0_i32, %c0_i32_0 : i32, i32
  }
  func.func @transform_6(%arg0: i32) -> (i32, i32) {
    %c0_i32 = arith.constant 0 : i32
    %c0_i32_0 = arith.constant 0 : i32
    %c0_i32_1 = arith.constant 0 : i32
    return %c0_i32, %c0_i32_0 : i32, i32
  }
  func.func @transform_7(%arg0: i32) -> (i32, i32) {
    %c0_i32 = arith.constant 0 : i32
    %c0_i32_0 = arith.constant 0 : i32
    %c0_i32_1 = arith.constant 0 : i32
    return %c0_i32, %c0_i32_0 : i32, i32
  }
  func.func @transform_8(%arg0: i32) -> (i32, i32) {
    %c0_i32 = arith.constant 0 : i32
    %c0_i32_0 = arith.constant 0 : i32
    %c0_i32_1 = arith.constant 0 : i32
    return %c0_i32, %c0_i32_0 : i32, i32
  }
  func.func @transform_9(%arg0: i32) -> (i32, i32) {
    %c0_i32 = arith.constant 0 : i32
    %c0_i32_0 = arith.constant 0 : i32
    return %arg0, %c0_i32 : i32, i32
  }
}

</mosaic_0001>

<bundles_post_ra>
// kernel: generator_forward.1
= control target key start
LH: loop header
LB: loop body
LE: loop exit
PB: predicated region body
PF: predicated region fallthrough
CT: control target
= control target key end

     0   :  { %14 = vsyncpa [#allocation3], 0  ;;  %s8744_s0 = inlined_call_operand.vmem [shape: bf16[8,512], index: 0, kind: input, shape index: {}]   ;;  %s8745_s1 = inlined_call_operand.hbm [shape: bf16[512,256], index: 1, kind: input, shape index: {}]   ;;  %s8746_s2 = inlined_call_operand.vmem [shape: f32[1,256], index: 2, kind: input, shape index: {}]   ;;  %s8747_s3 = inlined_call_operand.hbm [shape: bf16[256,512], index: 3, kind: input, shape index: {}]   ;;  %s8748_s4 = inlined_call_operand.vmem [shape: f32[1,512], index: 4, kind: input, shape index: {}]   ;;  %s8749_s5 = inlined_call_operand.hbm [shape: bf16[512,1024], index: 5, kind: input, shape index: {}]   ;;  %s8750_s6 = inlined_call_operand.vmem [shape: f32[1,1024], index: 6, kind: input, shape index: {}]   ;;  %s8751_s7 = inlined_call_operand.hbm [shape: bf16[1024,512], index: 7, kind: input, shape index: {}]   ;;  %s8752_s8 = inlined_call_operand.vmem [shape: f32[1,512], index: 8, kind: input, shape index: {}]   ;;  %s8753_s9 = inlined_call_operand.vmem [shape: f32[8,512], index: 9, kind: output, shape index: {}]  }
   0x1   :  { %15 = vsyncpa [#allocation5], 0  ;;  %s38_s11 = sshll.u32 %s8747_s3, 4  ;;  %s39_s11 = int_to_ptr.hbm [resolvable:$true] %s38_s11 }
   0x2   :  { %16 = vsyncpa [#allocation8], 0  ;;  %s8410_s12 = smov [#allocation4]   ;;  %s23_s16 = sshll.u32 %s8745_s1, 4  ;;  %s24_s16 = int_to_ptr.hbm [resolvable:$true] %s23_s16 }
   0x3   :  { %s40_s13 = sshll.u32 %s8410_s12, 4  ;;  %s8411_s17 = smov 256   ;;  %s41_s13 = int_to_ptr.vmem [resolvable:$true] %s40_s13 }
   0x4   :  { %s8412_s18 = smov 16   ;;  %s8413_s19 = smov [#allocation2]  }
   0x5   :  { %46 = dma.hbm_to_vmem [thread:$0]  %s39_s11, 8192, %s41_s13, [#allocation5], %s8411_s17, %s8411_s17, %s8412_s18  }
   0x6   :  { %s25_s20 = sshll.u32 %s8413_s19, 4  ;;  %s8414_s21 = smov 128   ;;  %s26_s20 = int_to_ptr.vmem [resolvable:$true] %s25_s20 }
   0x7   :  { %s8415_s22 = smov 8   ;;  %s53_s24 = sshll.u32 %s8749_s5, 4  ;;  %s54_s24 = int_to_ptr.hbm [resolvable:$true] %s53_s24 }
   0x8   :  { %31 = dma.hbm_to_vmem [thread:$0]  %s24_s16, 8192, %s26_s20, [#allocation3], %s8414_s21, %s8414_s21, %s8415_s22  }
   0x9   :  { %s8416_s25 = smov [#allocation6]   ;;  %s68_s28 = sshll.u32 %s8751_s7, 4  ;;  %s69_s28 = int_to_ptr.hbm [resolvable:$true] %s68_s28 }
   0xa   :  { %s55_s26 = sshll.u32 %s8416_s25, 4  ;;  %s8417_s29 = smov 512   ;;  %s56_s26 = int_to_ptr.vmem [resolvable:$true] %s55_s26 }
   0xb   :  { %s8418_s30 = smov 32   ;;  %s8419_s10 = smov [#allocation7]  }
   0xc   :  { %61 = dma.hbm_to_vmem [thread:$0]  %s54_s24, 32768, %s56_s26, [#allocation5], %s8417_s29, %s8417_s29, %s8418_s30  }
   0xd   :  { %s70_s11 = sshll.u32 %s8419_s10, 4  ;;  %s71_s11 = int_to_ptr.vmem [resolvable:$true] %s70_s11 }
   0xe   :  { %76 = dma.hbm_to_vmem [thread:$0]  %s69_s28, 32768, %s71_s11, [#allocation8], %s8411_s17, %s8411_s17, %s8412_s18  }
   0xf   :  { %8404 = dma.done.wait [#allocation3], 8192  }
  0x10   :  { %8405 = vsyncadd [#allocation3], 4294959104 }
  0x11   :  { %8406 = dma.done.wait [#allocation5], 40960  }
  0x12   :  { %8407 = vsyncadd [#allocation5], 4294926336 }
  0x13   :  { %8408 = dma.done.wait [#allocation8], 32768  }
  0x14   :  { %8409 = vsyncadd [#allocation8], 4294934528  ;;  %v5154_v0 = vld [vmem:[#allocation2 + $0x70] sm:$0xf]  ;;  %v7671_v1 = vld [vmem:[#allocation2 + $0x74] sm:$0xf0] }
  0x15   :  { %v5218_v2 = vld [vmem:[#allocation2 + $0xf0] sm:$0xf]  ;;  %v5155_v3 = vor.u32 %v7671_v1, %v5154_v0  ;;  %v7687_v4 = vld [vmem:[#allocation2 + $0xf4] sm:$0xf0]  ;;  %v5146_v11 = vld [vmem:[#allocation2 + $0x60] sm:$0xf] }
  0x16   :  { %v5282_v5 = vld [vmem:[#allocation2 + $0x170] sm:$0xf]  ;;  %v7703_v6 = vld [vmem:[#allocation2 + $0x174] sm:$0xf0]  ;;  %v5219_v7 = vor.u32 %v7687_v4, %v5218_v2  ;;  %v7669_v13 = vld [vmem:[#allocation2 + $0x64] sm:$0xf0] }
  0x17   :  { %v5283_v8 = vor.u32 %v7703_v6, %v5282_v5  ;;  %v5346_v9 = vld [vmem:[#allocation2 + $0x1f0] sm:$0xf]  ;;  %v7719_v10 = vld [vmem:[#allocation2 + $0x1f4] sm:$0xf0]  ;;  %501 = vmatpush.bf16.msra.mxu0 %v5155_v3  ;;  %v5210_v14 = vld [vmem:[#allocation2 + $0xe0] sm:$0xf]  ;;  %v5147_v16 = vor.u32 %v7669_v13, %v5146_v11 }
  0x18   :  { %v5347_v12 = vor.u32 %v7719_v10, %v5346_v9  ;;  %v7685_v15 = vld [vmem:[#allocation2 + $0xe4] sm:$0xf0]  ;;  %514 = vmatpush.bf16.msra.mxu1 %v5219_v7  ;;  %v5274_v18 = vld [vmem:[#allocation2 + $0x160] sm:$0xf]  ;;  %v5138_v23 = vld [vmem:[#allocation2 + $0x50] sm:$0xf] }
  0x19   :  { %527 = vmatpush.bf16.msra.mxu2 %v5283_v8  ;;  %v5211_v17 = vor.u32 %v7685_v15, %v5210_v14  ;;  %v7701_v19 = vld [vmem:[#allocation2 + $0x164] sm:$0xf0]  ;;  %v5338_v20 = vld [vmem:[#allocation2 + $0x1e0] sm:$0xf]  ;;  %v7667_v24 = vld [vmem:[#allocation2 + $0x54] sm:$0xf0] }
  0x1a   :  { %540 = vmatpush.bf16.msra.mxu3 %v5347_v12  ;;  %v5275_v21 = vor.u32 %v7701_v19, %v5274_v18  ;;  %v7717_v22 = vld [vmem:[#allocation2 + $0x1e4] sm:$0xf0]  ;;  %v5202_v26 = vld [vmem:[#allocation2 + $0xd0] sm:$0xf]  ;;  %v7683_v27 = vld [vmem:[#allocation2 + $0xd4] sm:$0xf0]  ;;  %v5139_v29 = vor.u32 %v7667_v24, %v5138_v23 }
  0x1b   :  { %v5339_v25 = vor.u32 %v7717_v22, %v5338_v20  ;;  %v5266_v28 = vld [vmem:[#allocation2 + $0x150] sm:$0xf]  ;;  %502 = vmatpush.bf16.msra.mxu0 %v5147_v16  ;;  %v7699_v30 = vld [vmem:[#allocation2 + $0x154] sm:$0xf0]  ;;  %v5203_v33 = vor.u32 %v7683_v27, %v5202_v26  ;;  %v5130_v35 = vld [vmem:[#allocation2 + $0x40] sm:$0xf] }
  0x1c   :  { %v5330_v31 = vld [vmem:[#allocation2 + $0x1d0] sm:$0xf]  ;;  %v7715_v32 = vld [vmem:[#allocation2 + $0x1d4] sm:$0xf0]  ;;  %515 = vmatpush.bf16.msra.mxu1 %v5211_v17  ;;  %v5267_v34 = vor.u32 %v7699_v30, %v5266_v28  ;;  %v7665_v36 = vld [vmem:[#allocation2 + $0x44] sm:$0xf0] }
  0x1d   :  { %528 = vmatpush.bf16.msra.mxu2 %v5275_v21  ;;  %v5194_v37 = vld [vmem:[#allocation2 + $0xc0] sm:$0xf]  ;;  %v5331_v38 = vor.u32 %v7715_v32, %v5330_v31  ;;  %v7681_v39 = vld [vmem:[#allocation2 + $0xc4] sm:$0xf0]  ;;  %v5131_v44 = vor.u32 %v7665_v36, %v5130_v35  ;;  %v5122_v47 = vld [vmem:[#allocation2 + $0x30] sm:$0xf] }
  0x1e   :  { %541 = vmatpush.bf16.msra.mxu3 %v5339_v25  ;;  %v5258_v40 = vld [vmem:[#allocation2 + $0x140] sm:$0xf]  ;;  %v7697_v41 = vld [vmem:[#allocation2 + $0x144] sm:$0xf0]  ;;  %v5195_v45 = vor.u32 %v7681_v39, %v5194_v37  ;;  %v7663_v48 = vld [vmem:[#allocation2 + $0x34] sm:$0xf0] }
  0x1f   :  { %v5322_v42 = vld [vmem:[#allocation2 + $0x1c0] sm:$0xf]  ;;  %v7713_v43 = vld [vmem:[#allocation2 + $0x1c4] sm:$0xf0]  ;;  %503 = vmatpush.bf16.msra.mxu0 %v5139_v29  ;;  %v5259_v46 = vor.u32 %v7697_v41, %v5258_v40  ;;  %v5186_v49 = vld [vmem:[#allocation2 + $0xb0] sm:$0xf]  ;;  %v5123_v56 = vor.u32 %v7663_v48, %v5122_v47 }
  0x20   :  { %516 = vmatpush.bf16.msra.mxu1 %v5203_v33  ;;  %v5323_v50 = vor.u32 %v7713_v43, %v5322_v42  ;;  %v7679_v51 = vld [vmem:[#allocation2 + $0xb4] sm:$0xf0]  ;;  %v5250_v52 = vld [vmem:[#allocation2 + $0x130] sm:$0xf]  ;;  %v5114_v59 = vld [vmem:[#allocation2 + $0x20] sm:$0xf] }
  0x21   :  { %529 = vmatpush.bf16.msra.mxu2 %v5267_v34  ;;  %v7695_v53 = vld [vmem:[#allocation2 + $0x134] sm:$0xf0]  ;;  %v5314_v54 = vld [vmem:[#allocation2 + $0x1b0] sm:$0xf]  ;;  %v5187_v57 = vor.u32 %v7679_v51, %v5186_v49  ;;  %v7661_v60 = vld [vmem:[#allocation2 + $0x24] sm:$0xf0] }
  0x22   :  { %542 = vmatpush.bf16.msra.mxu3 %v5331_v38  ;;  %v7711_v55 = vld [vmem:[#allocation2 + $0x1b4] sm:$0xf0]  ;;  %v5251_v58 = vor.u32 %v7695_v53, %v5250_v52  ;;  %v5178_v61 = vld [vmem:[#allocation2 + $0xa0] sm:$0xf]  ;;  %v7677_v63 = vld [vmem:[#allocation2 + $0xa4] sm:$0xf0]  ;;  %v5115_v4 = vor.u32 %v7661_v60, %v5114_v59 }
  0x23   :  { %504 = vmatpush.bf16.msra.mxu0 %v5131_v44  ;;  %v5315_v62 = vor.u32 %v7711_v55, %v5314_v54  ;;  %v5242_v0 = vld [vmem:[#allocation2 + $0x120] sm:$0xf]  ;;  %v7693_v1 = vld [vmem:[#allocation2 + $0x124] sm:$0xf0]  ;;  %v5179_v5 = vor.u32 %v7677_v63, %v5178_v61  ;;  %v5106_v7 = vld [vmem:[#allocation2 + $0x10] sm:$0xf] }
  0x24   :  { %517 = vmatpush.bf16.msra.mxu1 %v5195_v45  ;;  %v5306_v2 = vld [vmem:[#allocation2 + $0x1a0] sm:$0xf]  ;;  %v7709_v3 = vld [vmem:[#allocation2 + $0x1a4] sm:$0xf0]  ;;  %v5243_v6 = vor.u32 %v7693_v1, %v5242_v0  ;;  %v7659_v8 = vld [vmem:[#allocation2 + $0x14] sm:$0xf0] }
  0x25   :  { %530 = vmatpush.bf16.msra.mxu2 %v5259_v46  ;;  %v5170_v9 = vld [vmem:[#allocation2 + $0x90] sm:$0xf]  ;;  %v5307_v10 = vor.u32 %v7709_v3, %v5306_v2  ;;  %v7675_v11 = vld [vmem:[#allocation2 + $0x94] sm:$0xf0]  ;;  %v5098_v16 = vld [vmem:[#allocation2] sm:$0xf]  ;;  %v5107_v17 = vor.u32 %v7659_v8, %v5106_v7 }
  0x26   :  { %543 = vmatpush.bf16.msra.mxu3 %v5323_v50  ;;  %v5234_v12 = vld [vmem:[#allocation2 + $0x110] sm:$0xf]  ;;  %v7691_v13 = vld [vmem:[#allocation2 + $0x114] sm:$0xf0]  ;;  %v7657_v18 = vld [vmem:[#allocation2 + $0x4] sm:$0xf0]  ;;  %v5171_v21 = vor.u32 %v7675_v11, %v5170_v9 }
  0x27   :  { %505 = vmatpush.bf16.msra.mxu0 %v5123_v56  ;;  %v5298_v14 = vld [vmem:[#allocation2 + $0x190] sm:$0xf]  ;;  %v7707_v15 = vld [vmem:[#allocation2 + $0x194] sm:$0xf0]  ;;  %v5162_v19 = vld [vmem:[#allocation2 + $0x80] sm:$0xf]  ;;  %v5235_v22 = vor.u32 %v7691_v13, %v5234_v12  ;;  %v5099_v33 = vor.u32 %v7657_v18, %v5098_v16 }
  0x28   :  { %518 = vmatpush.bf16.msra.mxu1 %v5187_v57  ;;  %v7673_v20 = vld [vmem:[#allocation2 + $0x84] sm:$0xf0]  ;;  %v5226_v23 = vld [vmem:[#allocation2 + $0x100] sm:$0xf]  ;;  %v5299_v26 = vor.u32 %v7707_v15, %v5298_v14  ;;  %v7670_v30 = vld [vmem:[#allocation2 + $0x74] sm:$0xf] }
  0x29   :  { %531 = vmatpush.bf16.msra.mxu2 %v5251_v58  ;;  %v7689_v24 = vld [vmem:[#allocation2 + $0x104] sm:$0xf0]  ;;  %v5290_v27 = vld [vmem:[#allocation2 + $0x180] sm:$0xf]  ;;  %v5156_v31 = vld [vmem:[#allocation2 + $0x78] sm:$0xf0]  ;;  %v5163_v38 = vor.u32 %v7673_v20, %v5162_v19 }
  0x2a   :  { %544 = vmatpush.bf16.msra.mxu3 %v5315_v62  ;;  %v96_v25 = vld [vmem:[%s8744_s0 + $0x8] sm:$0xff]  ;;  %v95_v29 = vld [vmem:[%s8744_s0] sm:$0xff]  ;;  %v7686_v32 = vld [vmem:[#allocation2 + $0xf4] sm:$0xf]  ;;  %v5227_v39 = vor.u32 %v7689_v24, %v5226_v23  ;;  %v5159_v45 = vor.u32 %v7670_v30, %v5156_v31 }
  0x2b   :  { %506 = vmatpush.bf16.msra.mxu0 %v5115_v4  ;;  %v7705_v28 = vld [vmem:[#allocation2 + $0x184] sm:$0xf0]  ;;  %v5220_v34 = vld [vmem:[#allocation2 + $0xf8] sm:$0xf0]  ;;  %v7702_v35 = vld [vmem:[#allocation2 + $0x174] sm:$0xf]  ;;  %v171_v37 = vunpack.c.l.b16 %v96_v25  ;;  %v169_v42 = vunpack.c.l.b16 %v95_v29  ;;  %v172_v43 = vunpack.c.h.b16 %v96_v25  ;;  %v170_v46 = vunpack.c.h.b16 %v95_v29 }
  0x2c   :  { %519 = vmatpush.bf16.msra.mxu1 %v5179_v5  ;;  %v5284_v36 = vld [vmem:[#allocation2 + $0x178] sm:$0xf0]  ;;  %v7718_v40 = vld [vmem:[#allocation2 + $0x1f4] sm:$0xf]  ;;  %v5291_v44 = vor.u32 %v7705_v28, %v5290_v27  ;;  %v5223_v47 = vor.u32 %v7686_v32, %v5220_v34  ;;  %v7668_v49 = vld [vmem:[#allocation2 + $0x64] sm:$0xf] }
  0x2d   :  { %532 = vmatpush.bf16.msra.mxu2 %v5243_v6  ;;  %v5348_v41 = vld [vmem:[#allocation2 + $0x1f8] sm:$0xf0]  ;;  %v5287_v48 = vor.u32 %v7702_v35, %v5284_v36  ;;  %v5148_v50 = vld [vmem:[#allocation2 + $0x68] sm:$0xf0]  ;;  %v7684_v51 = vld [vmem:[#allocation2 + $0xe4] sm:$0xf]  ;;  %v8488_v53 = vpack.c.b16 %v171_v37, %v171_v37  ;;  %v8490_v57 = vpack.c.b16 %v169_v42, %v169_v42  ;;  %v8492_v58 = vpack.c.b16 %v172_v43, %v172_v43 }
  0x2e   :  { %545 = vmatpush.bf16.msra.mxu3 %v5307_v10  ;;  %v5351_v52 = vor.u32 %v7718_v40, %v5348_v41  ;;  %v5212_v54 = vld [vmem:[#allocation2 + $0xe8] sm:$0xf0]  ;;  %v7700_v55 = vld [vmem:[#allocation2 + $0x164] sm:$0xf]  ;;  %v5151_v61 = vor.u32 %v7668_v49, %v5148_v50  ;;  %v8494_v62 = vpack.c.b16 %v170_v46, %v170_v46  ;;  %v7666_v1 = vld [vmem:[#allocation2 + $0x54] sm:$0xf] }
  0x2f   :  { %507 = vmatpush.bf16.msra.mxu0 %v5107_v17  ;;  %v5276_v56 = vld [vmem:[#allocation2 + $0x168] sm:$0xf0]  ;;  %v7716_v59 = vld [vmem:[#allocation2 + $0x1e4] sm:$0xf]  ;;  %v5215_v63 = vor.u32 %v7684_v51, %v5212_v54  ;;  %v5140_v2 = vld [vmem:[#allocation2 + $0x58] sm:$0xf0] }
  0x30   :  { %520 = vmatpush.bf16.msra.mxu1 %v5171_v21  ;;  %v5340_v60 = vld [vmem:[#allocation2 + $0x1e8] sm:$0xf0]  ;;  %v5279_v0 = vor.u32 %v7700_v55, %v5276_v56  ;;  %v7682_v3 = vld [vmem:[#allocation2 + $0xd4] sm:$0xf]  ;;  %v5204_v5 = vld [vmem:[#allocation2 + $0xd8] sm:$0xf0]  ;;  %v5143_v10 = vor.u32 %v7666_v1, %v5140_v2 }
  0x31   :  { %533 = vmatpush.bf16.msra.mxu2 %v5235_v22  ;;  %v5343_v4 = vor.u32 %v7716_v59, %v5340_v60  ;;  %v7698_v6 = vld [vmem:[#allocation2 + $0x154] sm:$0xf]  ;;  %v5268_v7 = vld [vmem:[#allocation2 + $0x158] sm:$0xf0]  ;;  %v5207_v11 = vor.u32 %v7682_v3, %v5204_v5  ;;  %v7664_v13 = vld [vmem:[#allocation2 + $0x44] sm:$0xf] }
  0x32   :  { %546 = vmatpush.bf16.msra.mxu3 %v5299_v26  ;;  %v7714_v8 = vld [vmem:[#allocation2 + $0x1d4] sm:$0xf]  ;;  %v5332_v9 = vld [vmem:[#allocation2 + $0x1d8] sm:$0xf0]  ;;  %v5271_v12 = vor.u32 %v7698_v6, %v5268_v7  ;;  %v5132_v14 = vld [vmem:[#allocation2 + $0x48] sm:$0xf0] }
  0x33   :  { %508 = vmatpush.bf16.msra.mxu0 %v5099_v33  ;;  %v7680_v15 = vld [vmem:[#allocation2 + $0xc4] sm:$0xf]  ;;  %v5335_v16 = vor.u32 %v7714_v8, %v5332_v9  ;;  %v5196_v17 = vld [vmem:[#allocation2 + $0xc8] sm:$0xf0]  ;;  %v5135_v22 = vor.u32 %v7664_v13, %v5132_v14  ;;  %v7662_v25 = vld [vmem:[#allocation2 + $0x34] sm:$0xf] }
  0x34   :  { %521 = vmatpush.bf16.msra.mxu1 %v5163_v38  ;;  %v7696_v18 = vld [vmem:[#allocation2 + $0x144] sm:$0xf]  ;;  %v5260_v19 = vld [vmem:[#allocation2 + $0x148] sm:$0xf0]  ;;  %v5199_v23 = vor.u32 %v7680_v15, %v5196_v17  ;;  %v5124_v26 = vld [vmem:[#allocation2 + $0x38] sm:$0xf0] }
  0x35   :  { %534 = vmatpush.bf16.msra.mxu2 %v5227_v39  ;;  %v7712_v20 = vld [vmem:[#allocation2 + $0x1c4] sm:$0xf]  ;;  %v5324_v21 = vld [vmem:[#allocation2 + $0x1c8] sm:$0xf0]  ;;  %v5263_v24 = vor.u32 %v7696_v18, %v5260_v19  ;;  %v7678_v27 = vld [vmem:[#allocation2 + $0xb4] sm:$0xf]  ;;  %v5127_v34 = vor.u32 %v7662_v25, %v5124_v26 }
  0x36   :  { %547 = vmatpush.bf16.msra.mxu3 %v5291_v44  ;;  %509 = vmatmul.bf16.vlgmr.msra.gmra.mxu0 %v8490_v57  ;;  %v5327_v28 = vor.u32 %v7712_v20, %v5324_v21  ;;  %v5188_v29 = vld [vmem:[#allocation2 + $0xb8] sm:$0xf0]  ;;  %v7694_v30 = vld [vmem:[#allocation2 + $0x134] sm:$0xf]  ;;  %v7660_v37 = vld [vmem:[#allocation2 + $0x24] sm:$0xf] }
  0x37   :  { %553 = vmatpush.bf16.msrb.mxu0 %v5159_v45  ;;  %522 = vmatmul.bf16.vlgmr.msra.gmra.mxu1 %v8494_v62  ;;  %v5252_v31 = vld [vmem:[#allocation2 + $0x138] sm:$0xf0]  ;;  %v7710_v32 = vld [vmem:[#allocation2 + $0x1b4] sm:$0xf]  ;;  %v5191_v35 = vor.u32 %v7678_v27, %v5188_v29  ;;  %v5116_v38 = vld [vmem:[#allocation2 + $0x28] sm:$0xf0] }
  0x38   :  { %566 = vmatpush.bf16.msrb.mxu1 %v5223_v47  ;;  %535 = vmatmul.bf16.vlgmr.msra.gmra.mxu2 %v8488_v53  ;;  %v5316_v33 = vld [vmem:[#allocation2 + $0x1b8] sm:$0xf0]  ;;  %v5255_v36 = vor.u32 %v7694_v30, %v5252_v31  ;;  %v7676_v39 = vld [vmem:[#allocation2 + $0xa4] sm:$0xf]  ;;  %v5180_v41 = vld [vmem:[#allocation2 + $0xa8] sm:$0xf0]  ;;  %v5119_v46 = vor.u32 %v7660_v37, %v5116_v38 }
  0x39   :  { %579 = vmatpush.bf16.msrb.mxu2 %v5287_v48  ;;  %548 = vmatmul.bf16.vlgmr.msra.gmra.mxu3 %v8492_v58  ;;  %v5319_v40 = vor.u32 %v7710_v32, %v5316_v33  ;;  %v7692_v42 = vld [vmem:[#allocation2 + $0x124] sm:$0xf]  ;;  %v5244_v43 = vld [vmem:[#allocation2 + $0x128] sm:$0xf0]  ;;  %v5183_v47 = vor.u32 %v7676_v39, %v5180_v41  ;;  %v7658_v49 = vld [vmem:[#allocation2 + $0x14] sm:$0xf] }
  0x3a   :  { %592 = vmatpush.bf16.msrb.mxu3 %v5351_v52  ;;  %v7708_v44 = vld [vmem:[#allocation2 + $0x1a4] sm:$0xf]  ;;  %v5308_v45 = vld [vmem:[#allocation2 + $0x1a8] sm:$0xf0]  ;;  %v5247_v48 = vor.u32 %v7692_v42, %v5244_v43  ;;  %v5108_v50 = vld [vmem:[#allocation2 + $0x18] sm:$0xf0] }
  0x3b   :  { %554 = vmatpush.bf16.msrb.mxu0 %v5151_v61  ;;  %v7674_v51 = vld [vmem:[#allocation2 + $0x94] sm:$0xf]  ;;  %v5311_v52 = vor.u32 %v7708_v44, %v5308_v45  ;;  %v5172_v54 = vld [vmem:[#allocation2 + $0x98] sm:$0xf0]  ;;  %v5111_v61 = vor.u32 %v7658_v49, %v5108_v50  ;;  %v5100_v2 = vld [vmem:[#allocation2 + $0x8] sm:$0xf0] }
  0x3c   :  { %567 = vmatpush.bf16.msrb.mxu1 %v5215_v63  ;;  %v7690_v55 = vld [vmem:[#allocation2 + $0x114] sm:$0xf]  ;;  %v5236_v56 = vld [vmem:[#allocation2 + $0x118] sm:$0xf0]  ;;  %v7656_v63 = vld [vmem:[#allocation2 + $0x4] sm:$0xf] }
  0x3d   :  { %580 = vmatpush.bf16.msrb.mxu2 %v5279_v0  ;;  %v7706_v59 = vld [vmem:[#allocation2 + $0x194] sm:$0xf]  ;;  %v5300_v60 = vld [vmem:[#allocation2 + $0x198] sm:$0xf0]  ;;  %v5175_v0 = vor.u32 %v7674_v51, %v5172_v54  ;;  %v5239_v1 = vor.u32 %v7690_v55, %v5236_v56  ;;  %v7672_v3 = vld [vmem:[#allocation2 + $0x84] sm:$0xf] }
  0x3e   :  { %593 = vmatpush.bf16.msrb.mxu3 %v5343_v4  ;;  %v5164_v4 = vld [vmem:[#allocation2 + $0x88] sm:$0xf0]  ;;  %v5303_v5 = vor.u32 %v7706_v59, %v5300_v60  ;;  %v7688_v6 = vld [vmem:[#allocation2 + $0x104] sm:$0xf]  ;;  %v5468_v14 = vld [vmem:[#allocation4 + $0xf0] sm:$0xf0] }
  0x3f   :  { %555 = vmatpush.bf16.msrb.mxu0 %v5143_v10  ;;  %v5228_v7 = vld [vmem:[#allocation2 + $0x108] sm:$0xf0]  ;;  %v7704_v8 = vld [vmem:[#allocation2 + $0x184] sm:$0xf]  ;;  %v5466_v10 = vld [vmem:[#allocation4 + $0xe0] sm:$0xf]  ;;  %v5167_v15 = vor.u32 %v7672_v3, %v5164_v4 }
  0x40   :  { %568 = vmatpush.bf16.msrb.mxu1 %v5207_v11  ;;  %v5292_v9 = vld [vmem:[#allocation2 + $0x188] sm:$0xf0]  ;;  %v7750_v11 = vld [vmem:[#allocation4 + $0xec] sm:$0xf0]  ;;  %v7748_v13 = vld [vmem:[#allocation4 + $0xe4] sm:$0xf] }
  0x41   :  { %581 = vmatpush.bf16.msrb.mxu2 %v5271_v12  ;;  %v5103_v12 = vor.u32 %v7656_v63, %v5100_v2  ;;  %v5295_v17 = vor.u32 %v7704_v8, %v5292_v9  ;;  %v5467_v18 = vor.u32 %v7750_v11, %v5466_v10  ;;  %v5471_v19 = vor.u32 %v7748_v13, %v5468_v14  ;;  %v5450_v20 = vld [vmem:[#allocation4 + $0xc0] sm:$0xf]  ;;  %v7746_v21 = vld [vmem:[#allocation4 + $0xcc] sm:$0xf0]  ;;  %v5436_v29 = vld [vmem:[#allocation4 + $0xb0] sm:$0xf0] }
  0x42   :  { %594 = vmatpush.bf16.msrb.mxu3 %v5335_v16  ;;  %v5231_v16 = vor.u32 %v7688_v6, %v5228_v7  ;;  %v5434_v26 = vld [vmem:[#allocation4 + $0xa0] sm:$0xf]  ;;  %v7742_v27 = vld [vmem:[#allocation4 + $0xac] sm:$0xf0]  ;;  %v7732_v38 = vld [vmem:[#allocation4 + $0x64] sm:$0xf] }
  0x43   :  { %556 = vmatpush.bf16.msrb.mxu0 %v5135_v22  ;;  %v7744_v22 = vld [vmem:[#allocation4 + $0xc4] sm:$0xf]  ;;  %v5435_v30 = vor.u32 %v7742_v27, %v5434_v26  ;;  %v5418_v32 = vld [vmem:[#allocation4 + $0x80] sm:$0xf]  ;;  %v7738_v33 = vld [vmem:[#allocation4 + $0x8c] sm:$0xf0] }
  0x44   :  { %569 = vmatpush.bf16.msrb.mxu1 %v5199_v23  ;;  %v5452_v23 = vld [vmem:[#allocation4 + $0xd0] sm:$0xf0]  ;;  %v5402_v37 = vld [vmem:[#allocation4 + $0x60] sm:$0xf]  ;;  %v7730_v41 = vld [vmem:[#allocation4 + $0x4c] sm:$0xf0] }
  0x45   :  { %582 = vmatpush.bf16.msrb.mxu2 %v5263_v24  ;;  %v5451_v24 = vor.u32 %v7746_v21, %v5450_v20  ;;  %v5455_v25 = vor.u32 %v7744_v22, %v5452_v23  ;;  %v7728_v42 = vld [vmem:[#allocation4 + $0x44] sm:$0xf]  ;;  %v5388_v43 = vld [vmem:[#allocation4 + $0x50] sm:$0xf0]  ;;  %v7722_v54 = vld [vmem:[#allocation4 + $0xc] sm:$0xf0] }
  0x46   :  { %595 = vmatpush.bf16.msrb.mxu3 %v5327_v28  ;;  %v7740_v28 = vld [vmem:[#allocation4 + $0xa4] sm:$0xf]  ;;  %v5391_v45 = vor.u32 %v7728_v42, %v5388_v43  ;;  %v5372_v49 = vld [vmem:[#allocation4 + $0x30] sm:$0xf0]  ;;  %v7782_v63 = vld [vmem:[#allocation4 + $0x1ec] sm:$0xf0] }
  0x47   :  { %557 = vmatpush.bf16.msrb.mxu0 %v5127_v34  ;;  %v5439_v31 = vor.u32 %v7740_v28, %v5436_v29  ;;  %v7736_v34 = vld [vmem:[#allocation4 + $0x84] sm:$0xf]  ;;  %v5356_v56 = vld [vmem:[#allocation4 + $0x10] sm:$0xf0]  ;;  %v5474_v3 = vld [vmem:[#allocation4 + $0xe8] sm:$0xf] }
  0x48   :  { %570 = vmatpush.bf16.msrb.mxu1 %v5191_v35  ;;  %v5419_v35 = vor.u32 %v7738_v33, %v5418_v32  ;;  %v7720_v55 = vld [vmem:[#allocation4 + $0x4] sm:$0xf]  ;;  %v5596_v2 = vld [vmem:[#allocation4 + $0x1f0] sm:$0xf0]  ;;  %v7751_v4 = vld [vmem:[#allocation4 + $0xf4] sm:$0xf0] }
  0x49   :  { %583 = vmatpush.bf16.msrb.mxu2 %v5255_v36  ;;  %v5359_v60 = vor.u32 %v7720_v55, %v5356_v56  ;;  %v5475_v6 = vor.u32 %v7751_v4, %v5474_v3  ;;  %v7749_v7 = vld [vmem:[#allocation4 + $0xec] sm:$0xf]  ;;  %v5476_v8 = vld [vmem:[#allocation4 + $0xf8] sm:$0xf0]  ;;  %v5578_v10 = vld [vmem:[#allocation4 + $0x1c0] sm:$0xf] }
  0x4a   :  { %596 = vmatpush.bf16.msrb.mxu3 %v5319_v40  ;;  %v5386_v40 = vld [vmem:[#allocation4 + $0x40] sm:$0xf]  ;;  %v5479_v9 = vor.u32 %v7749_v7, %v5476_v8  ;;  %v7778_v11 = vld [vmem:[#allocation4 + $0x1cc] sm:$0xf0]  ;;  %v5580_v14 = vld [vmem:[#allocation4 + $0x1d0] sm:$0xf0] }
  0x4b   :  { %558 = vmatpush.bf16.msrb.mxu0 %v5119_v46  ;;  %v5387_v44 = vor.u32 %v7730_v41, %v5386_v40  ;;  %v5370_v46 = vld [vmem:[#allocation4 + $0x20] sm:$0xf]  ;;  %v5579_v13 = vor.u32 %v7778_v11, %v5578_v10  ;;  %v5460_v20 = vld [vmem:[#allocation4 + $0xd8] sm:$0xf0]  ;;  %v7774_v23 = vld [vmem:[#allocation4 + $0x1ac] sm:$0xf0] }
  0x4c   :  { %571 = vmatpush.bf16.msrb.mxu1 %v5183_v47  ;;  %v7726_v47 = vld [vmem:[#allocation4 + $0x2c] sm:$0xf0]  ;;  %v5562_v22 = vld [vmem:[#allocation4 + $0x1a0] sm:$0xf]  ;;  %v5564_v26 = vld [vmem:[#allocation4 + $0x1b0] sm:$0xf0] }
  0x4d   :  { %584 = vmatpush.bf16.msrb.mxu2 %v5247_v48  ;;  %v7724_v48 = vld [vmem:[#allocation4 + $0x24] sm:$0xf]  ;;  %v5371_v50 = vor.u32 %v7726_v47, %v5370_v46  ;;  %v5442_v27 = vld [vmem:[#allocation4 + $0xa8] sm:$0xf]  ;;  %v7743_v28 = vld [vmem:[#allocation4 + $0xb4] sm:$0xf0] }
  0x4e   :  { %597 = vmatpush.bf16.msrb.mxu3 %v5311_v52  ;;  %v5375_v51 = vor.u32 %v7724_v48, %v5372_v49  ;;  %v5354_v52 = vld [vmem:[#allocation4] sm:$0xf]  ;;  %v5444_v32 = vld [vmem:[#allocation4 + $0xb8] sm:$0xf0]  ;;  %v7766_v43 = vld [vmem:[#allocation4 + $0x16c] sm:$0xf0] }
  0x4f   :  { %559 = vmatpush.bf16.msrb.mxu0 %v5111_v61  ;;  %v5355_v59 = vor.u32 %v7722_v54, %v5354_v52  ;;  %v5594_v61 = vld [vmem:[#allocation4 + $0x1e0] sm:$0xf]  ;;  %v5428_v40 = vld [vmem:[#allocation4 + $0x98] sm:$0xf0]  ;;  %v5532_v46 = vld [vmem:[#allocation4 + $0x170] sm:$0xf0] }
  0x50   :  { %572 = vmatpush.bf16.msrb.mxu1 %v5175_v0  ;;  %v7780_v0 = vld [vmem:[#allocation4 + $0x1e4] sm:$0xf]  ;;  %v5530_v42 = vld [vmem:[#allocation4 + $0x160] sm:$0xf]  ;;  %v5410_v47 = vld [vmem:[#allocation4 + $0x68] sm:$0xf] }
  0x51   :  { %585 = vmatpush.bf16.msrb.mxu2 %v5239_v1  ;;  %v5595_v1 = vor.u32 %v7782_v63, %v5594_v61  ;;  %v7735_v48 = vld [vmem:[#allocation4 + $0x74] sm:$0xf0]  ;;  %v5412_v52 = vld [vmem:[#allocation4 + $0x78] sm:$0xf0]  ;;  %v5514_v54 = vld [vmem:[#allocation4 + $0x140] sm:$0xf] }
  0x52   :  { %598 = vmatpush.bf16.msrb.mxu3 %v5303_v5  ;;  %v5599_v5 = vor.u32 %v7780_v0, %v5596_v2  ;;  %v7762_v56 = vld [vmem:[#allocation4 + $0x14c] sm:$0xf0]  ;;  %v5394_v0 = vld [vmem:[#allocation4 + $0x48] sm:$0xf]  ;;  %v7729_v2 = vld [vmem:[#allocation4 + $0x4c] sm:$0xf] }
  0x53   :  { %560 = vmatpush.bf16.msrb.mxu0 %v5103_v12  ;;  %v7776_v12 = vld [vmem:[#allocation4 + $0x1c4] sm:$0xf]  ;;  %v5515_v61 = vor.u32 %v7762_v56, %v5514_v54  ;;  %v5396_v4 = vld [vmem:[#allocation4 + $0x58] sm:$0xf0]  ;;  %v5378_v10 = vld [vmem:[#allocation4 + $0x28] sm:$0xf] }
  0x54   :  { %573 = vmatpush.bf16.msrb.mxu1 %v5167_v15  ;;  %v5458_v15 = vld [vmem:[#allocation4 + $0xc8] sm:$0xf]  ;;  %v5399_v7 = vor.u32 %v7729_v2, %v5396_v4  ;;  %v7756_v8 = vld [vmem:[#allocation4 + $0x124] sm:$0xf] }
  0x55   :  { %586 = vmatpush.bf16.msrb.mxu2 %v5231_v16  ;;  %v7747_v16 = vld [vmem:[#allocation4 + $0xd4] sm:$0xf0] }
  0x56   :  { %599 = vmatpush.bf16.msrb.mxu3 %v5295_v17  ;;  %561 = vmatmul.bf16.vlgmr.msrb.gmra.mxu0 %v8490_v57  ;;  %v5420_v57 = vld [vmem:[#allocation4 + $0x90] sm:$0xf0]  ;;  %v5583_v17 = vor.u32 %v7776_v12, %v5580_v14  ;;  %v7727_v12 = vld [vmem:[#allocation4 + $0x34] sm:$0xf0]  ;;  %v5380_v14 = vld [vmem:[#allocation4 + $0x38] sm:$0xf0] }
  0x57   :  { %1005 = vmatpush.bf16.msra.mxu0 %v5467_v18  ;;  %574 = vmatmul.bf16.vlgmr.msrb.gmra.mxu1 %v8494_v62  ;;  %v5423_v36 = vor.u32 %v7736_v34, %v5420_v57  ;;  %v7734_v62 = vld [vmem:[#allocation4 + $0x6c] sm:$0xf0]  ;;  %v5459_v18 = vor.u32 %v7747_v16, %v5458_v15  ;;  %v5546_v34 = vld [vmem:[#allocation4 + $0x180] sm:$0xf] }
  0x58   :  { %587 = vmatmul.bf16.vlgmr.msrb.gmra.mxu2 %v8488_v53  ;;  %v5404_v53 = vld [vmem:[#allocation4 + $0x70] sm:$0xf0]  ;;  %v5403_v39 = vor.u32 %v7734_v62, %v5402_v37  ;;  %1018 = vmatpush.bf16.msra.mxu1 %v5595_v1  ;;  %v7770_v57 = vld [vmem:[#allocation4 + $0x18c] sm:$0xf0]  ;;  %v5426_v62 = vld [vmem:[#allocation4 + $0x88] sm:$0xf] }
  0x59   :  { %1031 = vmatpush.bf16.msra.mxu2 %v5471_v19  ;;  %600 = vmatmul.bf16.vlgmr.msrb.gmra.mxu3 %v8492_v58  ;;  %v5407_v58 = vor.u32 %v7732_v38, %v5404_v53  ;;  %v7745_v19 = vld [vmem:[#allocation4 + $0xcc] sm:$0xf]  ;;  %v5548_v37 = vld [vmem:[#allocation4 + $0x190] sm:$0xf0]  ;;  %v7739_v38 = vld [vmem:[#allocation4 + $0x94] sm:$0xf0] }
  0x5a   :  { %1044 = vmatpush.bf16.msra.mxu3 %v5599_v5  ;;  %v5463_v21 = vor.u32 %v7745_v19, %v5460_v20  ;;  %v7731_v1 = vld [vmem:[#allocation4 + $0x54] sm:$0xf0]  ;;  %v5498_v5 = vld [vmem:[#allocation4 + $0x120] sm:$0xf] }
  0x5b   :  { %1006 = vmatpush.bf16.msra.mxu0 %v5451_v24  ;;  %v7772_v24 = vld [vmem:[#allocation4 + $0x1a4] sm:$0xf]  ;;  %v5395_v3 = vor.u32 %v7731_v1, %v5394_v0  ;;  %v8507_v15 = vld [vmem:[%s8746_s2] sm:$0x3]  ;;  %v5556_v1 = vld [vmem:[#allocation4 + $0x198] sm:$0xf0] }
  0x5c   :  { %1019 = vmatpush.bf16.msra.mxu1 %v5579_v13  ;;  %v5567_v29 = vor.u32 %v7772_v24, %v5564_v26  ;;  %v7725_v13 = vld [vmem:[#allocation4 + $0x2c] sm:$0xf]  ;;  %v163_v19 = vperm.slane %v8507_v15, 0  ;;  %v5482_v20 = vld [vmem:[#allocation4 + $0x100] sm:$0xf] }
  0x5d   :  { %1032 = vmatpush.bf16.msra.mxu2 %v5455_v25  ;;  %v5563_v25 = vor.u32 %v7774_v23, %v5562_v22  ;;  %v7752_v22 = vld [vmem:[#allocation4 + $0x104] sm:$0xf]  ;;  %v5484_v24 = vld [vmem:[#allocation4 + $0x110] sm:$0xf0]  ;;  %v7723_v26 = vld [vmem:[#allocation4 + $0x14] sm:$0xf0] }
  0x5e   :  { %1045 = vmatpush.bf16.msra.mxu3 %v5583_v17  ;;  %v5379_v17 = vor.u32 %v7727_v12, %v5378_v10  ;;  %v5522_v12 = vld [vmem:[#allocation4 + $0x148] sm:$0xf] }
  0x5f   :  { %1007 = vmatpush.bf16.msra.mxu0 %v5435_v30  ;;  %v5443_v30 = vor.u32 %v7743_v28, %v5442_v27  ;;  %v5487_v27 = vor.u32 %v7752_v22, %v5484_v24  ;;  %v7757_v22 = vld [vmem:[#allocation4 + $0x12c] sm:$0xf] }
  0x60   :  { %1020 = vmatpush.bf16.msra.mxu1 %v5563_v25  ;;  %v5362_v25 = vld [vmem:[#allocation4 + $0x8] sm:$0xf] }
  0x61   :  { %1033 = vmatpush.bf16.msra.mxu2 %v5439_v31  ;;  %v7741_v31 = vld [vmem:[#allocation4 + $0xac] sm:$0xf]  ;;  %v5363_v28 = vor.u32 %v7723_v26, %v5362_v25  ;;  %v5490_v26 = vld [vmem:[#allocation4 + $0x108] sm:$0xf] }
  0x62   :  { %v5447_v33 = vor.u32 %v7741_v31, %v5444_v32  ;;  %1046 = vmatpush.bf16.msra.mxu3 %v5567_v29  ;;  %v7721_v29 = vld [vmem:[#allocation4 + $0xc] sm:$0xf]  ;;  %v5602_v31 = vld [vmem:[#allocation4 + $0x1e8] sm:$0xf] }
  0x63   :  { %1008 = vmatpush.bf16.msra.mxu0 %v5419_v35  ;;  %v7768_v35 = vld [vmem:[#allocation4 + $0x184] sm:$0xf] }
  0x64   :  { %v5551_v53 = vor.u32 %v7768_v35, %v5548_v37 }
  0x65   :  { %1034 = vmatpush.bf16.msra.mxu2 %v5423_v36  ;;  %v5547_v36 = vor.u32 %v7770_v57, %v5546_v34  ;;  %v7781_v34 = vld [vmem:[#allocation4 + $0x1ec] sm:$0xf]  ;;  %v5604_v57 = vld [vmem:[#allocation4 + $0x1f8] sm:$0xf0] }
  0x66   :  { %1047 = vmatpush.bf16.msra.mxu3 %v5551_v53  ;;  %v5607_v37 = vor.u32 %v7781_v34, %v5604_v57  ;;  %v5586_v53 = vld [vmem:[#allocation4 + $0x1c8] sm:$0xf] }
  0x67   :  { %1009 = vmatpush.bf16.msra.mxu0 %v5403_v39  ;;  %v5427_v39 = vor.u32 %v7739_v38, %v5426_v62  ;;  %1021 = vmatpush.bf16.msra.mxu1 %v5547_v36 }
  0x69   :  { %1035 = vmatpush.bf16.msra.mxu2 %v5407_v58  ;;  %v7737_v58 = vld [vmem:[#allocation4 + $0x8c] sm:$0xf] }
  0x6a   :  { %v5431_v41 = vor.u32 %v7737_v58, %v5428_v40  ;;  %v7777_v58 = vld [vmem:[#allocation4 + $0x1cc] sm:$0xf] }
  0x6b   :  { %1010 = vmatpush.bf16.msra.mxu0 %v5387_v44  ;;  %v7764_v44 = vld [vmem:[#allocation4 + $0x164] sm:$0xf] }
  0x6c   :  { %v5535_v49 = vor.u32 %v7764_v44, %v5532_v46  ;;  %v7775_v46 = vld [vmem:[#allocation4 + $0x1b4] sm:$0xf0] }
  0x6d   :  { %1036 = vmatpush.bf16.msra.mxu2 %v5391_v45  ;;  %v5531_v45 = vor.u32 %v7766_v43, %v5530_v42 }
  0x6e   :  { %1048 = vmatpush.bf16.msra.mxu3 %v5535_v49 }
  0x6f   :  { %1011 = vmatpush.bf16.msra.mxu0 %v5371_v50  ;;  %v5411_v50 = vor.u32 %v7735_v48, %v5410_v47  ;;  %1022 = vmatpush.bf16.msra.mxu1 %v5531_v45  ;;  %v5570_v45 = vld [vmem:[#allocation4 + $0x1a8] sm:$0xf]  ;;  %v7773_v47 = vld [vmem:[#allocation4 + $0x1ac] sm:$0xf] }
  0x71   :  { %1037 = vmatpush.bf16.msra.mxu2 %v5375_v51  ;;  %v7733_v51 = vld [vmem:[#allocation4 + $0x6c] sm:$0xf] }
  0x72   :  { %v5415_v55 = vor.u32 %v7733_v51, %v5412_v52  ;;  %v5572_v51 = vld [vmem:[#allocation4 + $0x1b8] sm:$0xf0] }
  0x73   :  { %1012 = vmatpush.bf16.msra.mxu0 %v5355_v59  ;;  %v7760_v59 = vld [vmem:[#allocation4 + $0x144] sm:$0xf]  ;;  %1023 = vmatpush.bf16.msra.mxu1 %v5515_v61  ;;  %v5575_v52 = vor.u32 %v7773_v47, %v5572_v51  ;;  %v7769_v61 = vld [vmem:[#allocation4 + $0x18c] sm:$0xf]  ;;  %v7820_v51 = vld [vmem:[#allocation6 + $0x11c] sm:$0xf0] }
  0x74   :  { %v5559_v2 = vor.u32 %v7769_v61, %v5556_v1  ;;  %v7812_v61 = vld [vmem:[#allocation6 + $0xdc] sm:$0xf0] }
  0x75   :  { %1038 = vmatpush.bf16.msra.mxu2 %v5359_v60  ;;  %v5516_v60 = vld [vmem:[#allocation4 + $0x150] sm:$0xf0] }
  0x76   :  { %v5519_v63 = vor.u32 %v7760_v59, %v5516_v60  ;;  %v5554_v59 = vld [vmem:[#allocation4 + $0x188] sm:$0xf]  ;;  %v7771_v60 = vld [vmem:[#allocation4 + $0x194] sm:$0xf0] }
  0x77   :  { %1057 = vmatpush.bf16.msrb.mxu0 %v5475_v6  ;;  %v7758_v6 = vld [vmem:[#allocation4 + $0x12c] sm:$0xf0]  ;;  %v5555_v0 = vor.u32 %v7771_v60, %v5554_v59  ;;  %v5706_v60 = vld [vmem:[#allocation6 + $0xc0] sm:$0xf] }
  0x78   :  { %v5499_v11 = vor.u32 %v7758_v6, %v5498_v5  ;;  %1049 = vmatpush.bf16.msra.mxu3 %v5519_v63  ;;  %v5538_v5 = vld [vmem:[#allocation4 + $0x168] sm:$0xf]  ;;  %v7767_v6 = vld [vmem:[#allocation4 + $0x174] sm:$0xf0] }
  0x79   :  { %1083 = vmatpush.bf16.msrb.mxu2 %v5479_v9  ;;  %v5500_v9 = vld [vmem:[#allocation4 + $0x130] sm:$0xf0]  ;;  %v5539_v10 = vor.u32 %v7767_v6, %v5538_v5  ;;  %v5707_v5 = vor.u32 %v7812_v61, %v5706_v60  ;;  %v8012_v61 = vld [vmem:[#allocation6 + $0x71c] sm:$0xf0] }
  0x7a   :  { %v5503_v16 = vor.u32 %v7756_v8, %v5500_v9  ;;  %1024 = vmatpush.bf16.msra.mxu1 %v5499_v11  ;;  %v5540_v11 = vld [vmem:[#allocation4 + $0x178] sm:$0xf0] }
  0x7b   :  { %1058 = vmatpush.bf16.msrb.mxu0 %v5459_v18  ;;  %v5383_v18 = vor.u32 %v7725_v13, %v5380_v14  ;;  %v7763_v14 = vld [vmem:[#allocation4 + $0x154] sm:$0xf0] }
  0x7c   :  { %1050 = vmatpush.bf16.msra.mxu3 %v5503_v16  ;;  %v7761_v16 = vld [vmem:[#allocation4 + $0x14c] sm:$0xf] }
  0x7d   :  { %1084 = vmatpush.bf16.msrb.mxu2 %v5463_v21  ;;  %v7754_v21 = vld [vmem:[#allocation4 + $0x10c] sm:$0xf0] }
  0x7e   :  { %v5483_v23 = vor.u32 %v7754_v21, %v5482_v20  ;;  %v5506_v20 = vld [vmem:[#allocation4 + $0x128] sm:$0xf]  ;;  %v7759_v21 = vld [vmem:[#allocation4 + $0x134] sm:$0xf0] }
  0x7f   :  { %1059 = vmatpush.bf16.msrb.mxu0 %v5443_v30  ;;  %v5364_v30 = vld [vmem:[#allocation4 + $0x18] sm:$0xf0]  ;;  %v5507_v24 = vor.u32 %v7759_v21, %v5506_v20  ;;  %v5962_v20 = vld [vmem:[#allocation6 + $0x2c0] sm:$0xf] }
  0x80   :  { %1025 = vmatpush.bf16.msra.mxu1 %v5483_v23  ;;  %v5367_v32 = vor.u32 %v7721_v29, %v5364_v30  ;;  %1051 = vmatpush.bf16.msra.mxu3 %v5487_v27  ;;  %v5508_v23 = vld [vmem:[#allocation4 + $0x138] sm:$0xf0]  ;;  %v7755_v27 = vld [vmem:[#allocation4 + $0x114] sm:$0xf0]  ;;  %v164_v30 = vperm.slane %v8507_v15, 1 }
  0x81   :  { %1085 = vmatpush.bf16.msrb.mxu2 %v5447_v33  ;;  %v7783_v33 = vld [vmem:[#allocation4 + $0x1f4] sm:$0xf0]  ;;  %v5511_v25 = vor.u32 %v7757_v22, %v5508_v23  ;;  %v5492_v29 = vld [vmem:[#allocation4 + $0x118] sm:$0xf0]  ;;  %v5770_v15 = vld [vmem:[#allocation6 + $0x140] sm:$0xf] }
  0x82   :  { %v5603_v36 = vor.u32 %v7783_v33, %v5602_v31  ;;  %v5491_v31 = vor.u32 %v7755_v27, %v5490_v26  ;;  %v7876_v21 = vld [vmem:[#allocation6 + $0x2dc] sm:$0xf0] }
  0x83   :  { %1060 = vmatpush.bf16.msrb.mxu0 %v5427_v39  ;;  %v7779_v39 = vld [vmem:[#allocation4 + $0x1d4] sm:$0xf0]  ;;  %v6602_v22 = vld [vmem:[#allocation6 + $0x7c0] sm:$0xf]  ;;  %v5963_v23 = vor.u32 %v7876_v21, %v5962_v20  ;;  %v5740_v20 = vld [vmem:[#allocation6 + $0x120] sm:$0xf0] }
  0x84   :  { %1070 = vmatpush.bf16.msrb.mxu1 %v5603_v36  ;;  %1096 = vmatpush.bf16.msrb.mxu3 %v5607_v37  ;;  %v5587_v40 = vor.u32 %v7779_v39, %v5586_v53  ;;  %v7844_v36 = vld [vmem:[#allocation6 + $0x1dc] sm:$0xf0] }
  0x85   :  { %1086 = vmatpush.bf16.msrb.mxu2 %v5431_v41  ;;  %v5588_v41 = vld [vmem:[#allocation4 + $0x1d8] sm:$0xf0]  ;;  %v5802_v37 = vld [vmem:[#allocation6 + $0x180] sm:$0xf] }
  0x86   :  { %v5591_v43 = vor.u32 %v7777_v58, %v5588_v41  ;;  %v7828_v58 = vld [vmem:[#allocation6 + $0x15c] sm:$0xf0] }
  0x87   :  { %1061 = vmatpush.bf16.msrb.mxu0 %v5411_v50  ;;  %v5571_v50 = vor.u32 %v7775_v46, %v5570_v45  ;;  %v6346_v41 = vld [vmem:[#allocation6 + $0x5c0] sm:$0xf] }
  0x88   :  { %1071 = vmatpush.bf16.msrb.mxu1 %v5587_v40  ;;  %1097 = vmatpush.bf16.msrb.mxu3 %v5591_v43  ;;  %v7796_v26 = vld [vmem:[#allocation6 + $0x5c] sm:$0xf0] }
  0x89   :  { %1087 = vmatpush.bf16.msrb.mxu2 %v5415_v55 }
  0x8b   :  { %1062 = vmatpush.bf16.msrb.mxu0 %v5395_v3 }
  0x8c   :  { %1072 = vmatpush.bf16.msrb.mxu1 %v5571_v50  ;;  %1098 = vmatpush.bf16.msrb.mxu3 %v5575_v52  ;;  %v5738_v50 = vld [vmem:[#allocation6 + $0x100] sm:$0xf] }
  0x8d   :  { %1088 = vmatpush.bf16.msrb.mxu2 %v5399_v7  ;;  %v7765_v7 = vld [vmem:[#allocation4 + $0x16c] sm:$0xf] }
  0x8e   :  { %v5543_v13 = vor.u32 %v7765_v7, %v5540_v11  ;;  %v6026_v7 = vld [vmem:[#allocation6 + $0x340] sm:$0xf] }
  0x8f   :  { %1063 = vmatpush.bf16.msrb.mxu0 %v5379_v17  ;;  %v5524_v17 = vld [vmem:[#allocation4 + $0x158] sm:$0xf0]  ;;  %v7884_v11 = vld [vmem:[#allocation6 + $0x31c] sm:$0xf0] }
  0x90   :  { %1073 = vmatpush.bf16.msrb.mxu1 %v5555_v0  ;;  %1099 = vmatpush.bf16.msrb.mxu3 %v5559_v2 }
  0x91   :  { %1089 = vmatpush.bf16.msrb.mxu2 %v5383_v18  ;;  %v5523_v18 = vor.u32 %v7763_v14, %v5522_v12  ;;  %v7804_v14 = vld [vmem:[#allocation6 + $0x9c] sm:$0xf0] }
  0x93   :  { %1064 = vmatpush.bf16.msrb.mxu0 %v5363_v28  ;;  %v7753_v28 = vld [vmem:[#allocation4 + $0x10c] sm:$0xf] }
  0x94   :  { %1074 = vmatpush.bf16.msrb.mxu1 %v5539_v10  ;;  %1100 = vmatpush.bf16.msrb.mxu3 %v5543_v13  ;;  %v5994_v10 = vld [vmem:[#allocation6 + $0x300] sm:$0xf] }
  0x95   :  { %1090 = vmatpush.bf16.msrb.mxu2 %v5367_v32  ;;  %v5495_v32 = vor.u32 %v7753_v28, %v5492_v29  ;;  %v5995_v12 = vor.u32 %v7884_v11, %v5994_v10  ;;  %v5674_v13 = vld [vmem:[#allocation6 + $0x80] sm:$0xf]  ;;  %v7896_v11 = vld [vmem:[#allocation6 + $0x384] sm:$0xf] }
  0x96   :  { %v6282_v29 = vld [vmem:[#allocation6 + $0x540] sm:$0xf] }
  0x97   :  { %v8004_v10 = vld [vmem:[#allocation6 + $0x6dc] sm:$0xf0] }
  0x98   :  { %1075 = vmatpush.bf16.msrb.mxu1 %v5523_v18  ;;  %v7964_v18 = vld [vmem:[#allocation6 + $0x59c] sm:$0xf0] }
  0x9c   :  { %1076 = vmatpush.bf16.msrb.mxu1 %v5507_v24  ;;  %v8036_v24 = vld [vmem:[#allocation6 + $0x7dc] sm:$0xf0] }
  0x9d   :  { %v6603_v27 = vor.u32 %v8036_v24, %v6602_v22  ;;  %v6442_v22 = vld [vmem:[#allocation6 + $0x680] sm:$0xf] }
  0xa0   :  { %1077 = vmatpush.bf16.msrb.mxu1 %v5491_v31 }
  0xb3   :  { %v510_v35 = vpop.f32.mrf.mxu0 }
  0xb4   :  { %v511_v62 = vadd.f32 %v510_v35, %v163_v19  ;;  %v523_v38 = vpop.f32.mrf.mxu1  ;;  %v5527_v19 = vor.u32 %v7761_v16, %v5524_v17  ;;  %v5834_v35 = vld [vmem:[#allocation6 + $0x1c0] sm:$0xf]  ;;  %v5675_v17 = vor.u32 %v7804_v14, %v5674_v13  ;;  %v6060_v13 = vld [vmem:[#allocation6 + $0x3a0] sm:$0xf0] }
  0xb5   :  { %v6314_v16 = vld [vmem:[#allocation6 + $0x580] sm:$0xf] }
  0xb6   :  { %v524_v42 = vadd.f32 %v523_v38, %v511_v62  ;;  %1101 = vmatpush.bf16.msrb.mxu3 %v5527_v19  ;;  %v5835_v62 = vor.u32 %v7844_v36, %v5834_v35  ;;  %v7836_v38 = vld [vmem:[#allocation6 + $0x19c] sm:$0xf0]  ;;  %v6315_v19 = vor.u32 %v7964_v18, %v6314_v16 }
  0xb7   :  { %v5803_v39 = vor.u32 %v7836_v38, %v5802_v37  ;;  %v8028_v35 = vld [vmem:[#allocation6 + $0x79c] sm:$0xf0] }
  0xb8   :  { %v5610_v37 = vld [vmem:[#allocation6] sm:$0xf] }
  0xb9   :  { %v6250_v38 = vld [vmem:[#allocation6 + $0x500] sm:$0xf] }
  0xba   :  { %1102 = vmatpush.bf16.msrb.mxu3 %v5511_v25  ;;  %v5642_v25 = vld [vmem:[#allocation6 + $0x40] sm:$0xf] }
  0xbb   :  { %v536_v44 = vpop.f32.mrf.mxu2  ;;  %v512_v55 = vpop.f32.mrf.mxu0  ;;  %v5643_v28 = vor.u32 %v7796_v26, %v5642_v25  ;;  %v6154_v14 = vld [vmem:[#allocation6 + $0x440] sm:$0xf]  ;;  %v7888_v25 = vld [vmem:[#allocation6 + $0x344] sm:$0xf] }
  0xbc   :  { %v537_v48 = vadd.f32 %v536_v44, %v524_v42  ;;  %v549_v49 = vpop.f32.mrf.mxu3  ;;  %v525_v56 = vpop.f32.mrf.mxu1  ;;  %v7972_v42 = vld [vmem:[#allocation6 + $0x5dc] sm:$0xf0]  ;;  %v6028_v26 = vld [vmem:[#allocation6 + $0x360] sm:$0xf0] }
  0xbd   :  { %v6347_v46 = vor.u32 %v7972_v42, %v6346_v41  ;;  %v7908_v55 = vld [vmem:[#allocation6 + $0x3dc] sm:$0xf0]  ;;  %v5739_v56 = vor.u32 %v7820_v51, %v5738_v50  ;;  %v7832_v51 = vld [vmem:[#allocation6 + $0x184] sm:$0xf] }
  0xbe   :  { %v550_v54 = vadd.f32 %v549_v49, %v537_v48  ;;  %1103 = vmatpush.bf16.msrb.mxu3 %v5495_v32  ;;  %v5771_v48 = vor.u32 %v7828_v58, %v5770_v15  ;;  %v5930_v32 = vld [vmem:[#allocation6 + $0x280] sm:$0xf]  ;;  %v7840_v15 = vld [vmem:[#allocation6 + $0x1c4] sm:$0xf] }
  0xbf   :  { %v5836_v58 = vld [vmem:[#allocation6 + $0x1e0] sm:$0xf0]  ;;  %v5898_v42 = vld [vmem:[#allocation6 + $0x240] sm:$0xf] }
  0xc0   :  { %v605_v63 = vmul.f32 0.2, %v550_v54  ;;  %v5839_v41 = vor.u32 %v7840_v15, %v5836_v58  ;;  %v7924_v16 = vld [vmem:[#allocation6 + $0x45c] sm:$0xf0]  ;;  %v7800_v15 = vld [vmem:[#allocation6 + $0x84] sm:$0xf] }
  0xc1   :  { %v6155_v18 = vor.u32 %v7924_v16, %v6154_v14  ;;  %v5676_v58 = vld [vmem:[#allocation6 + $0xa0] sm:$0xf0] }
  0xc2   :  { %v607_v3 = vmax.f32 %v550_v54, %v605_v63  ;;  %v6090_v54 = vld [vmem:[#allocation6 + $0x3c0] sm:$0xf]  ;;  %v5900_v14 = vld [vmem:[#allocation6 + $0x260] sm:$0xf0] }
  0xc3   :  { %v538_v4 = vpop.f32.mrf.mxu2  ;;  %v6091_v0 = vor.u32 %v7908_v55, %v6090_v54  ;;  %v5866_v55 = vld [vmem:[#allocation6 + $0x200] sm:$0xf]  ;;  %v8016_v16 = vld [vmem:[#allocation6 + $0x744] sm:$0xf] }
  0xc4   :  { %v609_v8 = vpack.c.bf16 %v607_v3, %v607_v3  ;;  %v551_v9 = vpop.f32.mrf.mxu3  ;;  %v6058_v3 = vld [vmem:[#allocation6 + $0x380] sm:$0xf] }
  0xc5   :  { %v7900_v4 = vld [vmem:[#allocation6 + $0x39c] sm:$0xf0] }
  0xc6   :  { %1013 = vmatmul.bf16.vlgmr.msra.gmra.mxu0 %v609_v8  ;;  %1039 = vmatmul.bf16.vlgmr.msra.gmra.mxu2 %v609_v8  ;;  %v6059_v6 = vor.u32 %v7900_v4, %v6058_v3  ;;  %v6186_v3 = vld [vmem:[#allocation6 + $0x480] sm:$0xf] }
  0xc7   :  { %2675 = vmatpush.bf16.msra.mxu0 %v5835_v62  ;;  %2701 = vmatpush.bf16.msra.mxu2 %v6347_v46  ;;  %v7788_v62 = vld [vmem:[#allocation6 + $0x1c] sm:$0xf0] }
  0xc8   :  { %v8020_v46 = vld [vmem:[#allocation6 + $0x75c] sm:$0xf0] }
  0xc9   :  { %v7932_v4 = vld [vmem:[#allocation6 + $0x49c] sm:$0xf0] }
  0xcb   :  { %2676 = vmatpush.bf16.msra.mxu0 %v5803_v39  ;;  %2702 = vmatpush.bf16.msra.mxu2 %v6315_v19  ;;  %v7948_v39 = vld [vmem:[#allocation6 + $0x51c] sm:$0xf0]  ;;  %v7816_v19 = vld [vmem:[#allocation6 + $0x104] sm:$0xf] }
  0xcc   :  { %v5743_v21 = vor.u32 %v7816_v19, %v5740_v20 }
  0xcf   :  { %2677 = vmatpush.bf16.msra.mxu0 %v5771_v48  ;;  %v7940_v48 = vld [vmem:[#allocation6 + $0x4dc] sm:$0xf0] }
  0xd3   :  { %v562_v33 = vpop.f32.mrf.mxu0  ;;  %2678 = vmatpush.bf16.msra.mxu0 %v5739_v56  ;;  %v7852_v56 = vld [vmem:[#allocation6 + $0x21c] sm:$0xf0] }
  0xd4   :  { %v563_v34 = vadd.f32 %v562_v33, %v164_v30  ;;  %v575_v57 = vpop.f32.mrf.mxu1  ;;  %v7956_v30 = vld [vmem:[#allocation6 + $0x55c] sm:$0xf0]  ;;  %v5867_v60 = vor.u32 %v7852_v56, %v5866_v55  ;;  %v7792_v55 = vld [vmem:[#allocation6 + $0x44] sm:$0xf] }
  0xd5   :  { %v6283_v31 = vor.u32 %v7956_v30, %v6282_v29  ;;  %v7868_v33 = vld [vmem:[#allocation6 + $0x29c] sm:$0xf0]  ;;  %v5644_v56 = vld [vmem:[#allocation6 + $0x60] sm:$0xf0] }
  0xd6   :  { %v576_v53 = vadd.f32 %v575_v57, %v563_v34  ;;  %1065 = vmatmul.bf16.vlgmr.msrb.gmra.mxu0 %v609_v8  ;;  %1091 = vmatmul.bf16.vlgmr.msrb.gmra.mxu2 %v609_v8  ;;  %v7892_v8 = vld [vmem:[#allocation6 + $0x35c] sm:$0xf0]  ;;  %v5931_v57 = vor.u32 %v7868_v33, %v5930_v32  ;;  %v5708_v32 = vld [vmem:[#allocation6 + $0xe0] sm:$0xf0] }
  0xd7   :  { %2679 = vmatpush.bf16.msra.mxu0 %v5707_v5  ;;  %v6027_v9 = vor.u32 %v7892_v8, %v6026_v7  ;;  %v6570_v34 = vld [vmem:[#allocation6 + $0x780] sm:$0xf]  ;;  %2703 = vmatpush.bf16.msra.mxu2 %v6283_v31  ;;  %v6187_v5 = vor.u32 %v7932_v4, %v6186_v3  ;;  %v5772_v7 = vld [vmem:[#allocation6 + $0x160] sm:$0xf0] }
  0xd8   :  { %v6571_v36 = vor.u32 %v8028_v35, %v6570_v34  ;;  %v7916_v29 = vld [vmem:[#allocation6 + $0x41c] sm:$0xf0]  ;;  %v7808_v31 = vld [vmem:[#allocation6 + $0xc4] sm:$0xf] }
  0xd9   :  { %v7968_v33 = vld [vmem:[#allocation6 + $0x5c4] sm:$0xf]  ;;  %v5711_v34 = vor.u32 %v7808_v31, %v5708_v32  ;;  %v6410_v35 = vld [vmem:[#allocation6 + $0x640] sm:$0xf] }
  0xda   :  { %v6572_v4 = vld [vmem:[#allocation6 + $0x7a0] sm:$0xf0] }
  0xdb   :  { %v588_v40 = vpop.f32.mrf.mxu2  ;;  %v564_v45 = vpop.f32.mrf.mxu0  ;;  %2680 = vmatpush.bf16.msra.mxu0 %v5675_v17  ;;  %v6063_v17 = vor.u32 %v7896_v11, %v6060_v13  ;;  %v7856_v13 = vld [vmem:[#allocation6 + $0x244] sm:$0xf] }
  0xdc   :  { %v589_v43 = vadd.f32 %v588_v40, %v576_v53  ;;  %v601_v44 = vpop.f32.mrf.mxu3  ;;  %v577_v47 = vpop.f32.mrf.mxu1  ;;  %v5611_v53 = vor.u32 %v7788_v62, %v5610_v37  ;;  %v6251_v40 = vor.u32 %v7948_v39, %v6250_v38  ;;  %v7880_v38 = vld [vmem:[#allocation6 + $0x304] sm:$0xf] }
  0xdd   :  { %v6218_v47 = vld [vmem:[#allocation6 + $0x4c0] sm:$0xf]  ;;  %v6188_v31 = vld [vmem:[#allocation6 + $0x4a0] sm:$0xf0] }
  0xde   :  { %v602_v49 = vadd.f32 %v601_v44, %v589_v43  ;;  %v7860_v43 = vld [vmem:[#allocation6 + $0x25c] sm:$0xf0]  ;;  %2704 = vmatpush.bf16.msra.mxu2 %v6251_v40  ;;  %v6219_v50 = vor.u32 %v7940_v48, %v6218_v47  ;;  %v7960_v40 = vld [vmem:[#allocation6 + $0x584] sm:$0xf] }
  0xdf   :  { %2681 = vmatpush.bf16.msra.mxu0 %v5643_v28  ;;  %v6538_v44 = vld [vmem:[#allocation6 + $0x740] sm:$0xf]  ;;  %v5899_v45 = vor.u32 %v7860_v43, %v5898_v42  ;;  %v6316_v42 = vld [vmem:[#allocation6 + $0x5a0] sm:$0xf0] }
  0xe0   :  { %v606_v52 = vmul.f32 0.2, %v602_v49  ;;  %v6122_v28 = vld [vmem:[#allocation6 + $0x400] sm:$0xf]  ;;  %v7872_v47 = vld [vmem:[#allocation6 + $0x2c4] sm:$0xf] }
  0xe1   :  { %v6123_v30 = vor.u32 %v7916_v29, %v6122_v28  ;;  %v6378_v43 = vld [vmem:[#allocation6 + $0x600] sm:$0xf]  ;;  %v5964_v48 = vld [vmem:[#allocation6 + $0x2e0] sm:$0xf0] }
  0xe2   :  { %v608_v59 = vmax.f32 %v602_v49, %v606_v52  ;;  %v6539_v49 = vor.u32 %v8020_v46, %v6538_v44  ;;  %v5804_v52 = vld [vmem:[#allocation6 + $0x1a0] sm:$0xf0]  ;;  %2705 = vmatpush.bf16.msra.mxu2 %v6219_v50  ;;  %v7980_v44 = vld [vmem:[#allocation6 + $0x61c] sm:$0xf0]  ;;  %v5967_v50 = vor.u32 %v7872_v47, %v5964_v48 }
  0xe3   :  { %v590_v63 = vpop.f32.mrf.mxu2  ;;  %2682 = vmatpush.bf16.msra.mxu0 %v5611_v53  ;;  %v5807_v54 = vor.u32 %v7832_v51, %v5804_v52  ;;  %v5996_v53 = vld [vmem:[#allocation6 + $0x320] sm:$0xf0]  ;;  %v6379_v46 = vor.u32 %v7980_v44, %v6378_v43 }
  0xe4   :  { %v610_v1 = vpack.c.bf16 %v608_v59, %v608_v59  ;;  %v603_v2 = vpop.f32.mrf.mxu3  ;;  %v6506_v59 = vld [vmem:[#allocation6 + $0x700] sm:$0xf]  ;;  %v7904_v63 = vld [vmem:[#allocation6 + $0x3c4] sm:$0xf]  ;;  %v5999_v39 = vor.u32 %v7880_v38, %v5996_v53 }
  0xe5   :  { %v6604_v51 = vld [vmem:[#allocation6 + $0x7e0] sm:$0xf0] }
  0xe6   :  { %1026 = vmatmul.bf16.vlgmr.msra.gmra.mxu1 %v610_v1  ;;  %1052 = vmatmul.bf16.vlgmr.msra.gmra.mxu3 %v610_v1  ;;  %v6508_v28 = vld [vmem:[#allocation6 + $0x720] sm:$0xf0] }
  0xe7   :  { %2688 = vmatpush.bf16.msra.mxu1 %v6091_v0  ;;  %2714 = vmatpush.bf16.msra.mxu3 %v6603_v27  ;;  %v6092_v0 = vld [vmem:[#allocation6 + $0x3e0] sm:$0xf0]  ;;  %v6031_v27 = vor.u32 %v7888_v25, %v6028_v26 }
  0xe8   :  { %2727 = vmatpush.bf16.msrb.mxu0 %v5839_v41  ;;  %v6095_v2 = vor.u32 %v7904_v63, %v6092_v0  ;;  %2706 = vmatpush.bf16.msra.mxu2 %v6187_v5  ;;  %v5679_v41 = vor.u32 %v7800_v15, %v5676_v58  ;;  %v7864_v0 = vld [vmem:[#allocation6 + $0x284] sm:$0xf] }
  0xe9   :  { %v5868_v25 = vld [vmem:[#allocation6 + $0x220] sm:$0xf0] }
  0xea   :  { %v8008_v26 = vld [vmem:[#allocation6 + $0x704] sm:$0xf] }
  0xeb   :  { %2689 = vmatpush.bf16.msra.mxu1 %v6059_v6  ;;  %2715 = vmatpush.bf16.msra.mxu3 %v6571_v36  ;;  %v7824_v6 = vld [vmem:[#allocation6 + $0x144] sm:$0xf]  ;;  %v7988_v36 = vld [vmem:[#allocation6 + $0x65c] sm:$0xf0]  ;;  %v6511_v29 = vor.u32 %v8008_v26, %v6508_v28  ;;  %v7821_v26 = vld [vmem:[#allocation6 + $0x124] sm:$0xf0] }
  0xec   :  { %2728 = vmatpush.bf16.msrb.mxu0 %v5807_v54  ;;  %v5775_v8 = vor.u32 %v7824_v6, %v5772_v7  ;;  %2707 = vmatpush.bf16.msra.mxu2 %v6155_v18  ;;  %v6411_v62 = vor.u32 %v7988_v36, %v6410_v35  ;;  %v7784_v6 = vld [vmem:[#allocation6 + $0x4] sm:$0xf] }
  0xed   :  { %v5612_v7 = vld [vmem:[#allocation6 + $0x20] sm:$0xf0] }
  0xee   :  { %v6540_v18 = vld [vmem:[#allocation6 + $0x760] sm:$0xf0] }
  0xef   :  { %2690 = vmatpush.bf16.msra.mxu1 %v6027_v9  ;;  %2716 = vmatpush.bf16.msra.mxu3 %v6539_v49  ;;  %v6474_v9 = vld [vmem:[#allocation6 + $0x6c0] sm:$0xf]  ;;  %v8032_v49 = vld [vmem:[#allocation6 + $0x7c4] sm:$0xf]  ;;  %v6543_v20 = vor.u32 %v8016_v16, %v6540_v18 }
  0xf0   :  { %2729 = vmatpush.bf16.msrb.mxu0 %v5775_v8  ;;  %2708 = vmatpush.bf16.msra.mxu2 %v6123_v30  ;;  %v6607_v54 = vor.u32 %v8032_v49, %v6604_v51  ;;  %v7944_v8 = vld [vmem:[#allocation6 + $0x504] sm:$0xf] }
  0xf1   :  { %v7928_v30 = vld [vmem:[#allocation6 + $0x484] sm:$0xf] }
  0xf2   :  { %v6191_v32 = vor.u32 %v7928_v30, %v6188_v31  ;;  %v7992_v53 = vld [vmem:[#allocation6 + $0x684] sm:$0xf]  ;;  %v6034_v31 = vld [vmem:[#allocation6 + $0x348] sm:$0xf] }
  0xf3   :  { %2691 = vmatpush.bf16.msra.mxu1 %v5995_v12  ;;  %v6475_v12 = vor.u32 %v8004_v10, %v6474_v9  ;;  %v5615_v9 = vor.u32 %v7784_v6, %v5612_v7  ;;  %v6252_v10 = vld [vmem:[#allocation6 + $0x520] sm:$0xf0]  ;;  %v5810_v7 = vld [vmem:[#allocation6 + $0x188] sm:$0xf] }
  0xf4   :  { %2730 = vmatpush.bf16.msrb.mxu0 %v5743_v21  ;;  %v7936_v21 = vld [vmem:[#allocation6 + $0x4c4] sm:$0xf] }
  0xf5   :  { %v7912_v58 = vld [vmem:[#allocation6 + $0x404] sm:$0xf] }
  0xf6   :  { %1078 = vmatmul.bf16.vlgmr.msrb.gmra.mxu1 %v610_v1  ;;  %1104 = vmatmul.bf16.vlgmr.msrb.gmra.mxu3 %v610_v1  ;;  %v6507_v1 = vor.u32 %v8012_v61, %v6506_v59  ;;  %v7952_v59 = vld [vmem:[#allocation6 + $0x544] sm:$0xf] }
  0xf7   :  { %2692 = vmatpush.bf16.msra.mxu1 %v5963_v23  ;;  %v7996_v23 = vld [vmem:[#allocation6 + $0x69c] sm:$0xf0]  ;;  %v6284_v61 = vld [vmem:[#allocation6 + $0x560] sm:$0xf0] }
  0xf8   :  { %2717 = vmatpush.bf16.msra.mxu3 %v6507_v1  ;;  %v6443_v24 = vor.u32 %v7996_v23, %v6442_v22  ;;  %2731 = vmatpush.bf16.msrb.mxu0 %v5711_v34  ;;  %v6287_v63 = vor.u32 %v7952_v59, %v6284_v61  ;;  %v5932_v1 = vld [vmem:[#allocation6 + $0x2a0] sm:$0xf0] }
  0xf9   :  { %v5935_v3 = vor.u32 %v7864_v0, %v5932_v1  ;;  %v6220_v22 = vld [vmem:[#allocation6 + $0x4e0] sm:$0xf0]  ;;  %v7845_v0 = vld [vmem:[#allocation6 + $0x1e4] sm:$0xf0] }
  0xfa   :  { %v6223_v23 = vor.u32 %v7936_v21, %v6220_v22  ;;  %v8000_v34 = vld [vmem:[#allocation6 + $0x6c4] sm:$0xf]  ;;  %v7901_v21 = vld [vmem:[#allocation6 + $0x3a4] sm:$0xf0] }
  0xfb   :  { %2693 = vmatpush.bf16.msra.mxu1 %v5931_v57  ;;  %v6348_v57 = vld [vmem:[#allocation6 + $0x5e0] sm:$0xf0] }
  0xfc   :  { %2718 = vmatpush.bf16.msra.mxu3 %v6475_v12  ;;  %v6351_v37 = vor.u32 %v7968_v33, %v6348_v57  ;;  %2732 = vmatpush.bf16.msrb.mxu0 %v5679_v41  ;;  %v6255_v12 = vor.u32 %v7944_v8, %v6252_v10  ;;  %v6476_v57 = vld [vmem:[#allocation6 + $0x6e0] sm:$0xf0]  ;;  %v7837_v8 = vld [vmem:[#allocation6 + $0x1a4] sm:$0xf0] }
  0xfd   :  { %v6479_v35 = vor.u32 %v8000_v34, %v6476_v57  ;;  %v7984_v44 = vld [vmem:[#allocation6 + $0x644] sm:$0xf]  ;;  %v6098_v10 = vld [vmem:[#allocation6 + $0x3c8] sm:$0xf] }
  0xfe   :  { %2753 = vmatpush.bf16.msrb.mxu2 %v6351_v37  ;;  %v7920_v37 = vld [vmem:[#allocation6 + $0x444] sm:$0xf]  ;;  %v5714_v34 = vld [vmem:[#allocation6 + $0xc8] sm:$0xf] }
  0xff   :  { %2694 = vmatpush.bf16.msra.mxu1 %v5899_v45  ;;  %v6319_v45 = vor.u32 %v7960_v40, %v6316_v42  ;;  %v6124_v40 = vld [vmem:[#allocation6 + $0x420] sm:$0xf0]  ;;  %v8518_v42 = vld [vmem:[%s8748_s4] sm:$0xf]  ;;  %v7813_v57 = vld [vmem:[#allocation6 + $0xe4] sm:$0xf0] }
 0x100   :  { %2719 = vmatpush.bf16.msra.mxu3 %v6443_v24  ;;  %v7848_v24 = vld [vmem:[#allocation6 + $0x204] sm:$0xf]  ;;  %v6127_v41 = vor.u32 %v7912_v58, %v6124_v40  ;;  %v677_v48 = vperm.slane %v8518_v42, 0  ;;  %v678_v59 = vperm.slane %v8518_v42, 1  ;;  %v5715_v40 = vor.u32 %v7813_v57, %v5714_v34  ;;  %v7833_v34 = vld [vmem:[#allocation6 + $0x18c] sm:$0xf] }
 0x101   :  { %v7976_v49 = vld [vmem:[#allocation6 + $0x604] sm:$0xf]  ;;  %v5812_v57 = vld [vmem:[#allocation6 + $0x1a8] sm:$0xf0] }
 0x102   :  { %2754 = vmatpush.bf16.msrb.mxu2 %v6319_v45  ;;  %v6412_v45 = vld [vmem:[#allocation6 + $0x660] sm:$0xf0] }
 0x103   :  { %2695 = vmatpush.bf16.msra.mxu1 %v5867_v60  ;;  %v5647_v60 = vor.u32 %v7792_v55, %v5644_v56 }
 0x104   :  { %2720 = vmatpush.bf16.msra.mxu3 %v6411_v62  ;;  %v6156_v62 = vld [vmem:[#allocation6 + $0x460] sm:$0xf0] }
 0x105   :  { %2733 = vmatpush.bf16.msrb.mxu0 %v5647_v60  ;;  %v6159_v38 = vor.u32 %v7920_v37, %v6156_v62  ;;  %v6354_v37 = vld [vmem:[#allocation6 + $0x5c8] sm:$0xf] }
 0x106   :  { %2755 = vmatpush.bf16.msrb.mxu2 %v6287_v63  ;;  %v5842_v63 = vld [vmem:[#allocation6 + $0x1c8] sm:$0xf] }
 0x107   :  { %2740 = vmatpush.bf16.msrb.mxu1 %v6095_v2  ;;  %v8024_v2 = vld [vmem:[#allocation6 + $0x784] sm:$0xf]  ;;  %v7973_v62 = vld [vmem:[#allocation6 + $0x5e4] sm:$0xf0] }
 0x108   :  { %2721 = vmatpush.bf16.msra.mxu3 %v6379_v46  ;;  %v6575_v5 = vor.u32 %v8024_v2, %v6572_v4  ;;  %v6415_v46 = vor.u32 %v7984_v44, %v6412_v45  ;;  %v5843_v4 = vor.u32 %v7845_v0, %v5842_v63  ;;  %v7797_v0 = vld [vmem:[#allocation6 + $0x64] sm:$0xf0] }
 0x109   :  { %2734 = vmatpush.bf16.msrb.mxu0 %v5615_v9 }
 0x10a   :  { %2756 = vmatpush.bf16.msrb.mxu2 %v6255_v12  ;;  %v7909_v12 = vld [vmem:[#allocation6 + $0x3e4] sm:$0xf0] }
 0x10b   :  { %2741 = vmatpush.bf16.msrb.mxu1 %v6063_v17  ;;  %v5903_v17 = vor.u32 %v7856_v13, %v5900_v14  ;;  %v5811_v13 = vor.u32 %v7837_v8, %v5810_v7  ;;  %v679_v14 = vperm.slane %v8518_v42, 2  ;;  %v6099_v18 = vor.u32 %v7909_v12, %v6098_v10  ;;  %v7869_v8 = vld [vmem:[#allocation6 + $0x2a4] sm:$0xf0] }
 0x10c   :  { %2766 = vmatpush.bf16.msrb.mxu3 %v6607_v54 }
 0x10e   :  { %2757 = vmatpush.bf16.msrb.mxu2 %v6223_v23 }
 0x10f   :  { %2742 = vmatpush.bf16.msrb.mxu1 %v6031_v27  ;;  %v5871_v27 = vor.u32 %v7848_v24, %v5868_v25  ;;  %v5746_v25 = vld [vmem:[#allocation6 + $0x108] sm:$0xf] }
 0x110   :  { %2767 = vmatpush.bf16.msrb.mxu3 %v6575_v5 }
 0x112   :  { %2758 = vmatpush.bf16.msrb.mxu2 %v6191_v32  ;;  %v7893_v32 = vld [vmem:[#allocation6 + $0x364] sm:$0xf0] }
 0x113   :  { %2743 = vmatpush.bf16.msrb.mxu1 %v5999_v39  ;;  %v6444_v39 = vld [vmem:[#allocation6 + $0x6a0] sm:$0xf0] }
 0x114   :  { %2768 = vmatpush.bf16.msrb.mxu3 %v6543_v20  ;;  %v6447_v15 = vor.u32 %v7992_v53, %v6444_v39  ;;  %v6066_v20 = vld [vmem:[#allocation6 + $0x388] sm:$0xf] }
 0x115   :  { %v6067_v28 = vor.u32 %v7901_v21, %v6066_v20  ;;  %v6002_v39 = vld [vmem:[#allocation6 + $0x308] sm:$0xf]  ;;  %v7841_v21 = vld [vmem:[#allocation6 + $0x1cc] sm:$0xf] }
 0x116   :  { %2759 = vmatpush.bf16.msrb.mxu2 %v6159_v38 }
 0x117   :  { %2744 = vmatpush.bf16.msrb.mxu1 %v5967_v50  ;;  %v6380_v50 = vld [vmem:[#allocation6 + $0x620] sm:$0xf0] }
 0x118   :  { %2769 = vmatpush.bf16.msrb.mxu3 %v6511_v29  ;;  %v6383_v51 = vor.u32 %v7976_v49, %v6380_v50  ;;  %v680_v29 = vperm.slane %v8518_v42, 3  ;;  %v5682_v42 = vld [vmem:[#allocation6 + $0x88] sm:$0xf] }
 0x11a   :  { %2760 = vmatpush.bf16.msrb.mxu2 %v6127_v41  ;;  %v6355_v41 = vor.u32 %v7973_v62, %v6354_v37  ;;  %v7853_v37 = vld [vmem:[#allocation6 + $0x224] sm:$0xf0] }
 0x11b   :  { %2745 = vmatpush.bf16.msrb.mxu1 %v5935_v3  ;;  %v6514_v62 = vld [vmem:[#allocation6 + $0x708] sm:$0xf] }
 0x11c   :  { %2770 = vmatpush.bf16.msrb.mxu3 %v6479_v35 }
 0x11f   :  { %2746 = vmatpush.bf16.msrb.mxu1 %v5903_v17  ;;  %v7829_v17 = vld [vmem:[#allocation6 + $0x164] sm:$0xf0] }
 0x120   :  { %2771 = vmatpush.bf16.msrb.mxu3 %v6447_v15  ;;  %v7885_v15 = vld [vmem:[#allocation6 + $0x324] sm:$0xf0] }
 0x121   :  { %v6003_v50 = vor.u32 %v7885_v15, %v6002_v39  ;;  %v6100_v39 = vld [vmem:[#allocation6 + $0x3e8] sm:$0xf0]  ;;  %v5815_v15 = vor.u32 %v7833_v34, %v5812_v57 }
 0x122   :  { %v8033_v34 = vld [vmem:[#allocation6 + $0x7cc] sm:$0xf] }
 0x123   :  { %2747 = vmatpush.bf16.msrb.mxu1 %v5871_v27  ;;  %v6612_v57 = vld [vmem:[#allocation6 + $0x7e8] sm:$0xf0] }
 0x124   :  { %2772 = vmatpush.bf16.msrb.mxu3 %v6415_v46  ;;  %v7805_v46 = vld [vmem:[#allocation6 + $0xa4] sm:$0xf0] }
 0x128   :  { %2773 = vmatpush.bf16.msrb.mxu3 %v6383_v51  ;;  %v5970_v51 = vld [vmem:[#allocation6 + $0x2c8] sm:$0xf] }
 0x143   :  { %v8511_v52 = vpop.f32.mrf.mxu0 }
 0x144   :  { %v1015_v54 = vadd.f32 %v8511_v52, %v677_v48  ;;  %v7965_v48 = vld [vmem:[#allocation6 + $0x5a4] sm:$0xf0] }
 0x149   :  { %v8513_v11 = vpop.f32.mrf.mxu2 }
 0x14a   :  { %v1041_v1 = vadd.f32 %v8513_v11, %v678_v59  ;;  %v5778_v11 = vld [vmem:[#allocation6 + $0x148] sm:$0xf]  ;;  %v5683_v59 = vor.u32 %v7805_v46, %v5682_v42  ;;  %v5780_v46 = vld [vmem:[#allocation6 + $0x168] sm:$0xf0] }
 0x14b   :  { %v1016_v19 = vpop.f32.mrf.mxu0  ;;  %v5779_v23 = vor.u32 %v7829_v17, %v5778_v11  ;;  %v6258_v11 = vld [vmem:[#allocation6 + $0x508] sm:$0xf] }
 0x14c   :  { %v7949_v17 = vld [vmem:[#allocation6 + $0x524] sm:$0xf0] }
 0x151   :  { %v1042_v33 = vpop.f32.mrf.mxu2 }
 0x152   :  { %v5747_v33 = vor.u32 %v7821_v26, %v5746_v25  ;;  %v6546_v25 = vld [vmem:[#allocation6 + $0x748] sm:$0xf] }
 0x153   :  { %v1066_v36 = vpop.f32.mrf.mxu0  ;;  %v8021_v26 = vld [vmem:[#allocation6 + $0x764] sm:$0xf0] }
 0x154   :  { %v1067_v24 = vadd.f32 %v1066_v36, %v679_v14  ;;  %v6035_v36 = vor.u32 %v7893_v32, %v6034_v31  ;;  %v5618_v14 = vld [vmem:[#allocation6 + $0x8] sm:$0xf] }
 0x155   :  { %v7941_v31 = vld [vmem:[#allocation6 + $0x4e4] sm:$0xf0] }
 0x159   :  { %v8520_v43 = vpop.f32.mrf.mxu2 }
 0x15a   :  { %v1093_v38 = vadd.f32 %v8520_v43, %v680_v29 }
 0x15b   :  { %v1068_v47 = vpop.f32.mrf.mxu0 }
 0x15c   :  { %v6322_v47 = vld [vmem:[#allocation6 + $0x588] sm:$0xf] }
 0x161   :  { %v1094_v56 = vpop.f32.mrf.mxu2 }
 0x162   :  { %v8037_v56 = vld [vmem:[#allocation6 + $0x7e4] sm:$0xf0] }
 0x163   :  { %v1027_v55 = vpop.f32.mrf.mxu1 }
 0x164   :  { %v1028_v60 = vadd.f32 %v1027_v55, %v1015_v54  ;;  %v7877_v54 = vld [vmem:[#allocation6 + $0x2e4] sm:$0xf0] }
 0x165   :  { %v6610_v55 = vld [vmem:[#allocation6 + $0x7c8] sm:$0xf] }
 0x166   :  { %v1109_v61 = vmul.f32 0.2, %v1028_v60 }
 0x168   :  { %v1113_v2 = vmax.f32 %v1028_v60, %v1109_v61  ;;  %v6323_v60 = vor.u32 %v7965_v48, %v6322_v47  ;;  %v5650_v61 = vld [vmem:[#allocation6 + $0x48] sm:$0xf] }
 0x169   :  { %v1053_v3 = vpop.f32.mrf.mxu3  ;;  %v5651_v12 = vor.u32 %v7797_v0, %v5650_v61  ;;  %v6482_v48 = vld [vmem:[#allocation6 + $0x6c8] sm:$0xf]  ;;  %v5748_v61 = vld [vmem:[#allocation6 + $0x128] sm:$0xf0] }
 0x16a   :  { %v8526_v5 = vpack.c.bf16 %v1113_v2, %v1113_v2  ;;  %v1054_v6 = vadd.f32 %v1053_v3, %v1041_v1  ;;  %v6290_v1 = vld [vmem:[#allocation6 + $0x548] sm:$0xf]  ;;  %v5971_v3 = vor.u32 %v7877_v54, %v5970_v51  ;;  %v7897_v51 = vld [vmem:[#allocation6 + $0x38c] sm:$0xf] }
 0x16b   :  { %v1029_v52 = vpop.f32.mrf.mxu1  ;;  %v7957_v2 = vld [vmem:[#allocation6 + $0x564] sm:$0xf0]  ;;  %v6068_v54 = vld [vmem:[#allocation6 + $0x3a8] sm:$0xf0] }
 0x16c   :  { %v1110_v9 = vmul.f32 0.2, %v1054_v6  ;;  %2683 = vmatmul.bf16.vlgmr.msra.gmra.mxu0 %v8526_v5  ;;  %v6578_v52 = vld [vmem:[#allocation6 + $0x788] sm:$0xf] }
 0x16d   :  { %2779 = vmatpush.bf16.msra.mxu0 %v5843_v4  ;;  %v6611_v4 = vor.u32 %v8037_v56, %v6610_v55  ;;  %v6162_v55 = vld [vmem:[#allocation6 + $0x448] sm:$0xf] }
 0x16e   :  { %v1114_v16 = vmax.f32 %v1054_v6, %v1110_v9  ;;  %v5938_v6 = vld [vmem:[#allocation6 + $0x288] sm:$0xf] }
 0x16f   :  { %v8029_v9 = vld [vmem:[#allocation6 + $0x7a4] sm:$0xf0] }
 0x170   :  { %v8530_v19 = vpack.c.bf16 %v1114_v16, %v1114_v16  ;;  %v7789_v16 = vld [vmem:[#allocation6 + $0x24] sm:$0xf0]  ;;  %v6579_v20 = vor.u32 %v8029_v9, %v6578_v52  ;;  %v7809_v9 = vld [vmem:[#allocation6 + $0xcc] sm:$0xf] }
 0x171   :  { %2780 = vmatpush.bf16.msra.mxu0 %v5811_v13  ;;  %v1055_v22 = vpop.f32.mrf.mxu3  ;;  %v6291_v13 = vor.u32 %v7957_v2, %v6290_v1  ;;  %v7925_v56 = vld [vmem:[#allocation6 + $0x464] sm:$0xf0] }
 0x172   :  { %2696 = vmatmul.bf16.vlgmr.msra.gmra.mxu1 %v8530_v19  ;;  %v5844_v22 = vld [vmem:[#allocation6 + $0x1e8] sm:$0xf0]  ;;  %v6450_v0 = vld [vmem:[#allocation6 + $0x688] sm:$0xf]  ;;  %v6163_v2 = vor.u32 %v7925_v56, %v6162_v55  ;;  %v5850_v55 = vld [vmem:[#allocation6 + $0x1d0] sm:$0xf] }
 0x173   :  { %2792 = vmatpush.bf16.msra.mxu1 %v6099_v18  ;;  %v1079_v27 = vpop.f32.mrf.mxu1  ;;  %v5939_v18 = vor.u32 %v7869_v8, %v5938_v6  ;;  %v5847_v29 = vor.u32 %v7841_v21, %v5844_v22  ;;  %v7997_v1 = vld [vmem:[#allocation6 + $0x6a4] sm:$0xf0]  ;;  %v6004_v21 = vld [vmem:[#allocation6 + $0x328] sm:$0xf0]  ;;  %v7846_v56 = vld [vmem:[#allocation6 + $0x1ec] sm:$0xf0] }
 0x174   :  { %v1080_v30 = vadd.f32 %v1079_v27, %v1067_v24  ;;  %v7861_v24 = vld [vmem:[#allocation6 + $0x264] sm:$0xf0]  ;;  %v5619_v27 = vor.u32 %v7789_v16, %v5618_v14  ;;  %v6356_v14 = vld [vmem:[#allocation6 + $0x5e8] sm:$0xf0] }
 0x175   :  { %2781 = vmatpush.bf16.msra.mxu0 %v5779_v23  ;;  %v5906_v23 = vld [vmem:[#allocation6 + $0x248] sm:$0xf] }
 0x176   :  { %v1111_v35 = vmul.f32 0.2, %v1080_v30  ;;  %v5907_v32 = vor.u32 %v7861_v24, %v5906_v23  ;;  %v6130_v8 = vld [vmem:[#allocation6 + $0x408] sm:$0xf]  ;;  %v7801_v24 = vld [vmem:[#allocation6 + $0x8c] sm:$0xf] }
 0x177   :  { %2793 = vmatpush.bf16.msra.mxu1 %v6067_v28  ;;  %v6259_v28 = vor.u32 %v7949_v17, %v6258_v11  ;;  %v7917_v52 = vld [vmem:[#allocation6 + $0x424] sm:$0xf0] }
 0x178   :  { %v1115_v53 = vmax.f32 %v1080_v30, %v1111_v35  ;;  %v6226_v30 = vld [vmem:[#allocation6 + $0x4c8] sm:$0xf] }
 0x179   :  { %2782 = vmatpush.bf16.msra.mxu0 %v5747_v33  ;;  %v1105_v58 = vpop.f32.mrf.mxu3  ;;  %v6547_v33 = vor.u32 %v8021_v26, %v6546_v25  ;;  %v5874_v35 = vld [vmem:[#allocation6 + $0x208] sm:$0xf]  ;;  %v5684_v26 = vld [vmem:[#allocation6 + $0xa8] sm:$0xf0] }
 0x17a   :  { %v8535_v44 = vpack.c.bf16 %v1115_v53, %v1115_v53  ;;  %v1106_v45 = vadd.f32 %v1105_v58, %v1093_v38  ;;  %v6227_v38 = vor.u32 %v7941_v31, %v6226_v30  ;;  %v7905_v53 = vld [vmem:[#allocation6 + $0x3cc] sm:$0xf]  ;;  %v6194_v58 = vld [vmem:[#allocation6 + $0x488] sm:$0xf] }
 0x17b   :  { %2794 = vmatpush.bf16.msra.mxu1 %v6035_v36  ;;  %v1081_v49 = vpop.f32.mrf.mxu1  ;;  %v8013_v36 = vld [vmem:[#allocation6 + $0x724] sm:$0xf0]  ;;  %v6103_v47 = vor.u32 %v7905_v53, %v6100_v39  ;;  %v7953_v53 = vld [vmem:[#allocation6 + $0x54c] sm:$0xf] }
 0x17c   :  { %v1112_v43 = vmul.f32 0.2, %v1106_v45  ;;  %2709 = vmatmul.bf16.vlgmr.msra.gmra.mxu2 %v8535_v44  ;;  %2735 = vmatmul.bf16.vlgmr.msrb.gmra.mxu0 %v8526_v5  ;;  %v6515_v42 = vor.u32 %v8013_v36, %v6514_v62  ;;  %v8005_v49 = vld [vmem:[#allocation6 + $0x6e4] sm:$0xf0]  ;;  %v7793_v62 = vld [vmem:[#allocation6 + $0x4c] sm:$0xf] }
 0x17d   :  { %2783 = vmatpush.bf16.msra.mxu0 %v5715_v40  ;;  %2805 = vmatpush.bf16.msra.mxu2 %v6355_v41  ;;  %v7933_v40 = vld [vmem:[#allocation6 + $0x4a4] sm:$0xf0]  ;;  %v5875_v41 = vor.u32 %v7853_v37, %v5874_v35  ;;  %v5687_v35 = vor.u32 %v7801_v24, %v5684_v26  ;;  %v6292_v39 = vld [vmem:[#allocation6 + $0x568] sm:$0xf0]  ;;  %v5786_v24 = vld [vmem:[#allocation6 + $0x150] sm:$0xf] }
 0x17e   :  { %v1116_v63 = vmax.f32 %v1106_v45, %v1112_v43  ;;  %v7825_v45 = vld [vmem:[#allocation6 + $0x14c] sm:$0xf]  ;;  %v6418_v11 = vld [vmem:[#allocation6 + $0x648] sm:$0xf] }
 0x17f   :  { %2795 = vmatpush.bf16.msra.mxu1 %v6003_v50  ;;  %v6195_v50 = vor.u32 %v7933_v40, %v6194_v58  ;;  %v5783_v43 = vor.u32 %v7825_v45, %v5780_v46  ;;  %v7989_v17 = vld [vmem:[#allocation6 + $0x664] sm:$0xf0]  ;;  %v6615_v58 = vor.u32 %v8033_v34, %v6612_v57  ;;  %v7865_v40 = vld [vmem:[#allocation6 + $0x28c] sm:$0xf] }
 0x180   :  { %v8539_v7 = vpack.c.bf16 %v1116_v63, %v1116_v63  ;;  %v6071_v63 = vor.u32 %v7897_v51, %v6068_v54  ;;  %v6419_v25 = vor.u32 %v7989_v17, %v6418_v11  ;;  %v6386_v30 = vld [vmem:[#allocation6 + $0x608] sm:$0xf]  ;;  %v6580_v45 = vld [vmem:[#allocation6 + $0x7a8] sm:$0xf0]  ;;  %v6106_v11 = vld [vmem:[#allocation6 + $0x3d0] sm:$0xf] }
 0x181   :  { %2784 = vmatpush.bf16.msra.mxu0 %v5683_v59  ;;  %2806 = vmatpush.bf16.msra.mxu2 %v6323_v60  ;;  %v1107_v10 = vpop.f32.mrf.mxu3  ;;  %v6483_v59 = vor.u32 %v8005_v49, %v6482_v48  ;;  %v7817_v60 = vld [vmem:[#allocation6 + $0x10c] sm:$0xf]  ;;  %v7981_v31 = vld [vmem:[#allocation6 + $0x624] sm:$0xf0]  ;;  %v7910_v17 = vld [vmem:[#allocation6 + $0x3ec] sm:$0xf0] }
 0x182   :  { %2722 = vmatmul.bf16.vlgmr.msra.gmra.mxu3 %v8539_v7  ;;  %2748 = vmatmul.bf16.vlgmr.msrb.gmra.mxu1 %v8530_v19  ;;  %v5751_v6 = vor.u32 %v7817_v60, %v5748_v61  ;;  %v6451_v10 = vor.u32 %v7997_v1, %v6450_v0  ;;  %v6387_v36 = vor.u32 %v7981_v31, %v6386_v30  ;;  %v7785_v48 = vld [vmem:[#allocation6 + $0xc] sm:$0xf]  ;;  %v6074_v30 = vld [vmem:[#allocation6 + $0x390] sm:$0xf] }
 0x183   :  { %2796 = vmatpush.bf16.msra.mxu1 %v5971_v3  ;;  %2818 = vmatpush.bf16.msra.mxu3 %v6611_v4  ;;  %v7889_v3 = vld [vmem:[#allocation6 + $0x34c] sm:$0xf]  ;;  %v6107_v26 = vor.u32 %v7910_v17, %v6106_v11  ;;  %v7902_v31 = vld [vmem:[#allocation6 + $0x3ac] sm:$0xf0] }
 0x184   :  { %v6036_v4 = vld [vmem:[#allocation6 + $0x368] sm:$0xf0] }
 0x185   :  { %2785 = vmatpush.bf16.msra.mxu0 %v5651_v12  ;;  %2807 = vmatpush.bf16.msra.mxu2 %v6291_v13  ;;  %v5716_v12 = vld [vmem:[#allocation6 + $0xe8] sm:$0xf0]  ;;  %v6039_v16 = vor.u32 %v7889_v3, %v6036_v4 }
 0x186   :  { %v7969_v13 = vld [vmem:[#allocation6 + $0x5cc] sm:$0xf]  ;;  %v5719_v22 = vor.u32 %v7809_v9, %v5716_v12  ;;  %v7838_v9 = vld [vmem:[#allocation6 + $0x1ac] sm:$0xf0] }
 0x187   :  { %2797 = vmatpush.bf16.msra.mxu1 %v5939_v18  ;;  %2819 = vmatpush.bf16.msra.mxu3 %v6579_v20  ;;  %v6131_v18 = vor.u32 %v7917_v52, %v6130_v8  ;;  %v7881_v20 = vld [vmem:[#allocation6 + $0x30c] sm:$0xf]  ;;  %v6359_v23 = vor.u32 %v7969_v13, %v6356_v14  ;;  %v5818_v52 = vld [vmem:[#allocation6 + $0x190] sm:$0xf] }
 0x188   :  { %v5620_v49 = vld [vmem:[#allocation6 + $0x28] sm:$0xf0] }
 0x189   :  { %2786 = vmatpush.bf16.msra.mxu0 %v5619_v27  ;;  %2808 = vmatpush.bf16.msra.mxu2 %v6259_v28  ;;  %v7961_v27 = vld [vmem:[#allocation6 + $0x58c] sm:$0xf]  ;;  %v5623_v0 = vor.u32 %v7785_v48, %v5620_v49  ;;  %v7974_v48 = vld [vmem:[#allocation6 + $0x5ec] sm:$0xf0] }
 0x18a   :  { %v6324_v28 = vld [vmem:[#allocation6 + $0x5a8] sm:$0xf0] }
 0x18b   :  { %2798 = vmatpush.bf16.msra.mxu1 %v5907_v32  ;;  %2820 = vmatpush.bf16.msra.mxu3 %v6547_v33  ;;  %v7873_v32 = vld [vmem:[#allocation6 + $0x2cc] sm:$0xf]  ;;  %v6327_v37 = vor.u32 %v7961_v27, %v6324_v28 }
 0x18c   :  { %2761 = vmatmul.bf16.vlgmr.msrb.gmra.mxu2 %v8535_v44  ;;  %2787 = vmatmul.bf16.vlgmr.msra.gmra.mxu0 %v8526_v5  ;;  %v5972_v33 = vld [vmem:[#allocation6 + $0x2e8] sm:$0xf0] }
 0x18d   :  { %2831 = vmatpush.bf16.msrb.mxu0 %v5847_v29  ;;  %2809 = vmatpush.bf16.msra.mxu2 %v6227_v38  ;;  %v6007_v29 = vor.u32 %v7881_v20, %v6004_v21  ;;  %v5652_v38 = vld [vmem:[#allocation6 + $0x68] sm:$0xf0] }
 0x18e   :  { %v5655_v46 = vor.u32 %v7793_v62, %v5652_v38  ;;  %v6260_v51 = vld [vmem:[#allocation6 + $0x528] sm:$0xf0]  ;;  %v6075_v62 = vor.u32 %v7902_v31, %v6074_v30  ;;  %v7950_v30 = vld [vmem:[#allocation6 + $0x52c] sm:$0xf0] }
 0x18f   :  { %2799 = vmatpush.bf16.msra.mxu1 %v5875_v41  ;;  %2821 = vmatpush.bf16.msra.mxu3 %v6515_v42  ;;  %v5940_v41 = vld [vmem:[#allocation6 + $0x2a8] sm:$0xf0] }
 0x190   :  { %v8025_v42 = vld [vmem:[#allocation6 + $0x78c] sm:$0xf]  ;;  %v5943_v54 = vor.u32 %v7865_v40, %v5940_v41 }
 0x191   :  { %2832 = vmatpush.bf16.msrb.mxu0 %v5815_v15  ;;  %2810 = vmatpush.bf16.msra.mxu2 %v6195_v50  ;;  %v5975_v15 = vor.u32 %v7873_v32, %v5972_v33  ;;  %v7945_v50 = vld [vmem:[#allocation6 + $0x50c] sm:$0xf] }
 0x192   :  { %2774 = vmatmul.bf16.vlgmr.msrb.gmra.mxu3 %v8539_v7  ;;  %2800 = vmatmul.bf16.vlgmr.msra.gmra.mxu1 %v8530_v19  ;;  %v5908_v60 = vld [vmem:[#allocation6 + $0x268] sm:$0xf0]  ;;  %v6263_v1 = vor.u32 %v7945_v50, %v6260_v51 }
 0x193   :  { %2844 = vmatpush.bf16.msrb.mxu1 %v6103_v47  ;;  %2822 = vmatpush.bf16.msra.mxu3 %v6483_v59  ;;  %v6295_v47 = vor.u32 %v7953_v53, %v6292_v39  ;;  %v7857_v59 = vld [vmem:[#allocation6 + $0x24c] sm:$0xf]  ;;  %v6042_v39 = vld [vmem:[#allocation6 + $0x350] sm:$0xf] }
 0x194   :  { %v8017_v61 = vld [vmem:[#allocation6 + $0x74c] sm:$0xf] }
 0x195   :  { %2833 = vmatpush.bf16.msrb.mxu0 %v5783_v43  ;;  %2811 = vmatpush.bf16.msra.mxu2 %v6163_v2  ;;  %v6583_v43 = vor.u32 %v8025_v42, %v6580_v45  ;;  %v5851_v2 = vor.u32 %v7846_v56, %v5850_v55  ;;  %v7937_v3 = vld [vmem:[#allocation6 + $0x4cc] sm:$0xf]  ;;  %v5722_v42 = vld [vmem:[#allocation6 + $0xd0] sm:$0xf] }
 0x196   :  { %v6228_v4 = vld [vmem:[#allocation6 + $0x4e8] sm:$0xf0]  ;;  %v7886_v55 = vld [vmem:[#allocation6 + $0x32c] sm:$0xf0] }
 0x197   :  { %2845 = vmatpush.bf16.msrb.mxu1 %v6071_v63  ;;  %2823 = vmatpush.bf16.msra.mxu3 %v6451_v10  ;;  %v6548_v63 = vld [vmem:[#allocation6 + $0x768] sm:$0xf0] }
 0x198   :  { %v6551_v8 = vor.u32 %v8017_v61, %v6548_v63  ;;  %v7849_v10 = vld [vmem:[#allocation6 + $0x20c] sm:$0xf]  ;;  %v7806_v63 = vld [vmem:[#allocation6 + $0xac] sm:$0xf0] }
 0x199   :  { %2834 = vmatpush.bf16.msrb.mxu0 %v5751_v6  ;;  %2812 = vmatpush.bf16.msra.mxu2 %v6131_v18  ;;  %v5911_v6 = vor.u32 %v7857_v59, %v5908_v60  ;;  %v5876_v12 = vld [vmem:[#allocation6 + $0x228] sm:$0xf0]  ;;  %v5819_v18 = vor.u32 %v7838_v9, %v5818_v52  ;;  %v5690_v60 = vld [vmem:[#allocation6 + $0x90] sm:$0xf] }
 0x19a   :  { %v8009_v13 = vld [vmem:[#allocation6 + $0x70c] sm:$0xf]  ;;  %v6618_v52 = vld [vmem:[#allocation6 + $0x7d0] sm:$0xf] }
 0x19b   :  { %2846 = vmatpush.bf16.msrb.mxu1 %v6039_v16  ;;  %2824 = vmatpush.bf16.msra.mxu3 %v6419_v25  ;;  %v6516_v14 = vld [vmem:[#allocation6 + $0x728] sm:$0xf0]  ;;  %v6231_v16 = vor.u32 %v7937_v3, %v6228_v4  ;;  %v7830_v25 = vld [vmem:[#allocation6 + $0x16c] sm:$0xf0] }
 0x19c   :  { %2813 = vmatmul.bf16.vlgmr.msra.gmra.mxu2 %v8535_v44  ;;  %v7929_v20 = vld [vmem:[#allocation6 + $0x48c] sm:$0xf]  ;;  %v5787_v32 = vor.u32 %v7830_v25, %v5786_v24  ;;  %v8038_v9 = vld [vmem:[#allocation6 + $0x7ec] sm:$0xf0] }
 0x19d   :  { %2835 = vmatpush.bf16.msrb.mxu0 %v5719_v22  ;;  %2857 = vmatpush.bf16.msrb.mxu2 %v6359_v23  ;;  %v6196_v21 = vld [vmem:[#allocation6 + $0x4a8] sm:$0xf0]  ;;  %v5879_v22 = vor.u32 %v7849_v10, %v5876_v12  ;;  %v6519_v23 = vor.u32 %v8009_v13, %v6516_v14  ;;  %v5691_v10 = vor.u32 %v7806_v63, %v5690_v60  ;;  %v5658_v14 = vld [vmem:[#allocation6 + $0x50] sm:$0xf]  ;;  %v7826_v60 = vld [vmem:[#allocation6 + $0x154] sm:$0xf] }
 0x19e   :  { %v8001_v27 = vld [vmem:[#allocation6 + $0x6cc] sm:$0xf]  ;;  %v6619_v17 = vor.u32 %v8038_v9, %v6618_v52  ;;  %v8030_v24 = vld [vmem:[#allocation6 + $0x7ac] sm:$0xf0]  ;;  %v5788_v63 = vld [vmem:[#allocation6 + $0x170] sm:$0xf0] }
 0x19f   :  { %2847 = vmatpush.bf16.msrb.mxu1 %v6007_v29  ;;  %2825 = vmatpush.bf16.msra.mxu3 %v6387_v36  ;;  %v6484_v28 = vld [vmem:[#allocation6 + $0x6e8] sm:$0xf0]  ;;  %v6199_v29 = vor.u32 %v7929_v20, %v6196_v21  ;;  %v7958_v20 = vld [vmem:[#allocation6 + $0x56c] sm:$0xf0] }
 0x1a0   :  { %v7921_v33 = vld [vmem:[#allocation6 + $0x44c] sm:$0xf]  ;;  %v6487_v57 = vor.u32 %v8001_v27, %v6484_v28  ;;  %v5946_v21 = vld [vmem:[#allocation6 + $0x290] sm:$0xf] }
 0x1a1   :  { %2836 = vmatpush.bf16.msrb.mxu0 %v5687_v35  ;;  %2858 = vmatpush.bf16.msrb.mxu2 %v6327_v37  ;;  %v6164_v34 = vld [vmem:[#allocation6 + $0x468] sm:$0xf0]  ;;  %v5754_v35 = vld [vmem:[#allocation6 + $0x110] sm:$0xf] }
 0x1a2   :  { %2826 = vmatmul.bf16.vlgmr.msra.gmra.mxu3 %v8539_v7  ;;  %v7822_v37 = vld [vmem:[#allocation6 + $0x12c] sm:$0xf0]  ;;  %v7993_v36 = vld [vmem:[#allocation6 + $0x68c] sm:$0xf]  ;;  %v6167_v53 = vor.u32 %v7921_v33, %v6164_v34  ;;  %v7842_v33 = vld [vmem:[#allocation6 + $0x1d4] sm:$0xf] }
 0x1a3   :  { %2848 = vmatpush.bf16.msrb.mxu1 %v5975_v15  ;;  %2870 = vmatpush.bf16.msrb.mxu3 %v6615_v58  ;;  %v6452_v38 = vld [vmem:[#allocation6 + $0x6a8] sm:$0xf0]  ;;  %v7894_v15 = vld [vmem:[#allocation6 + $0x36c] sm:$0xf0]  ;;  %v5755_v58 = vor.u32 %v7822_v37, %v5754_v35  ;;  %v5852_v34 = vld [vmem:[#allocation6 + $0x1f0] sm:$0xf0] }
 0x1a4   :  { %v7913_v40 = vld [vmem:[#allocation6 + $0x40c] sm:$0xf]  ;;  %v6455_v45 = vor.u32 %v7993_v36, %v6452_v38  ;;  %v6043_v49 = vor.u32 %v7894_v15, %v6042_v39  ;;  %v7790_v28 = vld [vmem:[#allocation6 + $0x2c] sm:$0xf0] }
 0x1a5   :  { %2837 = vmatpush.bf16.msrb.mxu0 %v5655_v46  ;;  %2859 = vmatpush.bf16.msrb.mxu2 %v6295_v47  ;;  %v6132_v41 = vld [vmem:[#allocation6 + $0x428] sm:$0xf0]  ;;  %v7814_v46 = vld [vmem:[#allocation6 + $0xec] sm:$0xf0] }
 0x1a6   :  { %v6362_v47 = vld [vmem:[#allocation6 + $0x5d0] sm:$0xf]  ;;  %v7985_v50 = vld [vmem:[#allocation6 + $0x64c] sm:$0xf]  ;;  %v5723_v56 = vor.u32 %v7814_v46, %v5722_v42  ;;  %v5820_v42 = vld [vmem:[#allocation6 + $0x1b0] sm:$0xf0] }
 0x1a7   :  { %2849 = vmatpush.bf16.msrb.mxu1 %v5943_v54  ;;  %2871 = vmatpush.bf16.msrb.mxu3 %v6583_v43  ;;  %v6420_v51 = vld [vmem:[#allocation6 + $0x668] sm:$0xf0]  ;;  %v6135_v54 = vor.u32 %v7913_v40, %v6132_v41  ;;  %v6010_v43 = vld [vmem:[#allocation6 + $0x310] sm:$0xf]  ;;  %v6363_v59 = vor.u32 %v7974_v48, %v6362_v47  ;;  %v7834_v41 = vld [vmem:[#allocation6 + $0x194] sm:$0xf] }
 0x1a8   :  { %v6423_v61 = vor.u32 %v7985_v50, %v6420_v51  ;;  %v7977_v3 = vld [vmem:[#allocation6 + $0x60c] sm:$0xf]  ;;  %v7862_v35 = vld [vmem:[#allocation6 + $0x26c] sm:$0xf0]  ;;  %v6108_v50 = vld [vmem:[#allocation6 + $0x3f0] sm:$0xf0] }
 0x1a9   :  { %2838 = vmatpush.bf16.msrb.mxu0 %v5623_v0  ;;  %2860 = vmatpush.bf16.msrb.mxu2 %v6263_v1  ;;  %v6330_v0 = vld [vmem:[#allocation6 + $0x590] sm:$0xf]  ;;  %v6388_v4 = vld [vmem:[#allocation6 + $0x628] sm:$0xf0] }
 0x1aa   :  { %v7966_v1 = vld [vmem:[#allocation6 + $0x5ac] sm:$0xf0]  ;;  %v6391_v13 = vor.u32 %v7977_v3, %v6388_v4  ;;  %v6076_v3 = vld [vmem:[#allocation6 + $0x3b0] sm:$0xf0] }
 0x1ab   :  { %2850 = vmatpush.bf16.msrb.mxu1 %v5911_v6  ;;  %2872 = vmatpush.bf16.msrb.mxu3 %v6551_v8  ;;  %v5978_v6 = vld [vmem:[#allocation6 + $0x2d0] sm:$0xf]  ;;  %v6331_v12 = vor.u32 %v7966_v1, %v6330_v0 }
 0x1ac   :  { %2839 = vmatmul.bf16.vlgmr.msrb.gmra.mxu0 %v8526_v5  ;;  %v7878_v8 = vld [vmem:[#allocation6 + $0x2ec] sm:$0xf0] }
 0x1ad   :  { %2883 = vmatpush.bf16.msra.mxu0 %v5851_v2  ;;  %2861 = vmatpush.bf16.msrb.mxu2 %v6231_v16  ;;  %v6011_v2 = vor.u32 %v7886_v55, %v6010_v43  ;;  %v7798_v16 = vld [vmem:[#allocation6 + $0x6c] sm:$0xf0]  ;;  %v5979_v11 = vor.u32 %v7878_v8, %v5978_v6  ;;  %v5791_v6 = vor.u32 %v7826_v60, %v5788_v63  ;;  %v6588_v60 = vld [vmem:[#allocation6 + $0x7b0] sm:$0xf0] }
 0x1ae   :  { %v5659_v25 = vor.u32 %v7798_v16, %v5658_v14  ;;  %v6554_v37 = vld [vmem:[#allocation6 + $0x750] sm:$0xf]  ;;  %v7786_v63 = vld [vmem:[#allocation6 + $0x14] sm:$0xf] }
 0x1af   :  { %2851 = vmatpush.bf16.msrb.mxu1 %v5879_v22  ;;  %2873 = vmatpush.bf16.msrb.mxu3 %v6519_v23  ;;  %v7870_v22 = vld [vmem:[#allocation6 + $0x2ac] sm:$0xf0] }
 0x1b0   :  { %v6586_v23 = vld [vmem:[#allocation6 + $0x790] sm:$0xf]  ;;  %v5947_v31 = vor.u32 %v7870_v22, %v5946_v21 }
 0x1b1   :  { %2884 = vmatpush.bf16.msra.mxu0 %v5819_v18  ;;  %2862 = vmatpush.bf16.msrb.mxu2 %v6199_v29  ;;  %v6298_v18 = vld [vmem:[#allocation6 + $0x550] sm:$0xf] }
 0x1b2   :  { %2852 = vmatmul.bf16.vlgmr.msrb.gmra.mxu1 %v8530_v19  ;;  %v6299_v27 = vor.u32 %v7958_v20, %v6298_v18  ;;  %v6266_v29 = vld [vmem:[#allocation6 + $0x510] sm:$0xf] }
 0x1b3   :  { %2896 = vmatpush.bf16.msra.mxu1 %v6107_v26  ;;  %2874 = vmatpush.bf16.msrb.mxu3 %v6487_v57  ;;  %v5626_v26 = vld [vmem:[#allocation6 + $0x10] sm:$0xf]  ;;  %v6267_v38 = vor.u32 %v7950_v30, %v6266_v29 }
 0x1b4   :  { %v5914_v57 = vld [vmem:[#allocation6 + $0x250] sm:$0xf]  ;;  %v5627_v36 = vor.u32 %v7790_v28, %v5626_v26  ;;  %v6364_v28 = vld [vmem:[#allocation6 + $0x5f0] sm:$0xf0] }
 0x1b5   :  { %2885 = vmatpush.bf16.msra.mxu0 %v5787_v32  ;;  %2863 = vmatpush.bf16.msrb.mxu2 %v6167_v53  ;;  %v6587_v32 = vor.u32 %v8030_v24, %v6586_v23  ;;  %v5855_v53 = vor.u32 %v7842_v33, %v5852_v34  ;;  %v6234_v39 = vld [vmem:[#allocation6 + $0x4d0] sm:$0xf]  ;;  %v7810_v24 = vld [vmem:[#allocation6 + $0xd4] sm:$0xf] }
 0x1b6   :  { %v7942_v15 = vld [vmem:[#allocation6 + $0x4ec] sm:$0xf0] }
 0x1b7   :  { %2897 = vmatpush.bf16.msra.mxu1 %v6075_v62  ;;  %2875 = vmatpush.bf16.msrb.mxu3 %v6455_v45  ;;  %v8022_v62 = vld [vmem:[#allocation6 + $0x76c] sm:$0xf0]  ;;  %v6235_v51 = vor.u32 %v7942_v15, %v6234_v39 }
 0x1b8   :  { %v6555_v40 = vor.u32 %v8022_v62, %v6554_v37  ;;  %v5882_v45 = vld [vmem:[#allocation6 + $0x210] sm:$0xf]  ;;  %v5692_v37 = vld [vmem:[#allocation6 + $0xb0] sm:$0xf0] }
 0x1b9   :  { %2886 = vmatpush.bf16.msra.mxu0 %v5755_v58  ;;  %2864 = vmatpush.bf16.msrb.mxu2 %v6135_v54  ;;  %v5915_v58 = vor.u32 %v7862_v35, %v5914_v57  ;;  %v7854_v46 = vld [vmem:[#allocation6 + $0x22c] sm:$0xf0]  ;;  %v5823_v54 = vor.u32 %v7834_v41, %v5820_v42  ;;  %v7802_v35 = vld [vmem:[#allocation6 + $0x94] sm:$0xf] }
 0x1ba   :  { %v6522_v47 = vld [vmem:[#allocation6 + $0x710] sm:$0xf]  ;;  %v5883_v43 = vor.u32 %v7854_v46, %v5882_v45  ;;  %v8034_v41 = vld [vmem:[#allocation6 + $0x7d4] sm:$0xf]  ;;  %v5695_v45 = vor.u32 %v7802_v35, %v5692_v37  ;;  %v5794_v35 = vld [vmem:[#allocation6 + $0x158] sm:$0xf] }
 0x1bb   :  { %2898 = vmatpush.bf16.msra.mxu1 %v6043_v49  ;;  %2876 = vmatpush.bf16.msrb.mxu3 %v6423_v61  ;;  %v8014_v48 = vld [vmem:[#allocation6 + $0x72c] sm:$0xf0]  ;;  %v7906_v49 = vld [vmem:[#allocation6 + $0x3d4] sm:$0xf] }
 0x1bc   :  { %2865 = vmatmul.bf16.vlgmr.msrb.gmra.mxu2 %v8535_v44  ;;  %v6523_v55 = vor.u32 %v8014_v48, %v6522_v47  ;;  %v6111_v61 = vor.u32 %v7906_v49, %v6108_v50  ;;  %v6490_v0 = vld [vmem:[#allocation6 + $0x6d0] sm:$0xf]  ;;  %v6620_v42 = vld [vmem:[#allocation6 + $0x7f0] sm:$0xf0] }
 0x1bd   :  { %2887 = vmatpush.bf16.msra.mxu0 %v5723_v56  ;;  %2909 = vmatpush.bf16.msra.mxu2 %v6363_v59  ;;  %v6202_v56 = vld [vmem:[#allocation6 + $0x490] sm:$0xf]  ;;  %v7794_v49 = vld [vmem:[#allocation6 + $0x54] sm:$0xf] }
 0x1be   :  { %v7934_v59 = vld [vmem:[#allocation6 + $0x4ac] sm:$0xf0]  ;;  %v5660_v50 = vld [vmem:[#allocation6 + $0x70] sm:$0xf0] }
 0x1bf   :  { %2899 = vmatpush.bf16.msra.mxu1 %v6011_v2  ;;  %2877 = vmatpush.bf16.msrb.mxu3 %v6391_v13  ;;  %v8006_v1 = vld [vmem:[#allocation6 + $0x6ec] sm:$0xf0]  ;;  %v7898_v2 = vld [vmem:[#allocation6 + $0x394] sm:$0xf]  ;;  %v6203_v4 = vor.u32 %v7934_v59, %v6202_v56 }
 0x1c0   :  { %v6491_v8 = vor.u32 %v8006_v1, %v6490_v0  ;;  %v6170_v52 = vld [vmem:[#allocation6 + $0x450] sm:$0xf]  ;;  %v5756_v13 = vld [vmem:[#allocation6 + $0x130] sm:$0xf0] }
 0x1c1   :  { %2888 = vmatpush.bf16.msra.mxu0 %v5691_v10  ;;  %2910 = vmatpush.bf16.msra.mxu2 %v6331_v12  ;;  %v7926_v9 = vld [vmem:[#allocation6 + $0x46c] sm:$0xf0]  ;;  %v7818_v10 = vld [vmem:[#allocation6 + $0x114] sm:$0xf]  ;;  %v6079_v12 = vor.u32 %v7898_v2, %v6076_v3 }
 0x1c2   :  { %2878 = vmatmul.bf16.vlgmr.msrb.gmra.mxu3 %v8539_v7  ;;  %v6458_v14 = vld [vmem:[#allocation6 + $0x690] sm:$0xf]  ;;  %v6171_v18 = vor.u32 %v7926_v9, %v6170_v52  ;;  %v5759_v21 = vor.u32 %v7818_v10, %v5756_v13  ;;  %v5948_v56 = vld [vmem:[#allocation6 + $0x2b0] sm:$0xf0]  ;;  %v7847_v52 = vld [vmem:[#allocation6 + $0x1f4] sm:$0xf0] }
 0x1c3   :  { %2900 = vmatpush.bf16.msra.mxu1 %v5979_v11  ;;  %2922 = vmatpush.bf16.msra.mxu3 %v6619_v17  ;;  %v7998_v16 = vld [vmem:[#allocation6 + $0x6ac] sm:$0xf0]  ;;  %v7890_v11 = vld [vmem:[#allocation6 + $0x354] sm:$0xf] }
 0x1c4   :  { %v6044_v17 = vld [vmem:[#allocation6 + $0x370] sm:$0xf0]  ;;  %v6138_v20 = vld [vmem:[#allocation6 + $0x410] sm:$0xf]  ;;  %v6459_v22 = vor.u32 %v7998_v16, %v6458_v14 }
 0x1c5   :  { %2889 = vmatpush.bf16.msra.mxu0 %v5659_v25  ;;  %2911 = vmatpush.bf16.msra.mxu2 %v6299_v27  ;;  %v7918_v23 = vld [vmem:[#allocation6 + $0x42c] sm:$0xf0]  ;;  %v5724_v25 = vld [vmem:[#allocation6 + $0xf0] sm:$0xf0]  ;;  %v6047_v26 = vor.u32 %v7890_v11, %v6044_v17 }
 0x1c6   :  { %v7970_v27 = vld [vmem:[#allocation6 + $0x5d4] sm:$0xf]  ;;  %v6426_v29 = vld [vmem:[#allocation6 + $0x650] sm:$0xf]  ;;  %v6139_v33 = vor.u32 %v7918_v23, %v6138_v20  ;;  %v5727_v34 = vor.u32 %v7810_v24, %v5724_v25  ;;  %v7839_v23 = vld [vmem:[#allocation6 + $0x1b4] sm:$0xf0] }
 0x1c7   :  { %2901 = vmatpush.bf16.msra.mxu1 %v5947_v31  ;;  %2923 = vmatpush.bf16.msra.mxu3 %v6587_v32  ;;  %v7990_v30 = vld [vmem:[#allocation6 + $0x66c] sm:$0xf0]  ;;  %v7882_v31 = vld [vmem:[#allocation6 + $0x314] sm:$0xf]  ;;  %v6367_v57 = vor.u32 %v7970_v27, %v6364_v28  ;;  %v6114_v28 = vld [vmem:[#allocation6 + $0x3d8] sm:$0xf] }
 0x1c8   :  { %v6012_v32 = vld [vmem:[#allocation6 + $0x330] sm:$0xf0]  ;;  %v6427_v62 = vor.u32 %v7990_v30, %v6426_v29  ;;  %v6394_v39 = vld [vmem:[#allocation6 + $0x610] sm:$0xf]  ;;  %v7911_v29 = vld [vmem:[#allocation6 + $0x3f4] sm:$0xf0] }
 0x1c9   :  { %2890 = vmatpush.bf16.msra.mxu0 %v5627_v36  ;;  %2912 = vmatpush.bf16.msra.mxu2 %v6267_v38  ;;  %v6015_v36 = vor.u32 %v7882_v31, %v6012_v32  ;;  %v7962_v38 = vld [vmem:[#allocation6 + $0x594] sm:$0xf]  ;;  %v7982_v15 = vld [vmem:[#allocation6 + $0x62c] sm:$0xf0]  ;;  %v6115_v37 = vor.u32 %v7911_v29, %v6114_v28  ;;  %v7879_v28 = vld [vmem:[#allocation6 + $0x2f4] sm:$0xf0] }
 0x1ca   :  { %v6395_v47 = vor.u32 %v7982_v15, %v6394_v39  ;;  %v8026_v59 = vld [vmem:[#allocation6 + $0x794] sm:$0xf]  ;;  %v7903_v39 = vld [vmem:[#allocation6 + $0x3b4] sm:$0xf0] }
 0x1cb   :  { %2902 = vmatpush.bf16.msra.mxu1 %v5915_v58  ;;  %2924 = vmatpush.bf16.msra.mxu3 %v6555_v40  ;;  %v7874_v58 = vld [vmem:[#allocation6 + $0x2d4] sm:$0xf]  ;;  %v6626_v29 = vld [vmem:[#allocation6 + $0x7d8] sm:$0xf] }
 0x1cc   :  { %2891 = vmatmul.bf16.vlgmr.msra.gmra.mxu0 %v8526_v5  ;;  %v5980_v40 = vld [vmem:[#allocation6 + $0x2f0] sm:$0xf0] }
 0x1cd   :  { %2935 = vmatpush.bf16.msrb.mxu0 %v5855_v53  ;;  %2913 = vmatpush.bf16.msra.mxu2 %v6235_v51  ;;  %v6332_v53 = vld [vmem:[#allocation6 + $0x5b0] sm:$0xf0]  ;;  %v5983_v48 = vor.u32 %v7874_v58, %v5980_v40  ;;  %v8561_v58 = vld [vmem:[%s8750_s6] sm:$0xff] }
 0x1ce   :  { %v6335_v46 = vor.u32 %v7962_v38, %v6332_v53  ;;  %v7954_v51 = vld [vmem:[#allocation6 + $0x554] sm:$0xf]  ;;  %v6082_v53 = vld [vmem:[#allocation6 + $0x398] sm:$0xf] }
 0x1cf   :  { %2903 = vmatpush.bf16.msra.mxu1 %v5883_v43  ;;  %2925 = vmatpush.bf16.msra.mxu3 %v6523_v55  ;;  %v6300_v43 = vld [vmem:[#allocation6 + $0x570] sm:$0xf0] }
 0x1d0   :  { %v7866_v55 = vld [vmem:[#allocation6 + $0x294] sm:$0xf]  ;;  %v6303_v0 = vor.u32 %v7954_v51, %v6300_v43  ;;  %v7895_v43 = vld [vmem:[#allocation6 + $0x374] sm:$0xf0] }
 0x1d1   :  { %2936 = vmatpush.bf16.msrb.mxu0 %v5823_v54  ;;  %2914 = vmatpush.bf16.msra.mxu2 %v6203_v4  ;;  %v6623_v54 = vor.u32 %v8034_v41, %v6620_v42  ;;  %v5951_v1 = vor.u32 %v7866_v55, %v5948_v56  ;;  %v5628_v2 = vld [vmem:[#allocation6 + $0x30] sm:$0xf0]  ;;  %v1379_v55 = vperm.slane %v8561_v58, 0 }
 0x1d2   :  { %2904 = vmatmul.bf16.vlgmr.msra.gmra.mxu1 %v8530_v19  ;;  %v7946_v3 = vld [vmem:[#allocation6 + $0x514] sm:$0xf]  ;;  %v5631_v14 = vor.u32 %v7786_v63, %v5628_v2 }
 0x1d3   :  { %2948 = vmatpush.bf16.msrb.mxu1 %v6111_v61  ;;  %2926 = vmatpush.bf16.msra.mxu3 %v6491_v8  ;;  %v5663_v61 = vor.u32 %v7794_v49, %v5660_v50  ;;  %v6268_v4 = vld [vmem:[#allocation6 + $0x530] sm:$0xf0]  ;;  %v5858_v8 = vld [vmem:[#allocation6 + $0x1d8] sm:$0xf] }
 0x1d4   :  { %v7858_v9 = vld [vmem:[#allocation6 + $0x254] sm:$0xf]  ;;  %v6271_v16 = vor.u32 %v7946_v3, %v6268_v4  ;;  %v5859_v11 = vor.u32 %v7847_v52, %v5858_v8  ;;  %v6370_v3 = vld [vmem:[#allocation6 + $0x5d8] sm:$0xf] }
 0x1d5   :  { %2937 = vmatpush.bf16.msrb.mxu0 %v5791_v6  ;;  %2915 = vmatpush.bf16.msra.mxu2 %v6171_v18  ;;  %v6591_v6 = vor.u32 %v8026_v59, %v6588_v60  ;;  %v5916_v10 = vld [vmem:[#allocation6 + $0x270] sm:$0xf0]  ;;  %v7975_v4 = vld [vmem:[#allocation6 + $0x5f4] sm:$0xf0] }
 0x1d6   :  { %v6556_v13 = vld [vmem:[#allocation6 + $0x770] sm:$0xf0]  ;;  %v5919_v20 = vor.u32 %v7858_v9, %v5916_v10  ;;  %v6018_v52 = vld [vmem:[#allocation6 + $0x318] sm:$0xf] }
 0x1d7   :  { %2949 = vmatpush.bf16.msrb.mxu1 %v6079_v12  ;;  %2927 = vmatpush.bf16.msra.mxu3 %v6459_v22  ;;  %v8018_v12 = vld [vmem:[#allocation6 + $0x754] sm:$0xf]  ;;  %v5826_v22 = vld [vmem:[#allocation6 + $0x198] sm:$0xf] }
 0x1d8   :  { %v7938_v17 = vld [vmem:[#allocation6 + $0x4d4] sm:$0xf]  ;;  %v5827_v31 = vor.u32 %v7839_v23, %v5826_v22  ;;  %v7887_v9 = vld [vmem:[#allocation6 + $0x334] sm:$0xf0] }
 0x1d9   :  { %2938 = vmatpush.bf16.msrb.mxu0 %v5759_v21  ;;  %2916 = vmatpush.bf16.msra.mxu2 %v6139_v33  ;;  %v6236_v18 = vld [vmem:[#allocation6 + $0x4f0] sm:$0xf0]  ;;  %v6559_v21 = vor.u32 %v8018_v12, %v6556_v13  ;;  %v6338_v22 = vld [vmem:[#allocation6 + $0x598] sm:$0xf] }
 0x1da   :  { %v7850_v24 = vld [vmem:[#allocation6 + $0x214] sm:$0xf]  ;;  %v6239_v30 = vor.u32 %v7938_v17, %v6236_v18  ;;  %v7807_v17 = vld [vmem:[#allocation6 + $0xb4] sm:$0xf0] }
 0x1db   :  { %2950 = vmatpush.bf16.msrb.mxu1 %v6047_v26  ;;  %2928 = vmatpush.bf16.msra.mxu3 %v6427_v62  ;;  %v5884_v25 = vld [vmem:[#allocation6 + $0x230] sm:$0xf0]  ;;  %v7831_v62 = vld [vmem:[#allocation6 + $0x174] sm:$0xf0] }
 0x1dc   :  { %2917 = vmatmul.bf16.vlgmr.msra.gmra.mxu2 %v8535_v44  ;;  %v8010_v26 = vld [vmem:[#allocation6 + $0x714] sm:$0xf]  ;;  %v5887_v32 = vor.u32 %v7850_v24, %v5884_v25  ;;  %v5795_v40 = vor.u32 %v7831_v62, %v5794_v35  ;;  %v7967_v23 = vld [vmem:[#allocation6 + $0x5b4] sm:$0xf0] }
 0x1dd   :  { %2939 = vmatpush.bf16.msrb.mxu0 %v5727_v34  ;;  %2961 = vmatpush.bf16.msrb.mxu2 %v6367_v57  ;;  %v6524_v27 = vld [vmem:[#allocation6 + $0x730] sm:$0xf0]  ;;  %v7799_v35 = vld [vmem:[#allocation6 + $0x74] sm:$0xf0] }
 0x1de   :  { %v6527_v33 = vor.u32 %v8010_v26, %v6524_v27  ;;  %v7930_v34 = vld [vmem:[#allocation6 + $0x494] sm:$0xf]  ;;  %v5986_v27 = vld [vmem:[#allocation6 + $0x2d8] sm:$0xf] }
 0x1df   :  { %2951 = vmatpush.bf16.msrb.mxu1 %v6015_v36  ;;  %2929 = vmatpush.bf16.msra.mxu3 %v6395_v47  ;;  %v6204_v57 = vld [vmem:[#allocation6 + $0x4b0] sm:$0xf0]  ;;  %v6083_v47 = vor.u32 %v7903_v39, %v6082_v53  ;;  %v7871_v53 = vld [vmem:[#allocation6 + $0x2b4] sm:$0xf0] }
 0x1e0   :  { %v8002_v36 = vld [vmem:[#allocation6 + $0x6d4] sm:$0xf]  ;;  %v6207_v15 = vor.u32 %v7930_v34, %v6204_v57  ;;  %v5987_v34 = vor.u32 %v7879_v28, %v5986_v27  ;;  %v5666_v57 = vld [vmem:[#allocation6 + $0x58] sm:$0xf]  ;;  %v5796_v28 = vld [vmem:[#allocation6 + $0x178] sm:$0xf0] }
 0x1e1   :  { %2940 = vmatpush.bf16.msrb.mxu0 %v5695_v45  ;;  %2962 = vmatpush.bf16.msrb.mxu2 %v6335_v46  ;;  %v6492_v38 = vld [vmem:[#allocation6 + $0x6f0] sm:$0xf0]  ;;  %v5762_v46 = vld [vmem:[#allocation6 + $0x118] sm:$0xf] }
 0x1e2   :  { %2930 = vmatmul.bf16.vlgmr.msra.gmra.mxu3 %v8539_v7  ;;  %v6495_v41 = vor.u32 %v8002_v36, %v6492_v38  ;;  %v7922_v42 = vld [vmem:[#allocation6 + $0x454] sm:$0xf]  ;;  %v7959_v36 = vld [vmem:[#allocation6 + $0x574] sm:$0xf0] }
 0x1e3   :  { %2952 = vmatpush.bf16.msrb.mxu1 %v5983_v48  ;;  %2974 = vmatpush.bf16.msrb.mxu3 %v6623_v54  ;;  %v6172_v45 = vld [vmem:[#allocation6 + $0x470] sm:$0xf0]  ;;  %v7823_v48 = vld [vmem:[#allocation6 + $0x134] sm:$0xf0] }
 0x1e4   :  { %v7994_v49 = vld [vmem:[#allocation6 + $0x694] sm:$0xf]  ;;  %v6050_v54 = vld [vmem:[#allocation6 + $0x358] sm:$0xf]  ;;  %v6175_v56 = vor.u32 %v7922_v42, %v6172_v45  ;;  %v5763_v60 = vor.u32 %v7823_v48, %v5762_v46 }
 0x1e5   :  { %2941 = vmatpush.bf16.msrb.mxu0 %v5663_v61  ;;  %2963 = vmatpush.bf16.msrb.mxu2 %v6303_v0  ;;  %v6460_v50 = vld [vmem:[#allocation6 + $0x6b0] sm:$0xf0]  ;;  %v5730_v0 = vld [vmem:[#allocation6 + $0xd8] sm:$0xf]  ;;  %v6051_v2 = vor.u32 %v7895_v43, %v6050_v54  ;;  %v7843_v54 = vld [vmem:[#allocation6 + $0x1dc] sm:$0xf] }
 0x1e6   :  { %v7914_v59 = vld [vmem:[#allocation6 + $0x414] sm:$0xf]  ;;  %v6463_v61 = vor.u32 %v7994_v49, %v6460_v50  ;;  %v5954_v38 = vld [vmem:[#allocation6 + $0x298] sm:$0xf]  ;;  %v5860_v43 = vld [vmem:[#allocation6 + $0x1f8] sm:$0xf0] }
 0x1e7   :  { %2953 = vmatpush.bf16.msrb.mxu1 %v5951_v1  ;;  %2975 = vmatpush.bf16.msrb.mxu3 %v6591_v6  ;;  %v6140_v63 = vld [vmem:[#allocation6 + $0x430] sm:$0xf0]  ;;  %v7815_v1 = vld [vmem:[#allocation6 + $0xf4] sm:$0xf0]  ;;  %v5955_v46 = vor.u32 %v7871_v53, %v5954_v38  ;;  %v5764_v53 = vld [vmem:[#allocation6 + $0x138] sm:$0xf0] }
 0x1e8   :  { %v7986_v6 = vld [vmem:[#allocation6 + $0x654] sm:$0xf]  ;;  %v6143_v12 = vor.u32 %v7914_v59, %v6140_v63  ;;  %v6594_v39 = vld [vmem:[#allocation6 + $0x798] sm:$0xf] }
 0x1e9   :  { %2942 = vmatpush.bf16.msrb.mxu0 %v5631_v14  ;;  %2964 = vmatpush.bf16.msrb.mxu2 %v6271_v16  ;;  %v2684_v51 = vpop.f32.mrf.mxu0  ;;  %v6428_v8 = vld [vmem:[#allocation6 + $0x670] sm:$0xf0]  ;;  %v5731_v14 = vor.u32 %v7815_v1, %v5730_v0  ;;  %v6371_v16 = vor.u32 %v7975_v4, %v6370_v3  ;;  %v5634_v42 = vld [vmem:[#allocation6 + $0x18] sm:$0xf]  ;;  %v5863_v0 = vor.u32 %v7843_v54, %v5860_v43  ;;  %v7811_v43 = vld [vmem:[#allocation6 + $0xdc] sm:$0xf] }
 0x1ea   :  { %v2685_v10 = vadd.f32 %v2684_v51, %v1379_v55  ;;  %v7978_v24 = vld [vmem:[#allocation6 + $0x614] sm:$0xf]  ;;  %v6274_v48 = vld [vmem:[#allocation6 + $0x518] sm:$0xf] }
 0x1eb   :  { %2954 = vmatpush.bf16.msrb.mxu1 %v5919_v20  ;;  %2976 = vmatpush.bf16.msrb.mxu3 %v6559_v21  ;;  %v6431_v20 = vor.u32 %v7986_v6, %v6428_v8  ;;  %v6019_v21 = vor.u32 %v7887_v9, %v6018_v52  ;;  %v6396_v26 = vld [vmem:[#allocation6 + $0x630] sm:$0xf0]  ;;  %v7951_v49 = vld [vmem:[#allocation6 + $0x534] sm:$0xf0]  ;;  %v7835_v6 = vld [vmem:[#allocation6 + $0x19c] sm:$0xf] }
 0x1ec   :  { %2943 = vmatmul.bf16.vlgmr.msrb.gmra.mxu0 %v8526_v5  ;;  %v5922_v55 = vld [vmem:[#allocation6 + $0x258] sm:$0xf]  ;;  %v6275_v63 = vor.u32 %v7951_v49, %v6274_v48  ;;  %v5828_v8 = vld [vmem:[#allocation6 + $0x1b8] sm:$0xf0] }
 0x1ed   :  { %2987 = vmatpush.bf16.msra.mxu0 %v5859_v11  ;;  %2965 = vmatpush.bf16.msrb.mxu2 %v6239_v30  ;;  %v5698_v11 = vld [vmem:[#allocation6 + $0x98] sm:$0xf] }
 0x1ee   :  { %v8039_v30 = vld [vmem:[#allocation6 + $0x7f4] sm:$0xf0] }
 0x1ef   :  { %2955 = vmatpush.bf16.msrb.mxu1 %v5887_v32  ;;  %2977 = vmatpush.bf16.msrb.mxu3 %v6527_v33  ;;  %v2697_v13 = vpop.f32.mrf.mxu1  ;;  %v6339_v32 = vor.u32 %v7967_v23, %v6338_v22  ;;  %v6399_v33 = vor.u32 %v7978_v24, %v6396_v26  ;;  %v6627_v62 = vor.u32 %v8039_v30, %v6626_v29  ;;  %v6562_v59 = vld [vmem:[#allocation6 + $0x758] sm:$0xf]  ;;  %v7827_v26 = vld [vmem:[#allocation6 + $0x15c] sm:$0xf] }
 0x1f0   :  { %v8565_v18 = vadd.f32 %v2697_v13, %v2685_v10  ;;  %v6242_v1 = vld [vmem:[#allocation6 + $0x4d8] sm:$0xf] }
 0x1f1   :  { %2988 = vmatpush.bf16.msra.mxu0 %v5827_v31  ;;  %2966 = vmatpush.bf16.msrb.mxu2 %v6207_v15  ;;  %v2686_v25 = vpop.f32.mrf.mxu0  ;;  %v5699_v31 = vor.u32 %v7807_v17, %v5698_v11  ;;  %v8031_v15 = vld [vmem:[#allocation6 + $0x7b4] sm:$0xf0]  ;;  %v6116_v11 = vld [vmem:[#allocation6 + $0x3f8] sm:$0xf0] }
 0x1f2   :  { %2956 = vmatmul.bf16.vlgmr.msrb.gmra.mxu1 %v8530_v19  ;;  %v6595_v51 = vor.u32 %v8031_v15, %v6594_v39  ;;  %v5890_v52 = vld [vmem:[#allocation6 + $0x218] sm:$0xf] }
 0x1f3   :  { %3000 = vmatpush.bf16.msra.mxu1 %v6115_v37  ;;  %2978 = vmatpush.bf16.msrb.mxu3 %v6495_v41  ;;  %v6306_v37 = vld [vmem:[#allocation6 + $0x558] sm:$0xf]  ;;  %v5667_v41 = vor.u32 %v7799_v35, %v5666_v57  ;;  %v5799_v57 = vor.u32 %v7827_v26, %v5796_v28 }
 0x1f4   :  { %v6307_v45 = vor.u32 %v7959_v36, %v6306_v37  ;;  %v7855_v9 = vld [vmem:[#allocation6 + $0x234] sm:$0xf0]  ;;  %v7819_v36 = vld [vmem:[#allocation6 + $0x11c] sm:$0xf] }
 0x1f5   :  { %2989 = vmatpush.bf16.msra.mxu0 %v5795_v40  ;;  %2967 = vmatpush.bf16.msrb.mxu2 %v6175_v56  ;;  %v7863_v56 = vld [vmem:[#allocation6 + $0x274] sm:$0xf0]  ;;  %v5891_v22 = vor.u32 %v7855_v9, %v5890_v52  ;;  %v5767_v49 = vor.u32 %v7819_v36, %v5764_v53  ;;  %v5700_v52 = vld [vmem:[#allocation6 + $0xb8] sm:$0xf0] }
 0x1f6   :  { %v5923_v3 = vor.u32 %v7863_v56, %v5922_v55  ;;  %v6530_v10 = vld [vmem:[#allocation6 + $0x718] sm:$0xf]  ;;  %v5732_v55 = vld [vmem:[#allocation6 + $0xf8] sm:$0xf0] }
 0x1f7   :  { %3001 = vmatpush.bf16.msra.mxu1 %v6083_v47  ;;  %2979 = vmatpush.bf16.msrb.mxu3 %v6463_v61  ;;  %v2699_v40 = vpop.f32.mrf.mxu1  ;;  %v7791_v47 = vld [vmem:[#allocation6 + $0x34] sm:$0xf0]  ;;  %v8027_v36 = vld [vmem:[#allocation6 + $0x79c] sm:$0xf] }
 0x1f8   :  { %v5635_v61 = vor.u32 %v7791_v47, %v5634_v42  ;;  %v6210_v24 = vld [vmem:[#allocation6 + $0x498] sm:$0xf]  ;;  %v7891_v42 = vld [vmem:[#allocation6 + $0x35c] sm:$0xf] }
 0x1f9   :  { %2990 = vmatpush.bf16.msra.mxu0 %v5763_v60  ;;  %2968 = vmatpush.bf16.msrb.mxu2 %v6143_v12  ;;  %v8568_v50 = vpop.f32.mrf.mxu0  ;;  %v8023_v60 = vld [vmem:[#allocation6 + $0x774] sm:$0xf0] }
 0x1fa   :  { %v6563_v4 = vor.u32 %v8023_v60, %v6562_v59  ;;  %v8015_v12 = vld [vmem:[#allocation6 + $0x734] sm:$0xf0]  ;;  %v7971_v59 = vld [vmem:[#allocation6 + $0x5dc] sm:$0xf] }
 0x1fb   :  { %3002 = vmatpush.bf16.msra.mxu1 %v6051_v2  ;;  %2980 = vmatpush.bf16.msrb.mxu3 %v6431_v20  ;;  %v7943_v2 = vld [vmem:[#allocation6 + $0x4f4] sm:$0xf0]  ;;  %v5831_v20 = vor.u32 %v7835_v6, %v5828_v8  ;;  %v6531_v23 = vor.u32 %v8015_v12, %v6530_v10  ;;  %v6372_v60 = vld [vmem:[#allocation6 + $0x5f8] sm:$0xf0] }
 0x1fc   :  { %2969 = vmatmul.bf16.vlgmr.msrb.gmra.mxu2 %v8535_v44  ;;  %v6243_v17 = vor.u32 %v7943_v2, %v6242_v1  ;;  %v7935_v25 = vld [vmem:[#allocation6 + $0x4b4] sm:$0xf0]  ;;  %v6020_v1 = vld [vmem:[#allocation6 + $0x338] sm:$0xf0]  ;;  %v6375_v6 = vor.u32 %v7971_v59, %v6372_v60 }
 0x1fd   :  { %2991 = vmatpush.bf16.msra.mxu0 %v5731_v14  ;;  %3013 = vmatpush.bf16.msra.mxu2 %v6371_v16  ;;  %v7907_v16 = vld [vmem:[#allocation6 + $0x3dc] sm:$0xf]  ;;  %v6498_v29 = vld [vmem:[#allocation6 + $0x6d8] sm:$0xf] }
 0x1fe   :  { %v6119_v27 = vor.u32 %v7907_v16, %v6116_v11  ;;  %v8007_v30 = vld [vmem:[#allocation6 + $0x6f4] sm:$0xf0]  ;;  %v7803_v8 = vld [vmem:[#allocation6 + $0x9c] sm:$0xf] }
 0x1ff   :  { %3003 = vmatpush.bf16.msra.mxu1 %v6019_v21  ;;  %2981 = vmatpush.bf16.msrb.mxu3 %v6399_v33  ;;  %v8571_v13 = vpop.f32.mrf.mxu2  ;;  %v8573_v14 = vpop.f32.mrf.mxu1  ;;  %v6211_v33 = vor.u32 %v7935_v25, %v6210_v24  ;;  %v6499_v35 = vor.u32 %v8007_v30, %v6498_v29  ;;  %v6178_v37 = vld [vmem:[#allocation6 + $0x458] sm:$0xf]  ;;  %v7963_v12 = vld [vmem:[#allocation6 + $0x59c] sm:$0xf] }
 0x200   :  { %v6466_v39 = vld [vmem:[#allocation6 + $0x698] sm:$0xf]  ;;  %v6340_v16 = vld [vmem:[#allocation6 + $0x5b8] sm:$0xf0] }
 0x201   :  { %2992 = vmatpush.bf16.msra.mxu0 %v5699_v31  ;;  %3014 = vmatpush.bf16.msra.mxu2 %v6339_v32  ;;  %v2738_v21 = vpop.f32.mrf.mxu0  ;;  %v7899_v31 = vld [vmem:[#allocation6 + $0x39c] sm:$0xf]  ;;  %v7999_v15 = vld [vmem:[#allocation6 + $0x6b4] sm:$0xf0]  ;;  %v6343_v28 = vor.u32 %v7963_v12, %v6340_v16 }
 0x202   :  { %2982 = vmatmul.bf16.vlgmr.msrb.gmra.mxu3 %v8539_v7  ;;  %v6084_v32 = vld [vmem:[#allocation6 + $0x3b8] sm:$0xf0]  ;;  %v6146_v47 = vld [vmem:[#allocation6 + $0x418] sm:$0xf] }
 0x203   :  { %3004 = vmatpush.bf16.msra.mxu1 %v5987_v34  ;;  %3026 = vmatpush.bf16.msra.mxu3 %v6627_v62  ;;  %v7927_v62 = vld [vmem:[#allocation6 + $0x474] sm:$0xf0]  ;;  %v6087_v38 = vor.u32 %v7899_v31, %v6084_v32  ;;  %v7875_v21 = vld [vmem:[#allocation6 + $0x2dc] sm:$0xf] }
 0x204   :  { %v7919_v54 = vld [vmem:[#allocation6 + $0x434] sm:$0xf0]  ;;  %v8035_v24 = vld [vmem:[#allocation6 + $0x7dc] sm:$0xf] }
 0x205   :  { %2993 = vmatpush.bf16.msra.mxu0 %v5667_v41  ;;  %3015 = vmatpush.bf16.msra.mxu2 %v6307_v45  ;;  %v8576_v34 = vpop.f32.mrf.mxu3  ;;  %v6052_v45 = vld [vmem:[#allocation6 + $0x378] sm:$0xf0]  ;;  %v6147_v2 = vor.u32 %v7919_v54, %v6146_v47  ;;  %v6402_v11 = vld [vmem:[#allocation6 + $0x618] sm:$0xf]  ;;  %v8070_v54 = vld [vmem:[#allocation7 + $0xec] sm:$0xf0] }
 0x206   :  { %v6055_v56 = vor.u32 %v7891_v42, %v6052_v45  ;;  %v6628_v25 = vld [vmem:[#allocation6 + $0x7f8] sm:$0xf0] }
 0x207   :  { %3005 = vmatpush.bf16.msra.mxu1 %v5955_v46  ;;  %3027 = vmatpush.bf16.msra.mxu3 %v6595_v51  ;;  %v2712_v40 = vpop.f32.mrf.mxu2  ;;  %v2751_v41 = vpop.f32.mrf.mxu1  ;;  %v6179_v46 = vor.u32 %v7927_v62, %v6178_v37  ;;  %v6467_v51 = vor.u32 %v7999_v15, %v6466_v39  ;;  %v7795_v31 = vld [vmem:[#allocation6 + $0x5c] sm:$0xf] }
 0x208   :  { %v5668_v32 = vld [vmem:[#allocation6 + $0x78] sm:$0xf0] }
 0x209   :  { %2994 = vmatpush.bf16.msra.mxu0 %v5635_v61  ;;  %3016 = vmatpush.bf16.msra.mxu2 %v6275_v63  ;;  %v8579_v48 = vpop.f32.mrf.mxu0  ;;  %v6434_v61 = vld [vmem:[#allocation6 + $0x658] sm:$0xf]  ;;  %v7867_v37 = vld [vmem:[#allocation6 + $0x29c] sm:$0xf]  ;;  %v5671_v39 = vor.u32 %v7795_v31, %v5668_v32  ;;  %v8062_v31 = vld [vmem:[#allocation7 + $0xac] sm:$0xf0] }
 0x20a   :  { %v7991_v63 = vld [vmem:[#allocation6 + $0x674] sm:$0xf0]  ;;  %v5956_v62 = vld [vmem:[#allocation6 + $0x2b8] sm:$0xf0] }
 0x20b   :  { %3006 = vmatpush.bf16.msra.mxu1 %v5923_v3  ;;  %3028 = vmatpush.bf16.msra.mxu3 %v6563_v4  ;;  %v5735_v4 = vor.u32 %v7811_v43, %v5732_v55  ;;  %v6435_v9 = vor.u32 %v7991_v63, %v6434_v61  ;;  %v7787_v15 = vld [vmem:[#allocation6 + $0x1c] sm:$0xf]  ;;  %v5959_v41 = vor.u32 %v7867_v37, %v5956_v62 }
 0x20c   :  { %2995 = vmatmul.bf16.vlgmr.msra.gmra.mxu0 %v8526_v5  ;;  %v5636_v42 = vld [vmem:[#allocation6 + $0x38] sm:$0xf0] }
 0x20d   :  { %3039 = vmatpush.bf16.msrb.mxu0 %v5863_v0  ;;  %3017 = vmatpush.bf16.msra.mxu2 %v6243_v17  ;;  %v7883_v0 = vld [vmem:[#allocation6 + $0x31c] sm:$0xf]  ;;  %v2725_v3 = vpop.f32.mrf.mxu3  ;;  %v5639_v61 = vor.u32 %v7787_v15, %v5636_v42  ;;  %v6698_v15 = vld [vmem:[#allocation7 + $0x80] sm:$0xf] }
 0x20e   :  { %v6023_v10 = vor.u32 %v7883_v0, %v6020_v1  ;;  %v7947_v45 = vld [vmem:[#allocation6 + $0x51c] sm:$0xf] }
 0x20f   :  { %3007 = vmatpush.bf16.msra.mxu1 %v5891_v22  ;;  %3029 = vmatpush.bf16.msra.mxu3 %v6531_v23  ;;  %v8581_v17 = vpop.f32.mrf.mxu2  ;;  %v5988_v22 = vld [vmem:[#allocation6 + $0x2f8] sm:$0xf0]  ;;  %v8583_v23 = vpop.f32.mrf.mxu1 }
 0x210   :  { %v5991_v30 = vor.u32 %v7875_v21, %v5988_v22  ;;  %v7859_v43 = vld [vmem:[#allocation6 + $0x25c] sm:$0xf] }
 0x211   :  { %3040 = vmatpush.bf16.msrb.mxu0 %v5831_v20  ;;  %3018 = vmatpush.bf16.msra.mxu2 %v6211_v33  ;;  %v7983_v20 = vld [vmem:[#allocation6 + $0x634] sm:$0xf0]  ;;  %v2790_v26 = vpop.f32.mrf.mxu0  ;;  %v7955_v33 = vld [vmem:[#allocation6 + $0x55c] sm:$0xf] }
 0x212   :  { %3008 = vmatmul.bf16.vlgmr.msra.gmra.mxu1 %v8530_v19  ;;  %v6403_v29 = vor.u32 %v7983_v20, %v6402_v11  ;;  %v8019_v59 = vld [vmem:[#allocation6 + $0x75c] sm:$0xf]  ;;  %v6874_v11 = vld [vmem:[#allocation7 + $0x1e0] sm:$0xf]  ;;  %v8102_v20 = vld [vmem:[#allocation7 + $0x1ec] sm:$0xf0] }
 0x213   :  { %3052 = vmatpush.bf16.msrb.mxu1 %v6119_v27  ;;  %3030 = vmatpush.bf16.msra.mxu3 %v6499_v35  ;;  %v5703_v27 = vor.u32 %v7803_v8, %v5700_v52  ;;  %v6308_v35 = vld [vmem:[#allocation6 + $0x578] sm:$0xf0]  ;;  %v8066_v8 = vld [vmem:[#allocation7 + $0xcc] sm:$0xf0] }
 0x214   :  { %v6311_v40 = vor.u32 %v7955_v33, %v6308_v35  ;;  %v6564_v60 = vld [vmem:[#allocation6 + $0x778] sm:$0xf0]  ;;  %v8098_v35 = vld [vmem:[#allocation7 + $0x1cc] sm:$0xf0] }
 0x215   :  { %3041 = vmatpush.bf16.msrb.mxu0 %v5799_v57  ;;  %3019 = vmatpush.bf16.msra.mxu2 %v6179_v46  ;;  %v6631_v57 = vor.u32 %v8035_v24, %v6628_v25  ;;  %v8586_v53 = vpop.f32.mrf.mxu3  ;;  %v6276_v46 = vld [vmem:[#allocation6 + $0x538] sm:$0xf0] }
 0x216   :  { %v6279_v63 = vor.u32 %v7947_v45, %v6276_v46  ;;  %v7939_v1 = vld [vmem:[#allocation6 + $0x4dc] sm:$0xf]  ;;  %v6842_v45 = vld [vmem:[#allocation7 + $0x1a0] sm:$0xf]  ;;  %v8094_v46 = vld [vmem:[#allocation7 + $0x1ac] sm:$0xf0] }
 0x217   :  { %3053 = vmatpush.bf16.msrb.mxu1 %v6087_v38  ;;  %3031 = vmatpush.bf16.msra.mxu3 %v6467_v51  ;;  %v6596_v38 = vld [vmem:[#allocation6 + $0x7b8] sm:$0xf0]  ;;  %v2764_v47 = vpop.f32.mrf.mxu2  ;;  %v6746_v51 = vld [vmem:[#allocation7 + $0xe0] sm:$0xf]  ;;  %v2803_v55 = vpop.f32.mrf.mxu1 }
 0x218   :  { %v6747_v0 = vor.u32 %v8070_v54, %v6746_v51  ;;  %v7851_v52 = vld [vmem:[#allocation6 + $0x21c] sm:$0xf] }
 0x219   :  { %3042 = vmatpush.bf16.msrb.mxu0 %v5767_v49  ;;  %3020 = vmatpush.bf16.msra.mxu2 %v6147_v2  ;;  %v6599_v49 = vor.u32 %v8027_v36, %v6596_v38  ;;  %v6244_v2 = vld [vmem:[#allocation6 + $0x4f8] sm:$0xf0] }
 0x21a   :  { %v6532_v12 = vld [vmem:[#allocation6 + $0x738] sm:$0xf0]  ;;  %v6247_v21 = vor.u32 %v7939_v1, %v6244_v2  ;;  %v8134_v1 = vld [vmem:[#allocation7 + $0x2ec] sm:$0xf0] }
 0x21b   :  { %3054 = vmatpush.bf16.msrb.mxu1 %v6055_v56  ;;  %3032 = vmatpush.bf16.msra.mxu3 %v6435_v9  ;;  %v5924_v56 = vld [vmem:[#allocation6 + $0x278] sm:$0xf0] }
 0x21c   :  { %3021 = vmatmul.bf16.vlgmr.msra.gmra.mxu2 %v8535_v44  ;;  %v5927_v3 = vor.u32 %v7859_v43, %v5924_v56  ;;  %v5892_v9 = vld [vmem:[#allocation6 + $0x238] sm:$0xf0] }
 0x21d   :  { %3043 = vmatpush.bf16.msrb.mxu0 %v5735_v4  ;;  %3065 = vmatpush.bf16.msrb.mxu2 %v6375_v6  ;;  %v6567_v4 = vor.u32 %v8019_v59, %v6564_v60  ;;  %v6730_v6 = vld [vmem:[#allocation7 + $0xc0] sm:$0xf]  ;;  %v2777_v16 = vpop.f32.mrf.mxu3  ;;  %v5895_v25 = vor.u32 %v7851_v52, %v5892_v9  ;;  %v8003_v32 = vld [vmem:[#allocation6 + $0x6dc] sm:$0xf] }
 0x21e   :  { %v6731_v22 = vor.u32 %v8066_v8, %v6730_v6  ;;  %v6500_v33 = vld [vmem:[#allocation6 + $0x6f8] sm:$0xf0]  ;;  %v6682_v60 = vld [vmem:[#allocation7 + $0x60] sm:$0xf]  ;;  %v1380_v6 = vperm.slane %v8561_v58, 1 }
 0x21f   :  { %3055 = vmatpush.bf16.msrb.mxu1 %v6023_v10  ;;  %3033 = vmatpush.bf16.msra.mxu3 %v6403_v29  ;;  %v8011_v10 = vld [vmem:[#allocation6 + $0x71c] sm:$0xf]  ;;  %v8589_v24 = vpop.f32.mrf.mxu2  ;;  %v6714_v29 = vld [vmem:[#allocation7 + $0xa0] sm:$0xf]  ;;  %v6503_v36 = vor.u32 %v8003_v32, %v6500_v33 }
 0x220   :  { %v6535_v26 = vor.u32 %v8011_v10, %v6532_v12  ;;  %v6715_v62 = vor.u32 %v8062_v31, %v6714_v29  ;;  %v7923_v38 = vld [vmem:[#allocation6 + $0x45c] sm:$0xf]  ;;  %v6666_v10 = vld [vmem:[#allocation7 + $0x40] sm:$0xf]  ;;  %v8050_v12 = vld [vmem:[#allocation7 + $0x4c] sm:$0xf0] }
 0x221   :  { %3044 = vmatpush.bf16.msrb.mxu0 %v5703_v27  ;;  %3066 = vmatpush.bf16.msrb.mxu2 %v6343_v28  ;;  %v7931_v27 = vld [vmem:[#allocation6 + $0x49c] sm:$0xf]  ;;  %v8086_v29 = vld [vmem:[#allocation7 + $0x16c] sm:$0xf0]  ;;  %v7130_v33 = vld [vmem:[#allocation7 + $0x3e0] sm:$0xf] }
 0x222   :  { %3034 = vmatmul.bf16.vlgmr.msra.gmra.mxu3 %v8539_v7  ;;  %v6212_v28 = vld [vmem:[#allocation6 + $0x4b8] sm:$0xf0] }
 0x223   :  { %3056 = vmatpush.bf16.msrb.mxu1 %v5991_v30  ;;  %3078 = vmatpush.bf16.msrb.mxu3 %v6631_v57  ;;  %v6875_v30 = vor.u32 %v8102_v20, %v6874_v11  ;;  %v6858_v57 = vld [vmem:[#allocation7 + $0x1c0] sm:$0xf]  ;;  %v6215_v37 = vor.u32 %v7931_v27, %v6212_v28  ;;  %v6468_v42 = vld [vmem:[#allocation6 + $0x6b8] sm:$0xf0] }
 0x224   :  { %v7915_v54 = vld [vmem:[#allocation6 + $0x41c] sm:$0xf]  ;;  %v6810_v28 = vld [vmem:[#allocation7 + $0x160] sm:$0xf] }
 0x225   :  { %3045 = vmatpush.bf16.msrb.mxu0 %v5671_v39  ;;  %3067 = vmatpush.bf16.msrb.mxu2 %v6311_v40  ;;  %v6180_v39 = vld [vmem:[#allocation6 + $0x478] sm:$0xf0]  ;;  %v6859_v40 = vor.u32 %v8098_v35, %v6858_v57  ;;  %v8593_v47 = vpop.f32.mrf.mxu3  ;;  %v8166_v57 = vld [vmem:[#allocation7 + $0x3ec] sm:$0xf0] }
 0x226   :  { %v6183_v51 = vor.u32 %v7923_v38, %v6180_v39  ;;  %v6148_v59 = vld [vmem:[#allocation6 + $0x438] sm:$0xf0]  ;;  %v6650_v38 = vld [vmem:[#allocation7 + $0x20] sm:$0xf]  ;;  %v8046_v39 = vld [vmem:[#allocation7 + $0x2c] sm:$0xf0] }
 0x227   :  { %3057 = vmatpush.bf16.msrb.mxu1 %v5959_v41  ;;  %3079 = vmatpush.bf16.msrb.mxu3 %v6599_v49  ;;  %v8058_v41 = vld [vmem:[#allocation7 + $0x8c] sm:$0xf0]  ;;  %v2816_v55 = vpop.f32.mrf.mxu2  ;;  %v7987_v2 = vld [vmem:[#allocation6 + $0x65c] sm:$0xf]  ;;  %v6151_v8 = vor.u32 %v7915_v54, %v6148_v59  ;;  %v6634_v54 = vld [vmem:[#allocation7] sm:$0xf] }
 0x228   :  { %v6699_v43 = vor.u32 %v8058_v41, %v6698_v15  ;;  %v6404_v27 = vld [vmem:[#allocation6 + $0x638] sm:$0xf0]  ;;  %v7131_v15 = vor.u32 %v8166_v57, %v7130_v33  ;;  %v6794_v41 = vld [vmem:[#allocation7 + $0x140] sm:$0xf]  ;;  %v8042_v59 = vld [vmem:[#allocation7 + $0xc] sm:$0xf0] }
 0x229   :  { %3046 = vmatpush.bf16.msrb.mxu0 %v5639_v61  ;;  %3068 = vmatpush.bf16.msrb.mxu2 %v6279_v63  ;;  %v8595_v49 = vpop.f32.mrf.mxu0  ;;  %v8054_v61 = vld [vmem:[#allocation7 + $0x6c] sm:$0xf0]  ;;  %v6843_v63 = vor.u32 %v8094_v46, %v6842_v45 }
 0x22a   :  { %v6683_v52 = vor.u32 %v8054_v61, %v6682_v60  ;;  %v8162_v45 = vld [vmem:[#allocation7 + $0x3cc] sm:$0xf0]  ;;  %v6954_v60 = vld [vmem:[#allocation7 + $0x280] sm:$0xf] }
 0x22b   :  { %3058 = vmatpush.bf16.msrb.mxu1 %v5927_v3  ;;  %3080 = vmatpush.bf16.msrb.mxu3 %v6567_v4  ;;  %v6826_v3 = vld [vmem:[#allocation7 + $0x180] sm:$0xf]  ;;  %v8090_v4 = vld [vmem:[#allocation7 + $0x18c] sm:$0xf0] }
 0x22c   :  { %3047 = vmatmul.bf16.vlgmr.msrb.gmra.mxu0 %v8526_v5  ;;  %v7995_v5 = vld [vmem:[#allocation6 + $0x69c] sm:$0xf]  ;;  %v6827_v20 = vor.u32 %v8090_v4, %v6826_v3  ;;  %v8122_v61 = vld [vmem:[#allocation7 + $0x28c] sm:$0xf0] }
 0x22d   :  { %4661 = vmatpush.bf16.msra.mxu0 %v6747_v0  ;;  %3069 = vmatpush.bf16.msrb.mxu2 %v6247_v21  ;;  %v6471_v56 = vor.u32 %v7995_v5, %v6468_v42  ;;  %v7002_v0 = vld [vmem:[#allocation7 + $0x2e0] sm:$0xf]  ;;  %v2829_v31 = vpop.f32.mrf.mxu3  ;;  %v8082_v5 = vld [vmem:[#allocation7 + $0x14c] sm:$0xf0] }
 0x22e   :  { %v7003_v9 = vor.u32 %v8134_v1, %v7002_v0  ;;  %v6986_v21 = vld [vmem:[#allocation7 + $0x2c0] sm:$0xf]  ;;  %v8198_v0 = vld [vmem:[#allocation7 + $0x4ec] sm:$0xf0] }
 0x22f   :  { %3059 = vmatpush.bf16.msrb.mxu1 %v5895_v25  ;;  %3081 = vmatpush.bf16.msrb.mxu3 %v6535_v26  ;;  %v8598_v16 = vpop.f32.mrf.mxu1  ;;  %v7979_v25 = vld [vmem:[#allocation6 + $0x61c] sm:$0xf]  ;;  %v2711_v26 = vadd.f32 %v8571_v13, %v8565_v18  ;;  %v6811_v13 = vor.u32 %v8086_v29, %v6810_v28  ;;  %v7114_v42 = vld [vmem:[#allocation7 + $0x3c0] sm:$0xf]  ;;  %v8158_v3 = vld [vmem:[#allocation7 + $0x3ac] sm:$0xf0] }
 0x230   :  { %v6407_v18 = vor.u32 %v7979_v25, %v6404_v27  ;;  %v6778_v1 = vld [vmem:[#allocation7 + $0x120] sm:$0xf] }
 0x231   :  { %4662 = vmatpush.bf16.msra.mxu0 %v6731_v22  ;;  %3070 = vmatpush.bf16.msrb.mxu2 %v6215_v37  ;;  %v8130_v22 = vld [vmem:[#allocation7 + $0x2cc] sm:$0xf0]  ;;  %v2842_v32 = vpop.f32.mrf.mxu0  ;;  %v2724_v35 = vadd.f32 %v8576_v34, %v2711_v26  ;;  %v6667_v37 = vor.u32 %v8050_v12, %v6666_v10  ;;  %v7082_v27 = vld [vmem:[#allocation7 + $0x380] sm:$0xf] }
 0x232   :  { %3060 = vmatmul.bf16.vlgmr.msrb.gmra.mxu1 %v8530_v19  ;;  %v6436_v19 = vld [vmem:[#allocation6 + $0x678] sm:$0xf0]  ;;  %v8118_v10 = vld [vmem:[#allocation7 + $0x26c] sm:$0xf0]  ;;  %v7386_v29 = vld [vmem:[#allocation7 + $0x5e0] sm:$0xf] }
 0x233   :  { %4674 = vmatpush.bf16.msra.mxu1 %v6875_v30  ;;  %3082 = vmatpush.bf16.msrb.mxu3 %v6503_v36  ;;  %v6439_v11 = vor.u32 %v7987_v2, %v6436_v19  ;;  %v2737_v30 = vadd.f32 %v8568_v50, %v1380_v6  ;;  %v6970_v50 = vld [vmem:[#allocation7 + $0x2a0] sm:$0xf]  ;;  %v3091_v46 = vmul.f32 0.2, %v2724_v35  ;;  %v8078_v2 = vld [vmem:[#allocation7 + $0x12c] sm:$0xf0] }
 0x234   :  { %v7098_v19 = vld [vmem:[#allocation7 + $0x3a0] sm:$0xf]  ;;  %v6779_v12 = vor.u32 %v8078_v2, %v6778_v1  ;;  %v8074_v26 = vld [vmem:[#allocation7 + $0x10c] sm:$0xf0]  ;;  %v1382_v32 = vperm.slane %v8561_v58, 3 }
 0x235   :  { %4663 = vmatpush.bf16.msra.mxu0 %v6715_v62  ;;  %3071 = vmatpush.bf16.msrb.mxu2 %v6183_v51  ;;  %v6987_v62 = vor.u32 %v8130_v22, %v6986_v21  ;;  %v2750_v36 = vadd.f32 %v8573_v14, %v2737_v30  ;;  %v1381_v14 = vperm.slane %v8561_v58, 2  ;;  %v6651_v51 = vor.u32 %v8046_v39, %v6650_v38  ;;  %v8194_v21 = vld [vmem:[#allocation7 + $0x4cc] sm:$0xf0]  ;;  %v6762_v22 = vld [vmem:[#allocation7 + $0x100] sm:$0xf] }
 0x236   :  { %v3099_v4 = vmax.f32 %v2724_v35, %v3091_v46  ;;  %v8230_v30 = vld [vmem:[#allocation7 + $0x5ec] sm:$0xf0]  ;;  %v7066_v39 = vld [vmem:[#allocation7 + $0x360] sm:$0xf] }
 0x237   :  { %4675 = vmatpush.bf16.msra.mxu1 %v6859_v40  ;;  %3083 = vmatpush.bf16.msrb.mxu3 %v6471_v56  ;;  %v8126_v40 = vld [vmem:[#allocation7 + $0x2ac] sm:$0xf0]  ;;  %v2763_v34 = vadd.f32 %v8581_v17, %v2750_v36  ;;  %v2855_v55 = vpop.f32.mrf.mxu1  ;;  %v6795_v56 = vor.u32 %v8082_v5, %v6794_v41  ;;  %v7115_v17 = vor.u32 %v8162_v45, %v7114_v42  ;;  %v6890_v2 = vld [vmem:[#allocation7 + $0x200] sm:$0xf] }
 0x238   :  { %v2789_v25 = vadd.f32 %v8579_v48, %v1381_v14  ;;  %v8611_v28 = vpack.c.bf16 %v3099_v4, %v3099_v4  ;;  %v6763_v48 = vor.u32 %v8074_v26, %v6762_v22  ;;  %v8114_v36 = vld [vmem:[#allocation7 + $0x24c] sm:$0xf0]  ;;  %v2841_v5 = vadd.f32 %v8595_v49, %v1382_v32  ;;  %v7210_v14 = vld [vmem:[#allocation7 + $0x480] sm:$0xf] }
 0x239   :  { %4664 = vmatpush.bf16.msra.mxu0 %v6699_v43  ;;  %3072 = vmatpush.bf16.msrb.mxu2 %v6151_v8  ;;  %v2776_v43 = vadd.f32 %v8586_v53, %v2763_v34  ;;  %v6635_v53 = vor.u32 %v8042_v59, %v6634_v54  ;;  %v6955_v8 = vor.u32 %v8122_v61, %v6954_v60  ;;  %v8150_v58 = vld [vmem:[#allocation7 + $0x36c] sm:$0xf0]  ;;  %v7050_v55 = vld [vmem:[#allocation7 + $0x340] sm:$0xf] }
 0x23a   :  { %v2802_v31 = vadd.f32 %v8583_v23, %v2789_v25  ;;  %v8190_v23 = vld [vmem:[#allocation7 + $0x4ac] sm:$0xf0]  ;;  %v7067_v45 = vor.u32 %v8150_v58, %v7066_v39  ;;  %v2854_v54 = vadd.f32 %v8598_v16, %v2841_v5  ;;  %v7354_v59 = vld [vmem:[#allocation7 + $0x5a0] sm:$0xf] }
 0x23b   :  { %4676 = vmatpush.bf16.msra.mxu1 %v6843_v63  ;;  %3084 = vmatpush.bf16.msrb.mxu3 %v6439_v11  ;;  %v7258_v63 = vld [vmem:[#allocation7 + $0x4e0] sm:$0xf]  ;;  %v3092_v6 = vmul.f32 0.2, %v2776_v43  ;;  %v7099_v11 = vor.u32 %v8158_v3, %v7098_v19  ;;  %v8110_v46 = vld [vmem:[#allocation7 + $0x22c] sm:$0xf0] }
 0x23c   :  { %3073 = vmatmul.bf16.vlgmr.msrb.gmra.mxu2 %v8535_v44  ;;  %v6971_v44 = vor.u32 %v8126_v40, %v6970_v50  ;;  %v2815_v38 = vadd.f32 %v8589_v24, %v2802_v31  ;;  %v7387_v50 = vor.u32 %v8230_v30, %v7386_v29  ;;  %v8226_v40 = vld [vmem:[#allocation7 + $0x5cc] sm:$0xf0]  ;;  %v6906_v24 = vld [vmem:[#allocation7 + $0x220] sm:$0xf] }
 0x23d   :  { %4665 = vmatpush.bf16.msra.mxu0 %v6683_v52  ;;  %4687 = vmatpush.bf16.msra.mxu2 %v7003_v9  ;;  %v7259_v52 = vor.u32 %v8198_v0, %v7258_v63  ;;  %v6938_v9 = vld [vmem:[#allocation7 + $0x260] sm:$0xf]  ;;  %v8222_v60 = vld [vmem:[#allocation7 + $0x5ac] sm:$0xf0]  ;;  %v6907_v63 = vor.u32 %v8110_v46, %v6906_v24  ;;  %v8068_v46 = vld [vmem:[#allocation7 + $0xe4] sm:$0xf] }
 0x23e   :  { %v6939_v33 = vor.u32 %v8118_v10, %v6938_v9  ;;  %v2828_v41 = vadd.f32 %v8593_v47, %v2815_v38  ;;  %v8146_v47 = vld [vmem:[#allocation7 + $0x34c] sm:$0xf0]  ;;  %v7194_v3 = vld [vmem:[#allocation7 + $0x460] sm:$0xf] }
 0x23f   :  { %4677 = vmatpush.bf16.msra.mxu1 %v6827_v20  ;;  %3085 = vmatpush.bf16.msrb.mxu3 %v6407_v18  ;;  %v7242_v20 = vld [vmem:[#allocation7 + $0x4c0] sm:$0xf]  ;;  %v2866_v57 = vpop.f32.mrf.mxu2  ;;  %v7051_v1 = vor.u32 %v8146_v47, %v7050_v55  ;;  %v8106_v19 = vld [vmem:[#allocation7 + $0x20c] sm:$0xf0] }
 0x240   :  { %v7243_v35 = vor.u32 %v8194_v21, %v7242_v20  ;;  %v7226_v18 = vld [vmem:[#allocation7 + $0x4a0] sm:$0xf]  ;;  %v3093_v61 = vmul.f32 0.2, %v2828_v41  ;;  %v8218_v10 = vld [vmem:[#allocation7 + $0x58c] sm:$0xf0] }
 0x241   :  { %4666 = vmatpush.bf16.msra.mxu0 %v6667_v37  ;;  %4688 = vmatpush.bf16.msra.mxu2 %v6987_v62  ;;  %v6922_v62 = vld [vmem:[#allocation7 + $0x240] sm:$0xf]  ;;  %v7227_v42 = vor.u32 %v8190_v23, %v7226_v18  ;;  %v8178_v26 = vld [vmem:[#allocation7 + $0x44c] sm:$0xf0] }
 0x242   :  { %3086 = vmatmul.bf16.vlgmr.msrb.gmra.mxu3 %v8539_v7  ;;  %v8154_v7 = vld [vmem:[#allocation7 + $0x38c] sm:$0xf0]  ;;  %v6923_v34 = vor.u32 %v8114_v36, %v6922_v62  ;;  %v7338_v9 = vld [vmem:[#allocation7 + $0x580] sm:$0xf]  ;;  %v3101_v20 = vmax.f32 %v2828_v41, %v3093_v61 }
 0x243   :  { %4678 = vmatpush.bf16.msra.mxu1 %v6811_v13  ;;  %4700 = vmatpush.bf16.msra.mxu3 %v7131_v15  ;;  %v7083_v37 = vor.u32 %v8154_v7, %v7082_v27  ;;  %v3100_v13 = vmax.f32 %v2776_v43, %v3092_v6  ;;  %v7370_v15 = vld [vmem:[#allocation7 + $0x5c0] sm:$0xf]  ;;  %v8138_v7 = vld [vmem:[#allocation7 + $0x30c] sm:$0xf0]  ;;  %v7339_v31 = vor.u32 %v8218_v10, %v7338_v9 }
 0x244   :  { %v7371_v49 = vor.u32 %v8226_v40, %v7370_v15  ;;  %v7034_v6 = vld [vmem:[#allocation7 + $0x320] sm:$0xf]  ;;  %v8627_v62 = vpack.c.bf16 %v3101_v20, %v3101_v20  ;;  %v8174_v23 = vld [vmem:[#allocation7 + $0x42c] sm:$0xf0]  ;;  %v8060_v20 = vld [vmem:[#allocation7 + $0xa4] sm:$0xf] }
 0x245   :  { %4667 = vmatpush.bf16.msra.mxu0 %v6651_v51  ;;  %4689 = vmatpush.bf16.msra.mxu2 %v6971_v44  ;;  %v8619_v51 = vpack.c.bf16 %v3100_v13, %v3100_v13  ;;  %v2879_v43 = vpop.f32.mrf.mxu3  ;;  %v8186_v44 = vld [vmem:[#allocation7 + $0x48c] sm:$0xf0]  ;;  %v7018_v27 = vld [vmem:[#allocation7 + $0x300] sm:$0xf] }
 0x246   :  { %v7211_v16 = vor.u32 %v8186_v44, %v7210_v14  ;;  %v7514_v32 = vld [vmem:[#allocation7 + $0x6e0] sm:$0xf]  ;;  %v7019_v18 = vor.u32 %v8138_v7, %v7018_v27  ;;  %v8210_v40 = vld [vmem:[#allocation7 + $0x54c] sm:$0xf0]  ;;  %v6748_v44 = vld [vmem:[#allocation7 + $0xf0] sm:$0xf0] }
 0x247   :  { %4679 = vmatpush.bf16.msra.mxu1 %v6795_v56  ;;  %4701 = vmatpush.bf16.msra.mxu3 %v7115_v17  ;;  %v2867_v17 = vadd.f32 %v2866_v57, %v2854_v54  ;;  %v2868_v0 = vpop.f32.mrf.mxu2  ;;  %v7162_v13 = vld [vmem:[#allocation7 + $0x420] sm:$0xf]  ;;  %v8206_v47 = vld [vmem:[#allocation7 + $0x52c] sm:$0xf0]  ;;  %v8096_v27 = vld [vmem:[#allocation7 + $0x1c4] sm:$0xf] }
 0x248   :  { %v7498_v58 = vld [vmem:[#allocation7 + $0x6c0] sm:$0xf]  ;;  %v7163_v5 = vor.u32 %v8174_v23, %v7162_v13  ;;  %v6860_v7 = vld [vmem:[#allocation7 + $0x1d0] sm:$0xf0] }
 0x249   :  { %4668 = vmatpush.bf16.msra.mxu0 %v6635_v53  ;;  %4690 = vmatpush.bf16.msra.mxu2 %v6955_v8  ;;  %v8622_v56 = vpop.f32.mrf.mxu0  ;;  %v2880_v4 = vadd.f32 %v2879_v43, %v2867_v17  ;;  %v8182_v53 = vld [vmem:[#allocation7 + $0x46c] sm:$0xf0]  ;;  %v7306_v15 = vld [vmem:[#allocation7 + $0x540] sm:$0xf]  ;;  %v6751_v17 = vor.u32 %v8068_v46, %v6748_v44  ;;  %v8048_v46 = vld [vmem:[#allocation7 + $0x44] sm:$0xf] }
 0x24a   :  { %v8142_v8 = vld [vmem:[#allocation7 + $0x32c] sm:$0xf0]  ;;  %v7195_v21 = vor.u32 %v8182_v53, %v7194_v3  ;;  %v7307_v14 = vor.u32 %v8210_v40, %v7306_v15  ;;  %v7482_v54 = vld [vmem:[#allocation7 + $0x6a0] sm:$0xf]  ;;  %v8100_v53 = vld [vmem:[#allocation7 + $0x1e4] sm:$0xf] }
 0x24b   :  { %4680 = vmatpush.bf16.msra.mxu1 %v6779_v12  ;;  %4702 = vmatpush.bf16.msra.mxu3 %v7099_v11  ;;  %v6891_v12 = vor.u32 %v8106_v19, %v6890_v2  ;;  %v7178_v11 = vld [vmem:[#allocation7 + $0x440] sm:$0xf]  ;;  %v7035_v25 = vor.u32 %v8142_v8, %v7034_v6  ;;  %v3094_v29 = vmul.f32 0.2, %v2880_v4  ;;  %v8254_v43 = vld [vmem:[#allocation7 + $0x6ac] sm:$0xf0] }
 0x24c   :  { %4669 = vmatmul.bf16.vlgmr.msra.gmra.mxu0 %v8611_v28  ;;  %v7179_v36 = vor.u32 %v8178_v26, %v7178_v11  ;;  %v7290_v55 = vld [vmem:[#allocation7 + $0x520] sm:$0xf]  ;;  %v6732_v2 = vld [vmem:[#allocation7 + $0xd0] sm:$0xf0]  ;;  %v8202_v3 = vld [vmem:[#allocation7 + $0x50c] sm:$0xf0] }
 0x24d   :  { %4713 = vmatpush.bf16.msrb.mxu0 %v7259_v52  ;;  %4691 = vmatpush.bf16.msra.mxu2 %v6939_v33  ;;  %v7355_v52 = vor.u32 %v8222_v60, %v7354_v59  ;;  %v2881_v30 = vpop.f32.mrf.mxu3  ;;  %v8262_v33 = vld [vmem:[#allocation7 + $0x6ec] sm:$0xf0]  ;;  %v3102_v38 = vmax.f32 %v2880_v4, %v3094_v29  ;;  %v8636_v59 = vld [vmem:[%s8750_s6] sm:$0xff]  ;;  %v7291_v0 = vor.u32 %v8206_v47, %v7290_v55  ;;  %v6876_v6 = vld [vmem:[#allocation7 + $0x1f0] sm:$0xf0] }
 0x24e   :  { %v1383_v60 = vperm.slane %v8636_v59, 4  ;;  %v7274_v19 = vld [vmem:[#allocation7 + $0x500] sm:$0xf]  ;;  %v8052_v15 = vld [vmem:[#allocation7 + $0x64] sm:$0xf] }
 0x24f   :  { %4681 = vmatpush.bf16.msra.mxu1 %v6763_v48  ;;  %4703 = vmatpush.bf16.msra.mxu3 %v7083_v37  ;;  %v8625_v22 = vpop.f32.mrf.mxu1  ;;  %v8214_v48 = vld [vmem:[#allocation7 + $0x56c] sm:$0xf0]  ;;  %v7515_v37 = vor.u32 %v8262_v33, %v7514_v32  ;;  %v8630_v24 = vpack.c.bf16 %v3102_v38, %v3102_v38  ;;  %v7275_v9 = vor.u32 %v8202_v3, %v7274_v19  ;;  %v7450_v10 = vld [vmem:[#allocation7 + $0x660] sm:$0xf]  ;;  %v6684_v40 = vld [vmem:[#allocation7 + $0x70] sm:$0xf0] }
 0x250   :  { %v2893_v11 = vadd.f32 %v8622_v56, %v1383_v60  ;;  %v8242_v32 = vld [vmem:[#allocation7 + $0x64c] sm:$0xf0]  ;;  %v8084_v60 = vld [vmem:[#allocation7 + $0x164] sm:$0xf]  ;;  %v7004_v19 = vld [vmem:[#allocation7 + $0x2f0] sm:$0xf0] }
 0x251   :  { %4714 = vmatpush.bf16.msrb.mxu0 %v7243_v35  ;;  %4692 = vmatpush.bf16.msra.mxu2 %v6923_v34  ;;  %v2894_v57 = vpop.f32.mrf.mxu0  ;;  %v7322_v35 = vld [vmem:[#allocation7 + $0x560] sm:$0xf]  ;;  %v8234_v44 = vld [vmem:[#allocation7 + $0x60c] sm:$0xf0] }
 0x252   :  { %4682 = vmatmul.bf16.vlgmr.msra.gmra.mxu1 %v8619_v51  ;;  %v7323_v39 = vor.u32 %v8214_v48, %v7322_v35  ;;  %v2906_v29 = vadd.f32 %v8625_v22, %v2893_v11  ;;  %v8056_v57 = vld [vmem:[#allocation7 + $0x84] sm:$0xf]  ;;  %v6700_v35 = vld [vmem:[#allocation7 + $0x90] sm:$0xf0]  ;;  %v6863_v48 = vor.u32 %v8096_v27, %v6860_v7 }
 0x253   :  { %4726 = vmatpush.bf16.msrb.mxu1 %v7387_v50  ;;  %4704 = vmatpush.bf16.msra.mxu3 %v7067_v45  ;;  %v8258_v50 = vld [vmem:[#allocation7 + $0x6cc] sm:$0xf0]  ;;  %v6703_v23 = vor.u32 %v8056_v57, %v6700_v35  ;;  %v8080_v11 = vld [vmem:[#allocation7 + $0x144] sm:$0xf]  ;;  %v7610_v57 = vld [vmem:[#allocation7 + $0x7a0] sm:$0xf] }
 0x254   :  { %v7499_v41 = vor.u32 %v8258_v50, %v7498_v58  ;;  %v8170_v45 = vld [vmem:[#allocation7 + $0x40c] sm:$0xf0] }
 0x255   :  { %4715 = vmatpush.bf16.msrb.mxu0 %v7227_v42  ;;  %4693 = vmatpush.bf16.msra.mxu2 %v6907_v63  ;;  %v7146_v42 = vld [vmem:[#allocation7 + $0x400] sm:$0xf]  ;;  %v8064_v63 = vld [vmem:[#allocation7 + $0xc4] sm:$0xf]  ;;  %v8238_v58 = vld [vmem:[#allocation7 + $0x62c] sm:$0xf0] }
 0x256   :  { %v7147_v61 = vor.u32 %v8170_v45, %v7146_v42  ;;  %v6828_v42 = vld [vmem:[#allocation7 + $0x190] sm:$0xf0]  ;;  %v8286_v35 = vld [vmem:[#allocation7 + $0x7ac] sm:$0xf0] }
 0x257   :  { %4727 = vmatpush.bf16.msrb.mxu1 %v7371_v49  ;;  %4705 = vmatpush.bf16.msra.mxu3 %v7051_v1  ;;  %v2907_v34 = vpop.f32.mrf.mxu1  ;;  %v7483_v49 = vor.u32 %v8254_v43, %v7482_v54  ;;  %v8250_v1 = vld [vmem:[#allocation7 + $0x68c] sm:$0xf0]  ;;  %v6668_v54 = vld [vmem:[#allocation7 + $0x50] sm:$0xf0]  ;;  %v7402_v43 = vld [vmem:[#allocation7 + $0x600] sm:$0xf] }
 0x258   :  { %v8088_v34 = vld [vmem:[#allocation7 + $0x184] sm:$0xf] }
 0x259   :  { %4716 = vmatpush.bf16.msrb.mxu0 %v7211_v16  ;;  %4694 = vmatpush.bf16.msra.mxu2 %v6891_v12  ;;  %v7466_v16 = vld [vmem:[#allocation7 + $0x680] sm:$0xf]  ;;  %v8246_v12 = vld [vmem:[#allocation7 + $0x66c] sm:$0xf0] }
 0x25a   :  { %v7467_v4 = vor.u32 %v8250_v1, %v7466_v16  ;;  %v7451_v26 = vor.u32 %v8246_v12, %v7450_v10  ;;  %v6812_v16 = vld [vmem:[#allocation7 + $0x170] sm:$0xf0]  ;;  %v8290_v10 = vld [vmem:[#allocation7 + $0x7cc] sm:$0xf0]  ;;  %v8128_v12 = vld [vmem:[#allocation7 + $0x2c4] sm:$0xf] }
 0x25b   :  { %4728 = vmatpush.bf16.msrb.mxu1 %v7355_v52  ;;  %4706 = vmatpush.bf16.msra.mxu3 %v7035_v25  ;;  %v6735_v52 = vor.u32 %v8064_v63, %v6732_v2  ;;  %v6879_v25 = vor.u32 %v8100_v53, %v6876_v6  ;;  %v8294_v63 = vld [vmem:[#allocation7 + $0x7ec] sm:$0xf0]  ;;  %v8132_v2 = vld [vmem:[#allocation7 + $0x2e4] sm:$0xf]  ;;  %v6671_v53 = vor.u32 %v8048_v46, %v6668_v54  ;;  %v1384_v46 = vperm.slane %v8636_v59, 5 }
 0x25c   :  { %4695 = vmatmul.bf16.vlgmr.msra.gmra.mxu2 %v8627_v62  ;;  %v8044_v6 = vld [vmem:[#allocation7 + $0x24] sm:$0xf] }
 0x25d   :  { %4717 = vmatpush.bf16.msrb.mxu0 %v7195_v21  ;;  %4739 = vmatpush.bf16.msrb.mxu2 %v7515_v37  ;;  %v6716_v21 = vld [vmem:[#allocation7 + $0xb0] sm:$0xf0] }
 0x25e   :  { %v6719_v30 = vor.u32 %v8060_v20, %v6716_v21  ;;  %v6796_v20 = vld [vmem:[#allocation7 + $0x150] sm:$0xf0] }
 0x25f   :  { %4729 = vmatpush.bf16.msrb.mxu1 %v7339_v31  ;;  %4707 = vmatpush.bf16.msra.mxu3 %v7019_v18  ;;  %v2918_v8 = vpop.f32.mrf.mxu2  ;;  %v7434_v31 = vld [vmem:[#allocation7 + $0x640] sm:$0xf]  ;;  %v6844_v18 = vld [vmem:[#allocation7 + $0x1b0] sm:$0xf0] }
 0x260   :  { %v2919_v33 = vadd.f32 %v2918_v8, %v2906_v29  ;;  %v7435_v56 = vor.u32 %v8242_v32, %v7434_v31  ;;  %v6652_v8 = vld [vmem:[#allocation7 + $0x30] sm:$0xf0] }
 0x261   :  { %4718 = vmatpush.bf16.msrb.mxu0 %v7179_v36  ;;  %4740 = vmatpush.bf16.msrb.mxu2 %v7499_v41  ;;  %v8092_v36 = vld [vmem:[#allocation7 + $0x1a4] sm:$0xf]  ;;  %v6655_v7 = vor.u32 %v8044_v6, %v6652_v8  ;;  %v6636_v29 = vld [vmem:[#allocation7 + $0x10] sm:$0xf0] }
 0x262   :  { %4708 = vmatmul.bf16.vlgmr.msra.gmra.mxu3 %v8630_v24  ;;  %v6847_v41 = vor.u32 %v8092_v36, %v6844_v18  ;;  %v7260_v31 = vld [vmem:[#allocation7 + $0x4f0] sm:$0xf0]  ;;  %v7611_v36 = vor.u32 %v8286_v35, %v7610_v57  ;;  %v8112_v6 = vld [vmem:[#allocation7 + $0x244] sm:$0xf] }
 0x263   :  { %4730 = vmatpush.bf16.msrb.mxu1 %v7323_v39  ;;  %v7418_v39 = vld [vmem:[#allocation7 + $0x620] sm:$0xf]  ;;  %v6972_v18 = vld [vmem:[#allocation7 + $0x2b0] sm:$0xf0]  ;;  %v8184_v8 = vld [vmem:[#allocation7 + $0x484] sm:$0xf] }
 0x264   :  { %v8228_v57 = vld [vmem:[#allocation7 + $0x5e4] sm:$0xf]  ;;  %v7388_v35 = vld [vmem:[#allocation7 + $0x5f0] sm:$0xf0] }
 0x265   :  { %4719 = vmatpush.bf16.msrb.mxu0 %v7163_v5  ;;  %4741 = vmatpush.bf16.msrb.mxu2 %v7483_v49  ;;  %v2931_v37 = vpop.f32.mrf.mxu3  ;;  %v7419_v5 = vor.u32 %v8238_v58, %v7418_v39  ;;  %v6831_v49 = vor.u32 %v8088_v34, %v6828_v42  ;;  %v7244_v39 = vld [vmem:[#allocation7 + $0x4d0] sm:$0xf0] }
 0x266   :  { %v2932_v13 = vadd.f32 %v2931_v37, %v2919_v33  ;;  %v6799_v33 = vor.u32 %v8080_v11, %v6796_v20  ;;  %v6780_v37 = vld [vmem:[#allocation7 + $0x130] sm:$0xf0] }
 0x267   :  { %4731 = vmatpush.bf16.msrb.mxu1 %v7307_v14  ;;  %v2920_v22 = vpop.f32.mrf.mxu2  ;;  %v6687_v14 = vor.u32 %v8052_v15, %v6684_v40  ;;  %v7594_v15 = vld [vmem:[#allocation7 + $0x780] sm:$0xf]  ;;  %v8282_v40 = vld [vmem:[#allocation7 + $0x78c] sm:$0xf0]  ;;  %v6764_v34 = vld [vmem:[#allocation7 + $0x110] sm:$0xf0] }
 0x268   :  { %v3095_v50 = vmul.f32 0.2, %v2932_v13  ;;  %v7595_v42 = vor.u32 %v8282_v40, %v7594_v15  ;;  %v6892_v15 = vld [vmem:[#allocation7 + $0x210] sm:$0xf0] }
 0x269   :  { %4720 = vmatpush.bf16.msrb.mxu0 %v7147_v61  ;;  %4742 = vmatpush.bf16.msrb.mxu2 %v7467_v4  ;;  %v8641_v38 = vpop.f32.mrf.mxu0  ;;  %v7403_v61 = vor.u32 %v8234_v44, %v7402_v43  ;;  %v7007_v4 = vor.u32 %v8132_v2, %v7004_v19  ;;  %v7578_v44 = vld [vmem:[#allocation7 + $0x760] sm:$0xf] }
 0x26a   :  { %v3103_v45 = vmax.f32 %v2932_v13, %v3095_v50 }
 0x26b   :  { %4732 = vmatpush.bf16.msrb.mxu1 %v7291_v0 }
 0x26c   :  { %v8643_v55 = vpack.c.bf16 %v3103_v45, %v3103_v45  ;;  %v6956_v45 = vld [vmem:[#allocation7 + $0x290] sm:$0xf0] }
 0x26d   :  { %4765 = vmatpush.bf16.msra.mxu0 %v6751_v17  ;;  %4743 = vmatpush.bf16.msrb.mxu2 %v7451_v26  ;;  %v7642_v17 = vld [vmem:[#allocation7 + $0x7e0] sm:$0xf]  ;;  %v2933_v0 = vpop.f32.mrf.mxu3  ;;  %v8040_v26 = vld [vmem:[#allocation7 + $0x4] sm:$0xf] }
 0x26e   :  { %v7643_v1 = vor.u32 %v8294_v63, %v7642_v17  ;;  %4721 = vmatmul.bf16.vlgmr.msrb.gmra.mxu0 %v8643_v55  ;;  %v6639_v22 = vor.u32 %v8040_v26, %v6636_v29  ;;  %v8188_v17 = vld [vmem:[#allocation7 + $0x4a4] sm:$0xf]  ;;  %v7228_v63 = vld [vmem:[#allocation7 + $0x4b0] sm:$0xf0]  ;;  %v8270_v26 = vld [vmem:[#allocation7 + $0x72c] sm:$0xf0] }
 0x26f   :  { %4733 = vmatpush.bf16.msrb.mxu1 %v7275_v9  ;;  %v8645_v47 = vpop.f32.mrf.mxu1  ;;  %v7626_v9 = vld [vmem:[#allocation7 + $0x7c0] sm:$0xf]  ;;  %v8180_v29 = vld [vmem:[#allocation7 + $0x464] sm:$0xf] }
 0x270   :  { %4752 = vmatpush.bf16.msrb.mxu3 %v7643_v1  ;;  %v7627_v21 = vor.u32 %v8290_v10, %v7626_v9  ;;  %v2945_v1 = vadd.f32 %v8641_v38, %v1384_v46  ;;  %v6924_v10 = vld [vmem:[#allocation7 + $0x250] sm:$0xf0] }
 0x271   :  { %4766 = vmatpush.bf16.msra.mxu0 %v6735_v52  ;;  %4744 = vmatpush.bf16.msrb.mxu2 %v7435_v56  ;;  %v2946_v3 = vpop.f32.mrf.mxu0  ;;  %v6815_v52 = vor.u32 %v8084_v60, %v6812_v16  ;;  %v8076_v56 = vld [vmem:[#allocation7 + $0x124] sm:$0xf]  ;;  %v6940_v16 = vld [vmem:[#allocation7 + $0x270] sm:$0xf0]  ;;  %v6927_v11 = vor.u32 %v8112_v6, %v6924_v10 }
 0x272   :  { %v6783_v50 = vor.u32 %v8076_v56, %v6780_v37  ;;  %v8116_v60 = vld [vmem:[#allocation7 + $0x264] sm:$0xf]  ;;  %v2958_v19 = vadd.f32 %v8645_v47, %v2945_v1  ;;  %v7231_v3 = vor.u32 %v8188_v17, %v7228_v63  ;;  %v7116_v17 = vld [vmem:[#allocation7 + $0x3d0] sm:$0xf0] }
 0x273   :  { %4778 = vmatpush.bf16.msra.mxu1 %v6879_v25  ;;  %v6988_v25 = vld [vmem:[#allocation7 + $0x2d0] sm:$0xf0]  ;;  %v6943_v2 = vor.u32 %v8116_v60, %v6940_v16  ;;  %v8176_v56 = vld [vmem:[#allocation7 + $0x444] sm:$0xf] }
 0x274   :  { %v6991_v27 = vor.u32 %v8128_v12, %v6988_v25  ;;  %4753 = vmatpush.bf16.msrb.mxu3 %v7627_v21  ;;  %v7546_v25 = vld [vmem:[#allocation7 + $0x720] sm:$0xf]  ;;  %v7164_v60 = vld [vmem:[#allocation7 + $0x430] sm:$0xf0]  ;;  %v8220_v63 = vld [vmem:[#allocation7 + $0x5a4] sm:$0xf] }
 0x275   :  { %4767 = vmatpush.bf16.msra.mxu0 %v6719_v30  ;;  %4745 = vmatpush.bf16.msrb.mxu2 %v7419_v5  ;;  %v8196_v30 = vld [vmem:[#allocation7 + $0x4e4] sm:$0xf]  ;;  %v7100_v6 = vld [vmem:[#allocation7 + $0x3b0] sm:$0xf0] }
 0x276   :  { %v7263_v58 = vor.u32 %v8196_v30, %v7260_v31  ;;  %v8072_v5 = vld [vmem:[#allocation7 + $0x104] sm:$0xf]  ;;  %v7196_v30 = vld [vmem:[#allocation7 + $0x470] sm:$0xf0]  ;;  %v7547_v31 = vor.u32 %v8270_v26, %v7546_v25 }
 0x277   :  { %4779 = vmatpush.bf16.msra.mxu1 %v6863_v48  ;;  %v2959_v32 = vpop.f32.mrf.mxu1  ;;  %v8124_v48 = vld [vmem:[#allocation7 + $0x2a4] sm:$0xf]  ;;  %v6767_v43 = vor.u32 %v8072_v5, %v6764_v34  ;;  %v7372_v5 = vld [vmem:[#allocation7 + $0x5d0] sm:$0xf0] }
 0x278   :  { %v6975_v13 = vor.u32 %v8124_v48, %v6972_v18  ;;  %4754 = vmatpush.bf16.msrb.mxu3 %v7611_v36  ;;  %v6908_v32 = vld [vmem:[#allocation7 + $0x230] sm:$0xf0]  ;;  %v7199_v36 = vor.u32 %v8180_v29, %v7196_v30  ;;  %v7530_v18 = vld [vmem:[#allocation7 + $0x700] sm:$0xf]  ;;  %v8152_v25 = vld [vmem:[#allocation7 + $0x384] sm:$0xf] }
 0x279   :  { %4768 = vmatpush.bf16.msra.mxu0 %v6703_v23  ;;  %4746 = vmatpush.bf16.msrb.mxu2 %v7403_v61  ;;  %v8192_v23 = vld [vmem:[#allocation7 + $0x4c4] sm:$0xf]  ;;  %v7340_v10 = vld [vmem:[#allocation7 + $0x590] sm:$0xf0] }
 0x27a   :  { %v7247_v54 = vor.u32 %v8192_v23, %v7244_v39  ;;  %v7391_v23 = vor.u32 %v8228_v57, %v7388_v35  ;;  %v7180_v39 = vld [vmem:[#allocation7 + $0x450] sm:$0xf0]  ;;  %v6722_v57 = vld [vmem:[#allocation7 + $0xa8] sm:$0xf]  ;;  %v8148_v35 = vld [vmem:[#allocation7 + $0x364] sm:$0xf] }
 0x27b   :  { %4780 = vmatpush.bf16.msra.mxu1 %v6847_v41  ;;  %v8120_v41 = vld [vmem:[#allocation7 + $0x284] sm:$0xf]  ;;  %v7084_v26 = vld [vmem:[#allocation7 + $0x390] sm:$0xf0] }
 0x27c   :  { %4755 = vmatpush.bf16.msrb.mxu3 %v7595_v42  ;;  %v8164_v42 = vld [vmem:[#allocation7 + $0x3e4] sm:$0xf]  ;;  %v7324_v29 = vld [vmem:[#allocation7 + $0x570] sm:$0xf0]  ;;  %v7087_v30 = vor.u32 %v8152_v25, %v7084_v26  ;;  %v8099_v25 = vld [vmem:[#allocation7 + $0x1d4] sm:$0xf0] }
 0x27d   :  { %4769 = vmatpush.bf16.msra.mxu0 %v6687_v14  ;;  %4791 = vmatpush.bf16.msra.mxu2 %v7007_v4  ;;  %v6959_v14 = vor.u32 %v8120_v41, %v6956_v45  ;;  %v7562_v4 = vld [vmem:[#allocation7 + $0x740] sm:$0xf]  ;;  %v7132_v45 = vld [vmem:[#allocation7 + $0x3f0] sm:$0xf0] }
 0x27f   :  { %4781 = vmatpush.bf16.msra.mxu1 %v6831_v49  ;;  %v8278_v49 = vld [vmem:[#allocation7 + $0x76c] sm:$0xf0]  ;;  %v2970_v61 = vpop.f32.mrf.mxu2 }
 0x280   :  { %v7579_v0 = vor.u32 %v8278_v49, %v7578_v44  ;;  %v2971_v12 = vadd.f32 %v2970_v61, %v2958_v19  ;;  %v8172_v44 = vld [vmem:[#allocation7 + $0x424] sm:$0xf]  ;;  %v7148_v19 = vld [vmem:[#allocation7 + $0x410] sm:$0xf0] }
 0x281   :  { %4770 = vmatpush.bf16.msra.mxu0 %v6671_v53  ;;  %4792 = vmatpush.bf16.msra.mxu2 %v6991_v27  ;;  %v8274_v53 = vld [vmem:[#allocation7 + $0x74c] sm:$0xf0]  ;;  %v8108_v27 = vld [vmem:[#allocation7 + $0x224] sm:$0xf]  ;;  %v7167_v1 = vor.u32 %v8172_v44, %v7164_v60  ;;  %v6690_v44 = vld [vmem:[#allocation7 + $0x68] sm:$0xf] }
 0x282   :  { %4756 = vmatpush.bf16.msrb.mxu3 %v7579_v0  ;;  %v7563_v9 = vor.u32 %v8274_v53, %v7562_v4  ;;  %v6911_v48 = vor.u32 %v8108_v27, %v6908_v32  ;;  %v8160_v61 = vld [vmem:[#allocation7 + $0x3c4] sm:$0xf]  ;;  %v7356_v0 = vld [vmem:[#allocation7 + $0x5b0] sm:$0xf0]  ;;  %v6754_v4 = vld [vmem:[#allocation7 + $0xe8] sm:$0xf] }
 0x283   :  { %4782 = vmatpush.bf16.msra.mxu1 %v6815_v52  ;;  %v7212_v52 = vld [vmem:[#allocation7 + $0x490] sm:$0xf0]  ;;  %v7119_v16 = vor.u32 %v8160_v61, %v7116_v17  ;;  %v8156_v53 = vld [vmem:[#allocation7 + $0x3a4] sm:$0xf]  ;;  %v8067_v27 = vld [vmem:[#allocation7 + $0xd4] sm:$0xf0] }
 0x284   :  { %v7215_v47 = vor.u32 %v8184_v8, %v7212_v52  ;;  %v8071_v52 = vld [vmem:[#allocation7 + $0xf4] sm:$0xf0]  ;;  %v7036_v60 = vld [vmem:[#allocation7 + $0x330] sm:$0xf0] }
 0x285   :  { %4771 = vmatpush.bf16.msra.mxu0 %v6655_v7  ;;  %4793 = vmatpush.bf16.msra.mxu2 %v6975_v13  ;;  %v2983_v38 = vpop.f32.mrf.mxu3  ;;  %v8266_v13 = vld [vmem:[#allocation7 + $0x70c] sm:$0xf0] }
 0x286   :  { %4757 = vmatpush.bf16.msrb.mxu3 %v7563_v9  ;;  %v2984_v20 = vadd.f32 %v2983_v38, %v2971_v12  ;;  %v8216_v9 = vld [vmem:[#allocation7 + $0x584] sm:$0xf]  ;;  %v7103_v12 = vor.u32 %v8156_v53, %v7100_v6  ;;  %v6755_v38 = vor.u32 %v8071_v52, %v6754_v4  ;;  %v7516_v53 = vld [vmem:[#allocation7 + $0x6f0] sm:$0xf0] }
 0x287   :  { %4783 = vmatpush.bf16.msra.mxu1 %v6799_v33  ;;  %v2972_v7 = vpop.f32.mrf.mxu2  ;;  %v8260_v4 = vld [vmem:[#allocation7 + $0x6e4] sm:$0xf] }
 0x288   :  { %v3096_v33 = vmul.f32 0.2, %v2984_v20  ;;  %v8212_v7 = vld [vmem:[#allocation7 + $0x564] sm:$0xf] }
 0x289   :  { %4772 = vmatpush.bf16.msra.mxu0 %v6639_v22  ;;  %4794 = vmatpush.bf16.msra.mxu2 %v6959_v14  ;;  %v8652_v21 = vpop.f32.mrf.mxu0  ;;  %v8104_v22 = vld [vmem:[#allocation7 + $0x204] sm:$0xf]  ;;  %v7135_v14 = vor.u32 %v8164_v42, %v7132_v45  ;;  %v7292_v45 = vld [vmem:[#allocation7 + $0x530] sm:$0xf0] }
 0x28a   :  { %4758 = vmatpush.bf16.msrb.mxu3 %v7547_v31  ;;  %v3104_v37 = vmax.f32 %v2984_v20, %v3096_v33  ;;  %v6895_v34 = vor.u32 %v8104_v22, %v6892_v15  ;;  %v7343_v20 = vor.u32 %v8216_v9, %v7340_v10  ;;  %v1385_v31 = vperm.slane %v8636_v59, 6  ;;  %v7052_v15 = vld [vmem:[#allocation7 + $0x350] sm:$0xf0]  ;;  %v8204_v42 = vld [vmem:[#allocation7 + $0x524] sm:$0xf] }
 0x28b   :  { %4784 = vmatpush.bf16.msra.mxu1 %v6783_v50  ;;  %v7531_v50 = vor.u32 %v8266_v13, %v7530_v18  ;;  %v7327_v33 = vor.u32 %v8212_v7, %v7324_v29  ;;  %v8136_v52 = vld [vmem:[#allocation7 + $0x304] sm:$0xf]  ;;  %v7020_v9 = vld [vmem:[#allocation7 + $0x310] sm:$0xf0] }
 0x28c   :  { %4773 = vmatmul.bf16.vlgmr.msra.gmra.mxu0 %v8611_v28  ;;  %v8654_v40 = vpack.c.bf16 %v3104_v37, %v3104_v37  ;;  %v8208_v37 = vld [vmem:[#allocation7 + $0x544] sm:$0xf]  ;;  %v2997_v22 = vadd.f32 %v8652_v21, %v1385_v31  ;;  %v7023_v26 = vor.u32 %v8136_v52, %v7020_v9  ;;  %v8083_v52 = vld [vmem:[#allocation7 + $0x154] sm:$0xf0] }
 0x28d   :  { %4817 = vmatpush.bf16.msrb.mxu0 %v7263_v58  ;;  %4795 = vmatpush.bf16.msra.mxu2 %v6943_v2  ;;  %v8224_v58 = vld [vmem:[#allocation7 + $0x5c4] sm:$0xf]  ;;  %v2985_v46 = vpop.f32.mrf.mxu3 }
 0x28e   :  { %4759 = vmatpush.bf16.msrb.mxu3 %v7531_v50  ;;  %4734 = vmatmul.bf16.vlgmr.msrb.gmra.mxu1 %v8654_v40  ;;  %v7375_v49 = vor.u32 %v8224_v58, %v7372_v5  ;;  %v8168_v2 = vld [vmem:[#allocation7 + $0x404] sm:$0xf]  ;;  %v6706_v58 = vld [vmem:[#allocation7 + $0x88] sm:$0xf] }
 0x28f   :  { %4785 = vmatpush.bf16.msra.mxu1 %v6767_v43  ;;  %v8656_v41 = vpop.f32.mrf.mxu1  ;;  %v7183_v43 = vor.u32 %v8176_v56, %v7180_v39  ;;  %v8063_v56 = vld [vmem:[#allocation7 + $0xb4] sm:$0xf0]  ;;  %v8144_v50 = vld [vmem:[#allocation7 + $0x344] sm:$0xf] }
 0x290   :  { %v3010_v5 = vadd.f32 %v8656_v41, %v2997_v22  ;;  %v7055_v46 = vor.u32 %v8144_v50, %v7052_v15  ;;  %v7276_v41 = vld [vmem:[#allocation7 + $0x510] sm:$0xf0]  ;;  %v8256_v29 = vld [vmem:[#allocation7 + $0x6c4] sm:$0xf]  ;;  %v7266_v50 = vld [vmem:[#allocation7 + $0x4e8] sm:$0xf] }
 0x291   :  { %4818 = vmatpush.bf16.msrb.mxu0 %v7247_v54  ;;  %4796 = vmatpush.bf16.msra.mxu2 %v6927_v11  ;;  %v2998_v54 = vpop.f32.mrf.mxu0  ;;  %v7151_v11 = vor.u32 %v8168_v2, %v7148_v19  ;;  %v6882_v2 = vld [vmem:[#allocation7 + $0x1e8] sm:$0xf]  ;;  %v8103_v19 = vld [vmem:[#allocation7 + $0x1f4] sm:$0xf0] }
 0x292   :  { %4804 = vmatpush.bf16.msra.mxu3 %v7135_v14 }
 0x293   :  { %4830 = vmatpush.bf16.msrb.mxu1 %v7391_v23  ;;  %v6723_v23 = vor.u32 %v8063_v56, %v6722_v57 }
 0x295   :  { %4819 = vmatpush.bf16.msrb.mxu0 %v7231_v3  ;;  %4797 = vmatpush.bf16.msra.mxu2 %v6911_v48  ;;  %v7359_v3 = vor.u32 %v8220_v63, %v7356_v0  ;;  %v7068_v48 = vld [vmem:[#allocation7 + $0x370] sm:$0xf0]  ;;  %v8055_v63 = vld [vmem:[#allocation7 + $0x74] sm:$0xf0]  ;;  %v8200_v0 = vld [vmem:[#allocation7 + $0x504] sm:$0xf] }
 0x296   :  { %4805 = vmatpush.bf16.msra.mxu3 %v7119_v16  ;;  %v7071_v18 = vor.u32 %v8148_v35, %v7068_v48  ;;  %v6691_v6 = vor.u32 %v8055_v63, %v6690_v44  ;;  %v6658_v35 = vld [vmem:[#allocation7 + $0x28] sm:$0xf]  ;;  %v8047_v48 = vld [vmem:[#allocation7 + $0x34] sm:$0xf0]  ;;  %v7452_v63 = vld [vmem:[#allocation7 + $0x670] sm:$0xf0] }
 0x297   :  { %4831 = vmatpush.bf16.msrb.mxu1 %v7375_v49  ;;  %v3011_v8 = vpop.f32.mrf.mxu1  ;;  %v8140_v49 = vld [vmem:[#allocation7 + $0x324] sm:$0xf]  ;;  %v6659_v22 = vor.u32 %v8047_v48, %v6658_v35 }
 0x298   :  { %v7039_v16 = vor.u32 %v8140_v49, %v7036_v60  ;;  %v7279_v8 = vor.u32 %v8200_v0, %v7276_v41  ;;  %v7250_v49 = vld [vmem:[#allocation7 + $0x4c8] sm:$0xf]  ;;  %v8195_v60 = vld [vmem:[#allocation7 + $0x4d4] sm:$0xf0] }
 0x299   :  { %4820 = vmatpush.bf16.msrb.mxu0 %v7215_v47  ;;  %4798 = vmatpush.bf16.msra.mxu2 %v6895_v34  ;;  %v6738_v47 = vld [vmem:[#allocation7 + $0xc8] sm:$0xf]  ;;  %v8059_v34 = vld [vmem:[#allocation7 + $0x94] sm:$0xf0] }
 0x29a   :  { %4806 = vmatpush.bf16.msra.mxu3 %v7103_v12  ;;  %v6739_v32 = vor.u32 %v8067_v27, %v6738_v47  ;;  %v6707_v21 = vor.u32 %v8059_v34, %v6706_v58  ;;  %v6883_v12 = vor.u32 %v8103_v19, %v6882_v2  ;;  %v6866_v47 = vld [vmem:[#allocation7 + $0x1c8] sm:$0xf]  ;;  %v8043_v58 = vld [vmem:[#allocation7 + $0x14] sm:$0xf0] }
 0x29b   :  { %4832 = vmatpush.bf16.msrb.mxu1 %v7359_v3  ;;  %v6867_v57 = vor.u32 %v8099_v25, %v6866_v47  ;;  %v6834_v34 = vld [vmem:[#allocation7 + $0x188] sm:$0xf]  ;;  %v8087_v41 = vld [vmem:[#allocation7 + $0x174] sm:$0xf0]  ;;  %v8236_v25 = vld [vmem:[#allocation7 + $0x624] sm:$0xf] }
 0x29c   :  { %v6818_v0 = vld [vmem:[#allocation7 + $0x168] sm:$0xf]  ;;  %v8187_v47 = vld [vmem:[#allocation7 + $0x494] sm:$0xf0] }
 0x29d   :  { %4821 = vmatpush.bf16.msrb.mxu0 %v7199_v36  ;;  %v7308_v36 = vld [vmem:[#allocation7 + $0x550] sm:$0xf0]  ;;  %v6819_v19 = vor.u32 %v8087_v41, %v6818_v0  ;;  %v8288_v0 = vld [vmem:[#allocation7 + $0x7c4] sm:$0xf]  ;;  %v6994_v41 = vld [vmem:[#allocation7 + $0x2c8] sm:$0xf] }
 0x29e   :  { %4807 = vmatpush.bf16.msra.mxu3 %v7087_v30  ;;  %4786 = vmatmul.bf16.vlgmr.msra.gmra.mxu1 %v8619_v51  ;;  %v7311_v39 = vor.u32 %v8208_v37, %v7308_v36  ;;  %v7500_v30 = vld [vmem:[#allocation7 + $0x6d0] sm:$0xf0]  ;;  %v6850_v37 = vld [vmem:[#allocation7 + $0x1a8] sm:$0xf]  ;;  %v8095_v36 = vld [vmem:[#allocation7 + $0x1b4] sm:$0xf0] }
 0x29f   :  { %4833 = vmatpush.bf16.msrb.mxu1 %v7343_v20  ;;  %v3022_v13 = vpop.f32.mrf.mxu2  ;;  %v7519_v20 = vor.u32 %v8260_v4, %v7516_v53  ;;  %v7503_v56 = vor.u32 %v8256_v29, %v7500_v30  ;;  %v8191_v4 = vld [vmem:[#allocation7 + $0x4b4] sm:$0xf0]  ;;  %v8240_v53 = vld [vmem:[#allocation7 + $0x644] sm:$0xf]  ;;  %v7420_v29 = vld [vmem:[#allocation7 + $0x630] sm:$0xf0] }
 0x2a0   :  { %v3023_v14 = vadd.f32 %v3022_v13, %v3010_v5  ;;  %v7484_v13 = vld [vmem:[#allocation7 + $0x6b0] sm:$0xf0]  ;;  %v8199_v5 = vld [vmem:[#allocation7 + $0x4f4] sm:$0xf0]  ;;  %v7423_v48 = vor.u32 %v8236_v25, %v7420_v29 }
 0x2a1   :  { %4822 = vmatpush.bf16.msrb.mxu0 %v7183_v43  ;;  %v7295_v43 = vor.u32 %v8204_v42, %v7292_v45  ;;  %v8091_v42 = vld [vmem:[#allocation7 + $0x194] sm:$0xf0]  ;;  %v7612_v29 = vld [vmem:[#allocation7 + $0x7b0] sm:$0xf0] }
 0x2a2   :  { %4808 = vmatpush.bf16.msra.mxu3 %v7071_v18  ;;  %v8252_v18 = vld [vmem:[#allocation7 + $0x6a4] sm:$0xf]  ;;  %v8079_v30 = vld [vmem:[#allocation7 + $0x134] sm:$0xf0] }
 0x2a3   :  { %4834 = vmatpush.bf16.msrb.mxu1 %v7327_v33  ;;  %v7487_v15 = vor.u32 %v8252_v18, %v7484_v13  ;;  %v7404_v18 = vld [vmem:[#allocation7 + $0x610] sm:$0xf0]  ;;  %v8127_v25 = vld [vmem:[#allocation7 + $0x2b4] sm:$0xf0] }
 0x2a5   :  { %4823 = vmatpush.bf16.msrb.mxu0 %v7167_v1  ;;  %v3035_v54 = vpop.f32.mrf.mxu3 }
 0x2a6   :  { %v3036_v61 = vadd.f32 %v3035_v54, %v3023_v14  ;;  %4809 = vmatpush.bf16.msra.mxu3 %v7055_v46  ;;  %v8248_v46 = vld [vmem:[#allocation7 + $0x684] sm:$0xf]  ;;  %v7468_v14 = vld [vmem:[#allocation7 + $0x690] sm:$0xf0] }
 0x2a7   :  { %4835 = vmatpush.bf16.msrb.mxu1 %v7311_v39  ;;  %v3024_v1 = vpop.f32.mrf.mxu2  ;;  %v6642_v39 = vld [vmem:[#allocation7 + $0x8] sm:$0xf]  ;;  %v7471_v44 = vor.u32 %v8248_v46, %v7468_v14  ;;  %v8231_v46 = vld [vmem:[#allocation7 + $0x5f4] sm:$0xf0] }
 0x2a8   :  { %v3097_v3 = vmul.f32 0.2, %v3036_v61  ;;  %v6643_v54 = vor.u32 %v8043_v58, %v6642_v39  ;;  %v7251_v1 = vor.u32 %v8195_v60, %v7250_v49  ;;  %v8292_v39 = vld [vmem:[#allocation7 + $0x7e4] sm:$0xf] }
 0x2a9   :  { %4824 = vmatpush.bf16.msrb.mxu0 %v7151_v11  ;;  %v8664_v17 = vpop.f32.mrf.mxu0  ;;  %v6674_v11 = vld [vmem:[#allocation7 + $0x48] sm:$0xf] }
 0x2aa   :  { %v3105_v10 = vmax.f32 %v3036_v61, %v3097_v3  ;;  %4810 = vmatpush.bf16.msra.mxu3 %v7039_v16  ;;  %v8244_v61 = vld [vmem:[#allocation7 + $0x664] sm:$0xf]  ;;  %v1386_v16 = vperm.slane %v8636_v59, 7  ;;  %v7234_v3 = vld [vmem:[#allocation7 + $0x4a8] sm:$0xf] }
 0x2ab   :  { %4836 = vmatpush.bf16.msrb.mxu1 %v7295_v43  ;;  %v6835_v43 = vor.u32 %v8091_v42, %v6834_v34  ;;  %v7455_v2 = vor.u32 %v8244_v61, %v7452_v63  ;;  %v7235_v59 = vor.u32 %v8191_v4, %v7234_v3  ;;  %v7628_v3 = vld [vmem:[#allocation7 + $0x7d0] sm:$0xf0]  ;;  %v7378_v4 = vld [vmem:[#allocation7 + $0x5c8] sm:$0xf] }
 0x2ac   :  { %4825 = vmatmul.bf16.vlgmr.msrb.gmra.mxu0 %v8643_v55  ;;  %v8666_v27 = vpack.c.bf16 %v3105_v10, %v3105_v10  ;;  %v3049_v10 = vadd.f32 %v8664_v17, %v1386_v16  ;;  %v6786_v17 = vld [vmem:[#allocation7 + $0x128] sm:$0xf]  ;;  %v8131_v16 = vld [vmem:[#allocation7 + $0x2d4] sm:$0xf0] }
 0x2ad   :  { %4869 = vmatpush.bf16.msra.mxu0 %v6755_v38  ;;  %v8051_v38 = vld [vmem:[#allocation7 + $0x54] sm:$0xf0]  ;;  %v3037_v31 = vpop.f32.mrf.mxu3 }
 0x2ae   :  { %4747 = vmatmul.bf16.vlgmr.msrb.gmra.mxu2 %v8666_v27  ;;  %4811 = vmatpush.bf16.msra.mxu3 %v7023_v26 }
 0x2af   :  { %v8668_v7 = vpop.f32.mrf.mxu1  ;;  %4837 = vmatpush.bf16.msrb.mxu1 %v7279_v8  ;;  %4843 = vmatpush.bf16.msrb.mxu2 %v7519_v20  ;;  %v6802_v8 = vld [vmem:[#allocation7 + $0x148] sm:$0xf] }
 0x2b0   :  { %v7218_v20 = vld [vmem:[#allocation7 + $0x488] sm:$0xf]  ;;  %v3062_v26 = vadd.f32 %v8668_v7, %v3049_v10 }
 0x2b1   :  { %4870 = vmatpush.bf16.msra.mxu0 %v6739_v32  ;;  %v6675_v32 = vor.u32 %v8051_v38, %v6674_v11  ;;  %v3050_v33 = vpop.f32.mrf.mxu0  ;;  %v6803_v38 = vor.u32 %v8083_v52, %v6802_v8  ;;  %v6770_v7 = vld [vmem:[#allocation7 + $0x108] sm:$0xf] }
 0x2b2   :  { %4838 = vmatmul.bf16.vlgmr.msrb.gmra.mxu1 %v8654_v40  ;;  %v7219_v33 = vor.u32 %v8187_v47, %v7218_v20  ;;  %v7170_v52 = vld [vmem:[#allocation7 + $0x428] sm:$0xf]  ;;  %v8284_v20 = vld [vmem:[#allocation7 + $0x7a4] sm:$0xf] }
 0x2b3   :  { %4882 = vmatpush.bf16.msra.mxu1 %v6883_v12  ;;  %4844 = vmatpush.bf16.msrb.mxu2 %v7503_v56  ;;  %v8679_v12 = vld [vmem:[%s8752_s8] sm:$0xf]  ;;  %v6787_v56 = vor.u32 %v8079_v30, %v6786_v17  ;;  %v6978_v47 = vld [vmem:[#allocation7 + $0x2a8] sm:$0xf]  ;;  %v8223_v30 = vld [vmem:[#allocation7 + $0x5b4] sm:$0xf0] }
 0x2b4   :  { %v7362_v17 = vld [vmem:[#allocation7 + $0x5a8] sm:$0xf] }
 0x2b5   :  { %4871 = vmatpush.bf16.msra.mxu0 %v6723_v23  ;;  %v6851_v23 = vor.u32 %v8095_v36, %v6850_v37  ;;  %v8183_v37 = vld [vmem:[#allocation7 + $0x474] sm:$0xf0]  ;;  %v8232_v36 = vld [vmem:[#allocation7 + $0x604] sm:$0xf] }
 0x2b6   :  { %v7407_v14 = vor.u32 %v8232_v36, %v7404_v18  ;;  %v8123_v36 = vld [vmem:[#allocation7 + $0x294] sm:$0xf0] }
 0x2b7   :  { %4883 = vmatpush.bf16.msra.mxu1 %v6867_v57  ;;  %v3063_v45 = vpop.f32.mrf.mxu1  ;;  %4845 = vmatpush.bf16.msrb.mxu2 %v7487_v15  ;;  %v7202_v57 = vld [vmem:[#allocation7 + $0x468] sm:$0xf] }
 0x2b8   :  { %v7010_v15 = vld [vmem:[#allocation7 + $0x2e8] sm:$0xf]  ;;  %v7203_v42 = vor.u32 %v8183_v37, %v7202_v57  ;;  %v8069_v57 = vld [vmem:[#allocation7 + $0xec] sm:$0xf] }
 0x2b9   :  { %4872 = vmatpush.bf16.msra.mxu0 %v6707_v21  ;;  %v7267_v21 = vor.u32 %v8199_v5, %v7266_v50  ;;  %v7644_v50 = vld [vmem:[#allocation7 + $0x7f0] sm:$0xf0]  ;;  %v8135_v5 = vld [vmem:[#allocation7 + $0x2f4] sm:$0xf0]  ;;  %v7394_v45 = vld [vmem:[#allocation7 + $0x5e8] sm:$0xf] }
 0x2ba   :  { %v7011_v49 = vor.u32 %v8135_v5, %v7010_v15  ;;  %v7647_v61 = vor.u32 %v8292_v39, %v7644_v50  ;;  %v7395_v63 = vor.u32 %v8231_v46, %v7394_v45  ;;  %v6962_v37 = vld [vmem:[#allocation7 + $0x288] sm:$0xf]  ;;  %v8065_v15 = vld [vmem:[#allocation7 + $0xcc] sm:$0xf]  ;;  %v6740_v5 = vld [vmem:[#allocation7 + $0xd8] sm:$0xf0] }
 0x2bb   :  { %4884 = vmatpush.bf16.msra.mxu1 %v6851_v23  ;;  %4846 = vmatpush.bf16.msrb.mxu2 %v7471_v44  ;;  %v8075_v23 = vld [vmem:[#allocation7 + $0x114] sm:$0xf0]  ;;  %v7346_v39 = vld [vmem:[#allocation7 + $0x588] sm:$0xf]  ;;  %v6963_v50 = vor.u32 %v8123_v36, %v6962_v37 }
 0x2bc   :  { %v8119_v45 = vld [vmem:[#allocation7 + $0x274] sm:$0xf0]  ;;  %v6898_v37 = vld [vmem:[#allocation7 + $0x208] sm:$0xf] }
 0x2bd   :  { %4873 = vmatpush.bf16.msra.mxu0 %v6691_v6  ;;  %v7436_v6 = vld [vmem:[#allocation7 + $0x650] sm:$0xf0]  ;;  %v8107_v36 = vld [vmem:[#allocation7 + $0x214] sm:$0xf0] }
 0x2be   :  { %4799 = vmatmul.bf16.vlgmr.msra.gmra.mxu2 %v8627_v62  ;;  %v7439_v11 = vor.u32 %v8240_v53, %v7436_v6  ;;  %v8227_v53 = vld [vmem:[#allocation7 + $0x5d4] sm:$0xf0] }
 0x2bf   :  { %4885 = vmatpush.bf16.msra.mxu1 %v6835_v43  ;;  %v3074_v9 = vpop.f32.mrf.mxu2  ;;  %4847 = vmatpush.bf16.msrb.mxu2 %v7455_v2  ;;  %v8179_v43 = vld [vmem:[#allocation7 + $0x454] sm:$0xf0] }
 0x2c0   :  { %v3075_v31 = vadd.f32 %v3074_v9, %v3062_v26  ;;  %v8175_v9 = vld [vmem:[#allocation7 + $0x434] sm:$0xf0] }
 0x2c1   :  { %4874 = vmatpush.bf16.msra.mxu0 %v6675_v32  ;;  %v3373_v32 = vperm.slane %v8679_v12, 0  ;;  %v7171_v26 = vor.u32 %v8175_v9, %v7170_v52 }
 0x2c3   :  { %4886 = vmatpush.bf16.msra.mxu1 %v6819_v19  ;;  %4848 = vmatpush.bf16.msrb.mxu2 %v7439_v11  ;;  %v7631_v11 = vor.u32 %v8288_v0, %v7628_v3  ;;  %v6930_v0 = vld [vmem:[#allocation7 + $0x248] sm:$0xf] }
 0x2c5   :  { %4875 = vmatpush.bf16.msra.mxu0 %v6659_v22  ;;  %v3087_v35 = vpop.f32.mrf.mxu3 }
 0x2c6   :  { %v3088_v13 = vadd.f32 %v3087_v35, %v3075_v31  ;;  %v7154_v31 = vld [vmem:[#allocation7 + $0x408] sm:$0xf]  ;;  %v6756_v35 = vld [vmem:[#allocation7 + $0xf8] sm:$0xf0] }
 0x2c7   :  { %4887 = vmatpush.bf16.msra.mxu1 %v6803_v38  ;;  %v3076_v58 = vpop.f32.mrf.mxu2  ;;  %4849 = vmatpush.bf16.msrb.mxu2 %v7423_v48  ;;  %v7379_v38 = vor.u32 %v8227_v53, %v7378_v4  ;;  %v7615_v48 = vor.u32 %v8284_v20, %v7612_v29  ;;  %v7314_v53 = vld [vmem:[#allocation7 + $0x548] sm:$0xf]  ;;  %v8111_v20 = vld [vmem:[#allocation7 + $0x234] sm:$0xf0] }
 0x2c8   :  { %v3098_v34 = vmul.f32 0.2, %v3088_v13  ;;  %v8219_v58 = vld [vmem:[#allocation7 + $0x594] sm:$0xf0] }
 0x2c9   :  { %4876 = vmatpush.bf16.msra.mxu0 %v6643_v54  ;;  %v4670_v22 = vpop.f32.mrf.mxu0  ;;  %v6771_v54 = vor.u32 %v8075_v23, %v6770_v7  ;;  %v7596_v7 = vld [vmem:[#allocation7 + $0x790] sm:$0xf0]  ;;  %v6759_v23 = vor.u32 %v8069_v57, %v6756_v35  ;;  %v7347_v46 = vor.u32 %v8219_v58, %v7346_v39  ;;  %v8264_v57 = vld [vmem:[#allocation7 + $0x704] sm:$0xf] }
 0x2ca   :  { %v3106_v44 = vmax.f32 %v3088_v13, %v3098_v34  ;;  %v4671_v60 = vadd.f32 %v4670_v22, %v3373_v32  ;;  %v8171_v32 = vld [vmem:[#allocation7 + $0x414] sm:$0xf0]  ;;  %v8280_v22 = vld [vmem:[#allocation7 + $0x784] sm:$0xf]  ;;  %v7532_v35 = vld [vmem:[#allocation7 + $0x710] sm:$0xf0] }
 0x2cb   :  { %4888 = vmatpush.bf16.msra.mxu1 %v6787_v56  ;;  %4850 = vmatpush.bf16.msrb.mxu2 %v7407_v14  ;;  %v7363_v56 = vor.u32 %v8223_v30, %v7362_v17  ;;  %v7155_v13 = vor.u32 %v8171_v32, %v7154_v31  ;;  %v7599_v34 = vor.u32 %v8280_v22, %v7596_v7  ;;  %v8276_v14 = vld [vmem:[#allocation7 + $0x764] sm:$0xf]  ;;  %v7298_v17 = vld [vmem:[#allocation7 + $0x528] sm:$0xf]  ;;  %v8207_v30 = vld [vmem:[#allocation7 + $0x534] sm:$0xf0] }
 0x2cc   :  { %4877 = vmatmul.bf16.vlgmr.msra.gmra.mxu0 %v8611_v28  ;;  %v8053_v31 = vld [vmem:[#allocation7 + $0x6c] sm:$0xf]  ;;  %v8203_v22 = vld [vmem:[#allocation7 + $0x514] sm:$0xf0]  ;;  %v7522_v7 = vld [vmem:[#allocation7 + $0x6e8] sm:$0xf] }
 0x2cd   :  { %4921 = vmatpush.bf16.msrb.mxu0 %v7267_v21  ;;  %v7186_v21 = vld [vmem:[#allocation7 + $0x448] sm:$0xf]  ;;  %v3089_v8 = vpop.f32.mrf.mxu3 }
 0x2ce   :  { %v7187_v19 = vor.u32 %v8179_v43, %v7186_v21  ;;  %4851 = vmatmul.bf16.vlgmr.msrb.gmra.mxu2 %v8666_v27  ;;  %v6743_v21 = vor.u32 %v8065_v15, %v6740_v5  ;;  %v7330_v43 = vld [vmem:[#allocation7 + $0x568] sm:$0xf]  ;;  %v8211_v8 = vld [vmem:[#allocation7 + $0x554] sm:$0xf0]  ;;  %v8101_v5 = vld [vmem:[#allocation7 + $0x1ec] sm:$0xf] }
 0x2cf   :  { %v4683_v2 = vpop.f32.mrf.mxu1  ;;  %4889 = vmatpush.bf16.msra.mxu1 %v6771_v54  ;;  %4895 = vmatpush.bf16.msra.mxu2 %v7011_v49  ;;  %v7580_v54 = vld [vmem:[#allocation7 + $0x770] sm:$0xf0]  ;;  %v8167_v15 = vld [vmem:[#allocation7 + $0x3f4] sm:$0xf0] }
 0x2d0   :  { %v8685_v6 = vadd.f32 %v4683_v2, %v4671_v60  ;;  %v8061_v60 = vld [vmem:[#allocation7 + $0xac] sm:$0xf]  ;;  %v8272_v2 = vld [vmem:[#allocation7 + $0x744] sm:$0xf] }
 0x2d1   :  { %4922 = vmatpush.bf16.msrb.mxu0 %v7251_v1  ;;  %v8683_v1 = vpack.c.bf16 %v3106_v44, %v3106_v44  ;;  %v4672_v10 = vpop.f32.mrf.mxu0  ;;  %v8215_v44 = vld [vmem:[#allocation7 + $0x574] sm:$0xf0] }
 0x2d2   :  { %4890 = vmatmul.bf16.vlgmr.msra.gmra.mxu1 %v8619_v51  ;;  %v8057_v10 = vld [vmem:[#allocation7 + $0x8c] sm:$0xf] }
 0x2d3   :  { %4760 = vmatmul.bf16.vlgmr.msrb.gmra.mxu3 %v8683_v1  ;;  %4934 = vmatpush.bf16.msrb.mxu1 %v7395_v63  ;;  %v7583_v63 = vor.u32 %v8276_v14, %v7580_v54  ;;  %v7535_v14 = vor.u32 %v8264_v57, %v7532_v35  ;;  %v7090_v35 = vld [vmem:[#allocation7 + $0x388] sm:$0xf] }
 0x2d4   :  { %4856 = vmatpush.bf16.msrb.mxu3 %v7647_v61  ;;  %v6724_v61 = vld [vmem:[#allocation7 + $0xb8] sm:$0xf0] }
 0x2d5   :  { %4923 = vmatpush.bf16.msrb.mxu0 %v7235_v59  ;;  %v6995_v59 = vor.u32 %v8131_v16, %v6994_v41  ;;  %v8115_v41 = vld [vmem:[#allocation7 + $0x254] sm:$0xf0]  ;;  %v7331_v16 = vor.u32 %v8215_v44, %v7330_v43  ;;  %v6727_v4 = vor.u32 %v8061_v60, %v6724_v61  ;;  %v7506_v44 = vld [vmem:[#allocation7 + $0x6c8] sm:$0xf] }
 0x2d6   :  { %v6931_v9 = vor.u32 %v8115_v41, %v6930_v0  ;;  %v8163_v0 = vld [vmem:[#allocation7 + $0x3d4] sm:$0xf0]  ;;  %v8097_v41 = vld [vmem:[#allocation7 + $0x1cc] sm:$0xf] }
 0x2d7   :  { %4896 = vmatpush.bf16.msra.mxu2 %v6995_v59  ;;  %4935 = vmatpush.bf16.msrb.mxu1 %v7379_v38  ;;  %v4685_v18 = vpop.f32.mrf.mxu1  ;;  %v6708_v59 = vld [vmem:[#allocation7 + $0x98] sm:$0xf0]  ;;  %v6914_v38 = vld [vmem:[#allocation7 + $0x228] sm:$0xf] }
 0x2d8   :  { %4857 = vmatpush.bf16.msrb.mxu3 %v7631_v11  ;;  %v6711_v29 = vor.u32 %v8057_v10, %v6708_v59  ;;  %v6915_v32 = vor.u32 %v8111_v20, %v6914_v38  ;;  %v7282_v18 = vld [vmem:[#allocation7 + $0x508] sm:$0xf]  ;;  %v8093_v38 = vld [vmem:[#allocation7 + $0x1ac] sm:$0xf]  ;;  %v6852_v20 = vld [vmem:[#allocation7 + $0x1b8] sm:$0xf0] }
 0x2d9   :  { %4924 = vmatpush.bf16.msrb.mxu0 %v7219_v33  ;;  %v6979_v33 = vor.u32 %v8127_v25, %v6978_v47  ;;  %v7315_v47 = vor.u32 %v8211_v8, %v7314_v53  ;;  %v8268_v25 = vld [vmem:[#allocation7 + $0x724] sm:$0xf]  ;;  %v7490_v8 = vld [vmem:[#allocation7 + $0x6a8] sm:$0xf] }
 0x2da   :  { %v7106_v59 = vld [vmem:[#allocation7 + $0x3a8] sm:$0xf] }
 0x2db   :  { %4897 = vmatpush.bf16.msra.mxu2 %v6979_v33  ;;  %4936 = vmatpush.bf16.msrb.mxu1 %v7363_v56  ;;  %v6692_v33 = vld [vmem:[#allocation7 + $0x78] sm:$0xf0] }
 0x2dc   :  { %4858 = vmatpush.bf16.msrb.mxu3 %v7615_v48  ;;  %v6695_v58 = vor.u32 %v8053_v31, %v6692_v33  ;;  %v7474_v31 = vld [vmem:[#allocation7 + $0x688] sm:$0xf] }
 0x2dd   :  { %4925 = vmatpush.bf16.msrb.mxu0 %v7203_v42  ;;  %v6946_v42 = vld [vmem:[#allocation7 + $0x268] sm:$0xf] }
 0x2de   :  { %v6947_v49 = vor.u32 %v8119_v45, %v6946_v42  ;;  %v6884_v42 = vld [vmem:[#allocation7 + $0x1f8] sm:$0xf0]  ;;  %v8049_v45 = vld [vmem:[#allocation7 + $0x4c] sm:$0xf] }
 0x2df   :  { %4898 = vmatpush.bf16.msra.mxu2 %v6963_v50  ;;  %4937 = vmatpush.bf16.msrb.mxu1 %v7347_v46  ;;  %v4696_v3 = vpop.f32.mrf.mxu2  ;;  %v7138_v50 = vld [vmem:[#allocation7 + $0x3e8] sm:$0xf]  ;;  %v6676_v46 = vld [vmem:[#allocation7 + $0x58] sm:$0xf0]  ;;  %v6887_v60 = vor.u32 %v8101_v5, %v6884_v42 }
 0x2e0   :  { %4859 = vmatpush.bf16.msrb.mxu3 %v7599_v34  ;;  %v4697_v52 = vadd.f32 %v4696_v3, %v8685_v6  ;;  %v6899_v34 = vor.u32 %v8107_v36, %v6898_v37  ;;  %v7139_v43 = vor.u32 %v8167_v15, %v7138_v50  ;;  %v6679_v61 = vor.u32 %v8049_v45, %v6676_v46  ;;  %v6660_v3 = vld [vmem:[#allocation7 + $0x38] sm:$0xf0]  ;;  %v8247_v50 = vld [vmem:[#allocation7 + $0x674] sm:$0xf0]  ;;  %v7074_v5 = vld [vmem:[#allocation7 + $0x368] sm:$0xf] }
 0x2e1   :  { %4926 = vmatpush.bf16.msrb.mxu0 %v7187_v19  ;;  %v7564_v19 = vld [vmem:[#allocation7 + $0x750] sm:$0xf0]  ;;  %v6820_v45 = vld [vmem:[#allocation7 + $0x178] sm:$0xf0] }
 0x2e2   :  { %v7567_v11 = vor.u32 %v8272_v2, %v7564_v19  ;;  %v6868_v2 = vld [vmem:[#allocation7 + $0x1d8] sm:$0xf0]  ;;  %v8045_v19 = vld [vmem:[#allocation7 + $0x2c] sm:$0xf] }
 0x2e3   :  { %4812 = vmatmul.bf16.vlgmr.msra.gmra.mxu3 %v8630_v24  ;;  %4899 = vmatpush.bf16.msra.mxu2 %v6947_v49  ;;  %v8259_v49 = vld [vmem:[#allocation7 + $0x6d4] sm:$0xf0]  ;;  %v6663_v10 = vor.u32 %v8045_v19, %v6660_v3  ;;  %v8185_v19 = vld [vmem:[#allocation7 + $0x48c] sm:$0xf]  ;;  %v7220_v3 = vld [vmem:[#allocation7 + $0x498] sm:$0xf0] }
 0x2e4   :  { %4860 = vmatpush.bf16.msrb.mxu3 %v7583_v63  ;;  %4938 = vmatpush.bf16.msrb.mxu1 %v7331_v16  ;;  %v7122_v63 = vld [vmem:[#allocation7 + $0x3c8] sm:$0xf] }
 0x2e5   :  { %4927 = vmatpush.bf16.msrb.mxu0 %v7171_v26  ;;  %v7548_v26 = vld [vmem:[#allocation7 + $0x730] sm:$0xf0]  ;;  %v4709_v6 = vpop.f32.mrf.mxu3  ;;  %v7123_v53 = vor.u32 %v8163_v0, %v7122_v63  ;;  %v8147_v63 = vld [vmem:[#allocation7 + $0x354] sm:$0xf0] }
 0x2e6   :  { %v8693_v48 = vadd.f32 %v4709_v6, %v4697_v52  ;;  %v7551_v56 = vor.u32 %v8268_v25, %v7548_v26  ;;  %v8255_v52 = vld [vmem:[#allocation7 + $0x6b4] sm:$0xf0]  ;;  %v6644_v25 = vld [vmem:[#allocation7 + $0x18] sm:$0xf0] }
 0x2e7   :  { %4900 = vmatpush.bf16.msra.mxu2 %v6931_v9  ;;  %v4698_v39 = vpop.f32.mrf.mxu2  ;;  %v6871_v9 = vor.u32 %v8097_v41, %v6868_v2  ;;  %v7491_v26 = vor.u32 %v8255_v52, %v7490_v8  ;;  %v8251_v6 = vld [vmem:[#allocation7 + $0x694] sm:$0xf0]  ;;  %v8081_v41 = vld [vmem:[#allocation7 + $0x14c] sm:$0xf]  ;;  %v7042_v52 = vld [vmem:[#allocation7 + $0x328] sm:$0xf] }
 0x2e8   :  { %4861 = vmatpush.bf16.msrb.mxu3 %v7567_v11  ;;  %4939 = vmatpush.bf16.msrb.mxu1 %v7315_v47  ;;  %v8159_v11 = vld [vmem:[#allocation7 + $0x3b4] sm:$0xf0]  ;;  %v8041_v47 = vld [vmem:[#allocation7 + $0xc] sm:$0xf] }
 0x2e9   :  { %4928 = vmatpush.bf16.msrb.mxu0 %v7155_v13  ;;  %v7299_v13 = vor.u32 %v8207_v30, %v7298_v17  ;;  %v7268_v17 = vld [vmem:[#allocation7 + $0x4f8] sm:$0xf0]  ;;  %v7107_v30 = vor.u32 %v8159_v11, %v7106_v59  ;;  %v6647_v57 = vor.u32 %v8041_v47, %v6644_v25  ;;  %v8077_v59 = vld [vmem:[#allocation7 + $0x12c] sm:$0xf]  ;;  %v7026_v25 = vld [vmem:[#allocation7 + $0x308] sm:$0xf] }
 0x2ea   :  { %v6788_v11 = vld [vmem:[#allocation7 + $0x138] sm:$0xf0] }
 0x2eb   :  { %4901 = vmatpush.bf16.msra.mxu2 %v6915_v32  ;;  %v6855_v32 = vor.u32 %v8093_v38, %v6852_v20  ;;  %v4722_v33 = vpop.f32.mrf.mxu0  ;;  %v8181_v38 = vld [vmem:[#allocation7 + $0x46c] sm:$0xf]  ;;  %v7204_v47 = vld [vmem:[#allocation7 + $0x478] sm:$0xf0] }
 0x2ec   :  { %4929 = vmatmul.bf16.vlgmr.msrb.gmra.mxu0 %v8643_v55  ;;  %4862 = vmatpush.bf16.msrb.mxu3 %v7551_v56  ;;  %v8155_v56 = vld [vmem:[#allocation7 + $0x394] sm:$0xf0]  ;;  %v8699_v37 = vadd.f32 %v4722_v33, %v8693_v48  ;;  %v8085_v48 = vld [vmem:[#allocation7 + $0x16c] sm:$0xf]  ;;  %v6772_v33 = vld [vmem:[#allocation7 + $0x118] sm:$0xf0] }
 0x2ed   :  { %4973 = vmatpush.bf16.msra.mxu0 %v6759_v23  ;;  %v8263_v23 = vld [vmem:[#allocation7 + $0x6f4] sm:$0xf0]  ;;  %4940 = vmatpush.bf16.msrb.mxu1 %v7299_v13  ;;  %v4711_v16 = vpop.f32.mrf.mxu3  ;;  %v6836_v13 = vld [vmem:[#allocation7 + $0x198] sm:$0xf0]  ;;  %v7091_v39 = vor.u32 %v8155_v56, %v7090_v35  ;;  %v7207_v56 = vor.u32 %v8181_v38, %v7204_v47  ;;  %v7602_v38 = vld [vmem:[#allocation7 + $0x788] sm:$0xf] }
 0x2ee   :  { %v7523_v54 = vor.u32 %v8263_v23, %v7522_v7  ;;  %v8193_v7 = vld [vmem:[#allocation7 + $0x4cc] sm:$0xf]  ;;  %v7252_v23 = vld [vmem:[#allocation7 + $0x4d8] sm:$0xf0] }
 0x2ef   :  { %4902 = vmatpush.bf16.msra.mxu2 %v6899_v34  ;;  %v8151_v34 = vld [vmem:[#allocation7 + $0x374] sm:$0xf0]  ;;  %v7255_v42 = vor.u32 %v8193_v7, %v7252_v23  ;;  %v6804_v16 = vld [vmem:[#allocation7 + $0x158] sm:$0xf0]  ;;  %v8177_v23 = vld [vmem:[#allocation7 + $0x44c] sm:$0xf] }
 0x2f0   :  { %4863 = vmatpush.bf16.msrb.mxu3 %v7535_v14  ;;  %v8189_v14 = vld [vmem:[#allocation7 + $0x4ac] sm:$0xf]  ;;  %v6807_v8 = vor.u32 %v8081_v41, %v6804_v16  ;;  %v7012_v35 = vld [vmem:[#allocation7 + $0x2f8] sm:$0xf0] }
 0x2f1   :  { %4974 = vmatpush.bf16.msra.mxu0 %v6743_v21  ;;  %v7283_v21 = vor.u32 %v8203_v22, %v7282_v18  ;;  %v8089_v18 = vld [vmem:[#allocation7 + $0x18c] sm:$0xf]  ;;  %v7475_v22 = vor.u32 %v8251_v6, %v7474_v31  ;;  %v6791_v6 = vor.u32 %v8077_v59, %v6788_v11  ;;  %v7396_v7 = vld [vmem:[#allocation7 + $0x5f8] sm:$0xf0] }
 0x2f2   :  { %4903 = vmatmul.bf16.vlgmr.msra.gmra.mxu2 %v8627_v62  ;;  %v6839_v15 = vor.u32 %v8089_v18, %v6836_v13  ;;  %v8073_v31 = vld [vmem:[#allocation7 + $0x10c] sm:$0xf]  ;;  %v8295_v18 = vld [vmem:[#allocation7 + $0x7f4] sm:$0xf0] }
 0x2f3   :  { %4947 = vmatpush.bf16.msrb.mxu2 %v7523_v54  ;;  %4941 = vmatpush.bf16.msrb.mxu1 %v7283_v21  ;;  %v7236_v54 = vld [vmem:[#allocation7 + $0x4b8] sm:$0xf0]  ;;  %v7075_v21 = vor.u32 %v8151_v34, %v7074_v5  ;;  %v8229_v13 = vld [vmem:[#allocation7 + $0x5ec] sm:$0xf] }
 0x2f4   :  { %4908 = vmatpush.bf16.msra.mxu3 %v7139_v43  ;;  %v7442_v43 = vld [vmem:[#allocation7 + $0x648] sm:$0xf]  ;;  %v7239_v0 = vor.u32 %v8189_v14, %v7236_v54  ;;  %v8129_v34 = vld [vmem:[#allocation7 + $0x2cc] sm:$0xf]  ;;  %v8291_v14 = vld [vmem:[#allocation7 + $0x7d4] sm:$0xf0] }
 0x2f5   :  { %4975 = vmatpush.bf16.msra.mxu0 %v6727_v4  ;;  %v7507_v4 = vor.u32 %v8259_v49, %v7506_v44  ;;  %4864 = vmatmul.bf16.vlgmr.msrb.gmra.mxu3 %v8683_v1  ;;  %v8243_v44 = vld [vmem:[#allocation7 + $0x654] sm:$0xf0]  ;;  %v6823_v49 = vor.u32 %v8085_v48, %v6820_v45  ;;  %v7399_v48 = vor.u32 %v8229_v13, %v7396_v7  ;;  %v8225_v54 = vld [vmem:[#allocation7 + $0x5cc] sm:$0xf]  ;;  %v6932_v13 = vld [vmem:[#allocation7 + $0x258] sm:$0xf0] }
 0x2f6   :  { %4942 = vmatmul.bf16.vlgmr.msrb.gmra.mxu1 %v8654_v40  ;;  %v7443_v2 = vor.u32 %v8243_v44, %v7442_v43  ;;  %v8173_v43 = vld [vmem:[#allocation7 + $0x42c] sm:$0xf]  ;;  %v7172_v44 = vld [vmem:[#allocation7 + $0x438] sm:$0xf0]  ;;  %v7570_v7 = vld [vmem:[#allocation7 + $0x748] sm:$0xf] }
 0x2f7   :  { %4986 = vmatpush.bf16.msra.mxu1 %v6887_v60  ;;  %4948 = vmatpush.bf16.msrb.mxu2 %v7507_v4  ;;  %v4724_v60 = vpop.f32.mrf.mxu0  ;;  %v7175_v16 = vor.u32 %v8173_v43, %v7172_v44  ;;  %v7538_v43 = vld [vmem:[#allocation7 + $0x708] sm:$0xf] }
 0x2f8   :  { %4909 = vmatpush.bf16.msra.mxu3 %v7123_v53  ;;  %v7426_v53 = vld [vmem:[#allocation7 + $0x628] sm:$0xf] }
 0x2f9   :  { %4976 = vmatpush.bf16.msra.mxu0 %v6711_v29  ;;  %v8197_v29 = vld [vmem:[#allocation7 + $0x4ec] sm:$0xf] }
 0x2fa   :  { %v7271_v36 = vor.u32 %v8197_v29, %v7268_v17  ;;  %v7410_v17 = vld [vmem:[#allocation7 + $0x608] sm:$0xf] }
 0x2fb   :  { %4987 = vmatpush.bf16.msra.mxu1 %v6871_v9  ;;  %4949 = vmatpush.bf16.msrb.mxu2 %v7491_v26  ;;  %v8143_v9 = vld [vmem:[#allocation7 + $0x334] sm:$0xf0] }
 0x2fc   :  { %4910 = vmatpush.bf16.msra.mxu3 %v7107_v30  ;;  %v8139_v26 = vld [vmem:[#allocation7 + $0x314] sm:$0xf0]  ;;  %v7043_v29 = vor.u32 %v8143_v9, %v7042_v52  ;;  %v8121_v9 = vld [vmem:[#allocation7 + $0x28c] sm:$0xf] }
 0x2fd   :  { %4977 = vmatpush.bf16.msra.mxu0 %v6695_v58  ;;  %v7458_v58 = vld [vmem:[#allocation7 + $0x668] sm:$0xf]  ;;  %v8235_v30 = vld [vmem:[#allocation7 + $0x614] sm:$0xf0] }
 0x2fe   :  { %v7459_v46 = vor.u32 %v8247_v50, %v7458_v58  ;;  %v7027_v58 = vor.u32 %v8139_v26, %v7026_v25  ;;  %v8217_v25 = vld [vmem:[#allocation7 + $0x58c] sm:$0xf]  ;;  %v7348_v26 = vld [vmem:[#allocation7 + $0x598] sm:$0xf0] }
 0x2ff   :  { %4988 = vmatpush.bf16.msra.mxu1 %v6855_v32  ;;  %4950 = vmatpush.bf16.msrb.mxu2 %v7475_v22  ;;  %v7411_v22 = vor.u32 %v8235_v30, %v7410_v17  ;;  %v8117_v17 = vld [vmem:[#allocation7 + $0x26c] sm:$0xf]  ;;  %v6948_v30 = vld [vmem:[#allocation7 + $0x278] sm:$0xf0] }
 0x300   :  { %4911 = vmatpush.bf16.msra.mxu3 %v7091_v39  ;;  %v7188_v39 = vld [vmem:[#allocation7 + $0x458] sm:$0xf0] }
 0x301   :  { %4978 = vmatpush.bf16.msra.mxu0 %v6679_v61  ;;  %v7058_v61 = vld [vmem:[#allocation7 + $0x348] sm:$0xf]  ;;  %v7191_v45 = vor.u32 %v8177_v23, %v7188_v39  ;;  %v8275_v23 = vld [vmem:[#allocation7 + $0x754] sm:$0xf0] }
 0x302   :  { %v7059_v4 = vor.u32 %v8147_v63, %v7058_v61  ;;  %v8125_v63 = vld [vmem:[#allocation7 + $0x2ac] sm:$0xf] }
 0x303   :  { %4989 = vmatpush.bf16.msra.mxu1 %v6839_v15  ;;  %4951 = vmatpush.bf16.msrb.mxu2 %v7459_v46  ;;  %v6775_v15 = vor.u32 %v8073_v31, %v6772_v33  ;;  %v7634_v46 = vld [vmem:[#allocation7 + $0x7c8] sm:$0xf]  ;;  %v7351_v31 = vor.u32 %v8217_v25, %v7348_v26  ;;  %v8279_v33 = vld [vmem:[#allocation7 + $0x774] sm:$0xf0] }
 0x304   :  { %4912 = vmatpush.bf16.msra.mxu3 %v7075_v21  ;;  %v7380_v21 = vld [vmem:[#allocation7 + $0x5d8] sm:$0xf0]  ;;  %v7635_v61 = vor.u32 %v8291_v14, %v7634_v46  ;;  %v8271_v46 = vld [vmem:[#allocation7 + $0x734] sm:$0xf0]  ;;  %v8205_v14 = vld [vmem:[#allocation7 + $0x52c] sm:$0xf] }
 0x305   :  { %4979 = vmatpush.bf16.msra.mxu0 %v6663_v10  ;;  %v7223_v10 = vor.u32 %v8185_v19, %v7220_v3  ;;  %v7383_v41 = vor.u32 %v8225_v54, %v7380_v21  ;;  %v8287_v19 = vld [vmem:[#allocation7 + $0x7b4] sm:$0xf0]  ;;  %v8221_v3 = vld [vmem:[#allocation7 + $0x5ac] sm:$0xf]  ;;  %v7300_v54 = vld [vmem:[#allocation7 + $0x538] sm:$0xf0] }
 0x307   :  { %4990 = vmatpush.bf16.msra.mxu1 %v6823_v49  ;;  %4952 = vmatpush.bf16.msrb.mxu2 %v7443_v2  ;;  %v7618_v2 = vld [vmem:[#allocation7 + $0x7a8] sm:$0xf] }
 0x308   :  { %4913 = vmatpush.bf16.msra.mxu3 %v7059_v4  ;;  %v7364_v4 = vld [vmem:[#allocation7 + $0x5b8] sm:$0xf0]  ;;  %v7619_v52 = vor.u32 %v8287_v19, %v7618_v2 }
 0x309   :  { %4980 = vmatpush.bf16.msra.mxu0 %v6647_v57  ;;  %v8702_v32 = vpop.f32.mrf.mxu0  ;;  %v8133_v57 = vld [vmem:[#allocation7 + $0x2ec] sm:$0xf]  ;;  %v7367_v59 = vor.u32 %v8221_v3, %v7364_v4  ;;  %v7524_v2 = vld [vmem:[#allocation7 + $0x6f8] sm:$0xf0] }
 0x30a   :  { %v7015_v50 = vor.u32 %v8133_v57, %v7012_v35  ;;  %v8213_v57 = vld [vmem:[#allocation7 + $0x56c] sm:$0xf]  ;;  %v7332_v35 = vld [vmem:[#allocation7 + $0x578] sm:$0xf0] }
 0x30b   :  { %4991 = vmatpush.bf16.msra.mxu1 %v6807_v8  ;;  %v8707_v47 = vpop.f32.mrf.mxu1  ;;  %v7284_v3 = vld [vmem:[#allocation7 + $0x518] sm:$0xf0]  ;;  %v8165_v4 = vld [vmem:[#allocation7 + $0x3ec] sm:$0xf] }
 0x30c   :  { %4981 = vmatmul.bf16.vlgmr.msra.gmra.mxu0 %v8611_v28  ;;  %v8239_v28 = vld [vmem:[#allocation7 + $0x634] sm:$0xf0]  ;;  %4914 = vmatpush.bf16.msra.mxu3 %v7043_v29 }
 0x30d   :  { %5025 = vmatpush.bf16.msrb.mxu0 %v7271_v36  ;;  %v7427_v20 = vor.u32 %v8239_v28, %v7426_v53  ;;  %v7650_v36 = vld [vmem:[#allocation7 + $0x7e8] sm:$0xf]  ;;  %v8169_v53 = vld [vmem:[#allocation7 + $0x40c] sm:$0xf]  ;;  %v7156_v28 = vld [vmem:[#allocation7 + $0x418] sm:$0xf0] }
 0x30e   :  { %v7651_v5 = vor.u32 %v8295_v18, %v7650_v36  ;;  %v7159_v11 = vor.u32 %v8169_v53, %v7156_v28  ;;  %v8113_v18 = vld [vmem:[#allocation7 + $0x24c] sm:$0xf]  ;;  %v7140_v53 = vld [vmem:[#allocation7 + $0x3f8] sm:$0xf0] }
 0x30f   :  { %4953 = vmatpush.bf16.msrb.mxu2 %v7427_v20  ;;  %4992 = vmatpush.bf16.msra.mxu1 %v6791_v6  ;;  %v8283_v20 = vld [vmem:[#allocation7 + $0x794] sm:$0xf0]  ;;  %v7586_v6 = vld [vmem:[#allocation7 + $0x768] sm:$0xf] }
 0x310   :  { %4915 = vmatpush.bf16.msra.mxu3 %v7027_v58  ;;  %v7587_v36 = vor.u32 %v8279_v33, %v7586_v6  ;;  %v8209_v58 = vld [vmem:[#allocation7 + $0x54c] sm:$0xf]  ;;  %v7108_v6 = vld [vmem:[#allocation7 + $0x3b8] sm:$0xf0] }
 0x311   :  { %5026 = vmatpush.bf16.msrb.mxu0 %v7255_v42  ;;  %v6996_v42 = vld [vmem:[#allocation7 + $0x2d8] sm:$0xf0]  ;;  %v4776_v60 = vpop.f32.mrf.mxu0 }
 0x312   :  { %v6999_v49 = vor.u32 %v8129_v34, %v6996_v42  ;;  %v8109_v34 = vld [vmem:[#allocation7 + $0x22c] sm:$0xf]  ;;  %v6916_v42 = vld [vmem:[#allocation7 + $0x238] sm:$0xf0] }
 0x313   :  { %4954 = vmatpush.bf16.msrb.mxu2 %v7411_v22  ;;  %4993 = vmatpush.bf16.msra.mxu1 %v6775_v15  ;;  %v7335_v22 = vor.u32 %v8213_v57, %v7332_v35  ;;  %v4737_v39 = vpop.f32.mrf.mxu1  ;;  %v6935_v15 = vor.u32 %v8113_v18, %v6932_v13  ;;  %v6919_v21 = vor.u32 %v8109_v34, %v6916_v42  ;;  %v8105_v60 = vld [vmem:[#allocation7 + $0x20c] sm:$0xf]  ;;  %v7092_v18 = vld [vmem:[#allocation7 + $0x398] sm:$0xf0] }
 0x314   :  { %4960 = vmatpush.bf16.msrb.mxu3 %v7651_v5  ;;  %v7571_v5 = vor.u32 %v8275_v23, %v7570_v7  ;;  %v8249_v35 = vld [vmem:[#allocation7 + $0x68c] sm:$0xf]  ;;  %v7460_v7 = vld [vmem:[#allocation7 + $0x678] sm:$0xf0] }
 0x315   :  { %5027 = vmatpush.bf16.msrb.mxu0 %v7239_v0  ;;  %v6980_v0 = vld [vmem:[#allocation7 + $0x2b8] sm:$0xf0]  ;;  %4916 = vmatmul.bf16.vlgmr.msra.gmra.mxu3 %v8630_v24  ;;  %v8149_v39 = vld [vmem:[#allocation7 + $0x36c] sm:$0xf] }
 0x316   :  { %4955 = vmatmul.bf16.vlgmr.msrb.gmra.mxu2 %v8666_v27  ;;  %4994 = vmatmul.bf16.vlgmr.msra.gmra.mxu1 %v8619_v51  ;;  %v6983_v8 = vor.u32 %v8125_v63, %v6980_v0  ;;  %v7603_v51 = vor.u32 %v8283_v20, %v7602_v38  ;;  %v8161_v38 = vld [vmem:[#allocation7 + $0x3cc] sm:$0xf]  ;;  %v7124_v20 = vld [vmem:[#allocation7 + $0x3d8] sm:$0xf0] }
 0x317   :  { %4999 = vmatpush.bf16.msra.mxu2 %v7015_v50  ;;  %5038 = vmatpush.bf16.msrb.mxu1 %v7399_v48  ;;  %v7316_v50 = vld [vmem:[#allocation7 + $0x558] sm:$0xf0]  ;;  %v3374_v48 = vperm.slane %v8679_v12, 1  ;;  %v7303_v12 = vor.u32 %v8205_v14, %v7300_v54  ;;  %v8145_v42 = vld [vmem:[#allocation7 + $0x34c] sm:$0xf] }
 0x318   :  { %4961 = vmatpush.bf16.msrb.mxu3 %v7635_v61  ;;  %v6900_v61 = vld [vmem:[#allocation7 + $0x218] sm:$0xf0] }
 0x319   :  { %5028 = vmatpush.bf16.msrb.mxu0 %v7223_v10  ;;  %v6964_v10 = vld [vmem:[#allocation7 + $0x298] sm:$0xf0]  ;;  %v4775_v63 = vadd.f32 %v8702_v32, %v3374_v48 }
 0x31a   :  { %v6967_v29 = vor.u32 %v8121_v9, %v6964_v10  ;;  %v7143_v10 = vor.u32 %v8165_v4, %v7140_v53  ;;  %v7060_v48 = vld [vmem:[#allocation7 + $0x358] sm:$0xf0] }
 0x31b   :  { %5000 = vmatpush.bf16.msra.mxu2 %v6999_v49  ;;  %5039 = vmatpush.bf16.msrb.mxu1 %v7383_v41  ;;  %v8267_v49 = vld [vmem:[#allocation7 + $0x714] sm:$0xf0]  ;;  %v8201_v41 = vld [vmem:[#allocation7 + $0x50c] sm:$0xf]  ;;  %v4787_v19 = vpop.f32.mrf.mxu1  ;;  %v7428_v14 = vld [vmem:[#allocation7 + $0x638] sm:$0xf0] }
 0x31c   :  { %4962 = vmatpush.bf16.msrb.mxu3 %v7619_v52  ;;  %v8714_v28 = vadd.f32 %v4787_v19, %v4775_v63  ;;  %v7539_v52 = vor.u32 %v8267_v49, %v7538_v43  ;;  %v7287_v32 = vor.u32 %v8201_v41, %v7284_v3  ;;  %v7044_v43 = vld [vmem:[#allocation7 + $0x338] sm:$0xf0]  ;;  %v8137_v41 = vld [vmem:[#allocation7 + $0x30c] sm:$0xf] }
 0x31d   :  { %5029 = vmatpush.bf16.msrb.mxu0 %v7207_v56  ;;  %v6951_v56 = vor.u32 %v8117_v17, %v6948_v30  ;;  %v7492_v17 = vld [vmem:[#allocation7 + $0x6b8] sm:$0xf0] }
 0x31e   :  { %v7652_v19 = vld [vmem:[#allocation7 + $0x7f8] sm:$0xf0] }
 0x31f   :  { %5001 = vmatpush.bf16.msra.mxu2 %v6983_v8  ;;  %5040 = vmatpush.bf16.msrb.mxu1 %v7367_v59  ;;  %v6903_v8 = vor.u32 %v8105_v60, %v6900_v61  ;;  %v8257_v59 = vld [vmem:[#allocation7 + $0x6cc] sm:$0xf]  ;;  %v7412_v61 = vld [vmem:[#allocation7 + $0x618] sm:$0xf0] }
 0x320   :  { %4963 = vmatpush.bf16.msrb.mxu3 %v7603_v51  ;;  %v8253_v51 = vld [vmem:[#allocation7 + $0x6ac] sm:$0xf] }
 0x321   :  { %5030 = vmatpush.bf16.msrb.mxu0 %v7191_v45  ;;  %v7554_v45 = vld [vmem:[#allocation7 + $0x728] sm:$0xf]  ;;  %v7495_v33 = vor.u32 %v8253_v51, %v7492_v17  ;;  %v8233_v60 = vld [vmem:[#allocation7 + $0x60c] sm:$0xf] }
 0x322   :  { %v7555_v44 = vor.u32 %v8271_v46, %v7554_v45  ;;  %v7063_v45 = vor.u32 %v8145_v42, %v7060_v48  ;;  %v8237_v46 = vld [vmem:[#allocation7 + $0x62c] sm:$0xf]  ;;  %v7415_v3 = vor.u32 %v8233_v60, %v7412_v61 }
 0x323   :  { %5002 = vmatpush.bf16.msra.mxu2 %v6967_v29  ;;  %5041 = vmatpush.bf16.msrb.mxu1 %v7351_v31  ;;  %v7127_v29 = vor.u32 %v8161_v38, %v7124_v20  ;;  %v4789_v30 = vpop.f32.mrf.mxu1  ;;  %v8157_v31 = vld [vmem:[#allocation7 + $0x3ac] sm:$0xf]  ;;  %v8307_v20 = vld [vmem:[%s8752_s8] sm:$0xf] }
 0x324   :  { %4964 = vmatpush.bf16.msrb.mxu3 %v7587_v36  ;;  %v7111_v57 = vor.u32 %v8157_v31, %v7108_v6  ;;  %v8153_v36 = vld [vmem:[#allocation7 + $0x38c] sm:$0xf]  ;;  %v7588_v6 = vld [vmem:[#allocation7 + $0x778] sm:$0xf0] }
 0x325   :  { %5031 = vmatpush.bf16.msrb.mxu0 %v7175_v16  ;;  %v8261_v16 = vld [vmem:[#allocation7 + $0x6ec] sm:$0xf] }
 0x326   :  { %v7527_v9 = vor.u32 %v8261_v16, %v7524_v2  ;;  %v7028_v16 = vld [vmem:[#allocation7 + $0x318] sm:$0xf0]  ;;  %v8293_v2 = vld [vmem:[#allocation7 + $0x7ec] sm:$0xf] }
 0x327   :  { %5003 = vmatpush.bf16.msra.mxu2 %v6951_v56  ;;  %5042 = vmatpush.bf16.msrb.mxu1 %v7335_v22  ;;  %v7476_v56 = vld [vmem:[#allocation7 + $0x698] sm:$0xf0]  ;;  %v7095_v22 = vor.u32 %v8153_v36, %v7092_v18  ;;  %v7031_v4 = vor.u32 %v8137_v41, %v7028_v16  ;;  %v7655_v53 = vor.u32 %v8293_v2, %v7652_v19  ;;  %v8277_v31 = vld [vmem:[#allocation7 + $0x76c] sm:$0xf] }
 0x328   :  { %4965 = vmatpush.bf16.msrb.mxu3 %v7571_v5  ;;  %v7479_v13 = vor.u32 %v8249_v35, %v7476_v56  ;;  %v7444_v5 = vld [vmem:[#allocation7 + $0x658] sm:$0xf0]  ;;  %v8273_v56 = vld [vmem:[#allocation7 + $0x74c] sm:$0xf] }
 0x329   :  { %5032 = vmatpush.bf16.msrb.mxu0 %v7159_v11  ;;  %v8712_v0 = vpop.f32.mrf.mxu0  ;;  %v7508_v11 = vld [vmem:[#allocation7 + $0x6d8] sm:$0xf0] }
 0x32a   :  { %v7511_v25 = vor.u32 %v8257_v59, %v7508_v11  ;;  %v8285_v59 = vld [vmem:[#allocation7 + $0x7ac] sm:$0xf]  ;;  %v7620_v11 = vld [vmem:[#allocation7 + $0x7b8] sm:$0xf0] }
 0x32b   :  { %5004 = vmatpush.bf16.msra.mxu2 %v6935_v15  ;;  %v8241_v15 = vld [vmem:[#allocation7 + $0x64c] sm:$0xf]  ;;  %v7623_v38 = vor.u32 %v8285_v59, %v7620_v11  ;;  %v7572_v36 = vld [vmem:[#allocation7 + $0x758] sm:$0xf0] }
 0x32c   :  { %5033 = vmatmul.bf16.vlgmr.msrb.gmra.mxu0 %v8643_v55  ;;  %v7319_v55 = vor.u32 %v8209_v58, %v7316_v50  ;;  %4966 = vmatpush.bf16.msrb.mxu3 %v7555_v44  ;;  %v7076_v58 = vld [vmem:[#allocation7 + $0x378] sm:$0xf0]  ;;  %v7431_v44 = vor.u32 %v8237_v46, %v7428_v14 }
 0x32d   :  { %v7079_v50 = vor.u32 %v8149_v39, %v7076_v58  ;;  %v8269_v39 = vld [vmem:[#allocation7 + $0x72c] sm:$0xf]  ;;  %v7556_v58 = vld [vmem:[#allocation7 + $0x738] sm:$0xf0] }
 0x32e   :  { %5043 = vmatpush.bf16.msrb.mxu1 %v7319_v55  ;;  %v7447_v55 = vor.u32 %v8241_v15, %v7444_v5  ;;  %v7559_v15 = vor.u32 %v8269_v39, %v7556_v58  ;;  %v7540_v5 = vld [vmem:[#allocation7 + $0x718] sm:$0xf0] }
 0x32f   :  { %5005 = vmatpush.bf16.msra.mxu2 %v6919_v21  ;;  %v8719_v23 = vpop.f32.mrf.mxu1  ;;  %v8141_v21 = vld [vmem:[#allocation7 + $0x32c] sm:$0xf] }
 0x330   :  { %4967 = vmatpush.bf16.msrb.mxu3 %v7539_v52  ;;  %v7047_v49 = vor.u32 %v8141_v21, %v7044_v43  ;;  %v7636_v52 = vld [vmem:[#allocation7 + $0x7d8] sm:$0xf0] }
 0x331   :  { %v4828_v26 = vpop.f32.mrf.mxu0  ;;  %v4748_v34 = vpop.f32.mrf.mxu2 }
 0x332   :  { %5044 = vmatpush.bf16.msrb.mxu1 %v7303_v12  ;;  %v8281_v26 = vld [vmem:[#allocation7 + $0x78c] sm:$0xf] }
 0x333   :  { %5006 = vmatpush.bf16.msra.mxu2 %v6903_v8  ;;  %4968 = vmatmul.bf16.vlgmr.msrb.gmra.mxu3 %v8683_v1  ;;  %v8289_v8 = vld [vmem:[#allocation7 + $0x7cc] sm:$0xf] }
 0x334   :  { %5012 = vmatpush.bf16.msra.mxu3 %v7143_v10  ;;  %v7639_v10 = vor.u32 %v8289_v8, %v7636_v52 }
 0x336   :  { %5045 = vmatpush.bf16.msrb.mxu1 %v7287_v32  ;;  %5007 = vmatmul.bf16.vlgmr.msra.gmra.mxu2 %v8627_v62  ;;  %v8245_v62 = vld [vmem:[#allocation7 + $0x66c] sm:$0xf] }
 0x337   :  { %5051 = vmatpush.bf16.msrb.mxu2 %v7527_v9  ;;  %v4841_v54 = vpop.f32.mrf.mxu1 }
 0x338   :  { %5013 = vmatpush.bf16.msra.mxu3 %v7127_v29  ;;  %v7604_v29 = vld [vmem:[#allocation7 + $0x798] sm:$0xf0] }
 0x339   :  { %5046 = vmatmul.bf16.vlgmr.msrb.gmra.mxu1 %v8654_v40  ;;  %v7463_v40 = vor.u32 %v8245_v62, %v7460_v7  ;;  %v4750_v12 = vpop.f32.mrf.mxu2  ;;  %v7607_v17 = vor.u32 %v8281_v26, %v7604_v29 }
 0x33b   :  { %5052 = vmatpush.bf16.msrb.mxu2 %v7511_v25  ;;  %v3375_v25 = vperm.slane %v8307_v20, 2 }
 0x33c   :  { %5014 = vmatpush.bf16.msra.mxu3 %v7111_v57  ;;  %v7591_v57 = vor.u32 %v8277_v31, %v7588_v6 }
 0x33f   :  { %5053 = vmatpush.bf16.msrb.mxu2 %v7495_v33  ;;  %v4736_v33 = vadd.f32 %v8707_v47, %v8699_v37  ;;  %v8265_v47 = vld [vmem:[#allocation7 + $0x70c] sm:$0xf] }
 0x340   :  { %5015 = vmatpush.bf16.msra.mxu3 %v7095_v22  ;;  %v7575_v22 = vor.u32 %v8273_v56, %v7572_v36  ;;  %v7543_v42 = vor.u32 %v8265_v47, %v7540_v5 }
 0x341   :  { %v4800_v32 = vpop.f32.mrf.mxu2  ;;  %v4749_v35 = vadd.f32 %v4748_v34, %v4736_v33 }
 0x343   :  { %5054 = vmatpush.bf16.msrb.mxu2 %v7479_v13 }
 0x344   :  { %5016 = vmatpush.bf16.msra.mxu3 %v7079_v50 }
 0x347   :  { %5055 = vmatpush.bf16.msrb.mxu2 %v7463_v40 }
 0x348   :  { %5017 = vmatpush.bf16.msra.mxu3 %v7063_v45 }
 0x349   :  { %v4878_v63 = vpop.f32.mrf.mxu0  ;;  %v4802_v51 = vpop.f32.mrf.mxu2 }
 0x34a   :  { %v4879_v30 = vadd.f32 %v4878_v63, %v3375_v25 }
 0x34b   :  { %5056 = vmatpush.bf16.msrb.mxu2 %v7447_v55  ;;  %v4801_v55 = vadd.f32 %v4800_v32, %v8714_v28 }
 0x34c   :  { %5018 = vmatpush.bf16.msra.mxu3 %v7047_v49 }
 0x34f   :  { %5057 = vmatpush.bf16.msrb.mxu2 %v7431_v44 }
 0x350   :  { %5019 = vmatpush.bf16.msra.mxu3 %v7031_v4 }
 0x351   :  { %v4880_v9 = vpop.f32.mrf.mxu0  ;;  %v4852_v7 = vpop.f32.mrf.mxu2 }
 0x353   :  { %5058 = vmatpush.bf16.msrb.mxu2 %v7415_v3  ;;  %5020 = vmatmul.bf16.vlgmr.msra.gmra.mxu3 %v8630_v24 }
 0x354   :  { %5064 = vmatpush.bf16.msrb.mxu3 %v7655_v53 }
 0x356   :  { %5059 = vmatmul.bf16.vlgmr.msrb.gmra.mxu2 %v8666_v27  ;;  %v4891_v27 = vpop.f32.mrf.mxu1  ;;  %v4761_v18 = vpop.f32.mrf.mxu3 }
 0x357   :  { %v4892_v24 = vadd.f32 %v4891_v27, %v4879_v30  ;;  %v4762_v13 = vadd.f32 %v4761_v18, %v4749_v35 }
 0x358   :  { %5065 = vmatpush.bf16.msrb.mxu3 %v7639_v10 }
 0x359   :  { %v5077_v62 = vmul.f32 0.2, %v4762_v13  ;;  %v4854_v48 = vpop.f32.mrf.mxu2 }
 0x35b   :  { %v5081_v50 = vmax.f32 %v4762_v13, %v5077_v62 }
 0x35c   :  { %5066 = vmatpush.bf16.msrb.mxu3 %v7623_v38 }
 0x35d   :  { %5085 = vst [vmem:[%s8753_s9] sm:$0xff] %v5081_v50 }
 0x35e   :  { %v4893_v40 = vpop.f32.mrf.mxu1  ;;  %v4763_v34 = vpop.f32.mrf.mxu3 }
 0x360   :  { %5067 = vmatpush.bf16.msrb.mxu3 %v7607_v17 }
 0x364   :  { %5068 = vmatpush.bf16.msrb.mxu3 %v7591_v57 }
 0x366   :  { %v4813_v46 = vpop.f32.mrf.mxu3 }
 0x367   :  { %v4814_v14 = vadd.f32 %v4813_v46, %v4801_v55 }
 0x368   :  { %5069 = vmatpush.bf16.msrb.mxu3 %v7575_v22 }
 0x369   :  { %v4930_v37 = vpop.f32.mrf.mxu0  ;;  %v4827_v54 = vadd.f32 %v8712_v0, %v4814_v14  ;;  %v3376_v0 = vperm.slane %v8307_v20, 3 }
 0x36b   :  { %v4840_v44 = vadd.f32 %v8719_v23, %v4827_v54 }
 0x36c   :  { %5070 = vmatpush.bf16.msrb.mxu3 %v7559_v15 }
 0x36d   :  { %v4853_v49 = vadd.f32 %v4852_v7, %v4840_v44 }
 0x36e   :  { %v4815_v21 = vpop.f32.mrf.mxu3 }
 0x370   :  { %5071 = vmatpush.bf16.msrb.mxu3 %v7543_v42 }
 0x371   :  { %v4932_v45 = vpop.f32.mrf.mxu0 }
 0x373   :  { %5072 = vmatmul.bf16.vlgmr.msrb.gmra.mxu3 %v8683_v1  ;;  %v4943_v43 = vpop.f32.mrf.mxu1 }
 0x375   :  { %v4904_v60 = vpop.f32.mrf.mxu2 }
 0x376   :  { %v4905_v23 = vadd.f32 %v4904_v60, %v4892_v24 }
 0x378   :  { %v4865_v61 = vpop.f32.mrf.mxu3 }
 0x379   :  { %v4866_v63 = vadd.f32 %v4865_v61, %v4853_v49 }
 0x37b   :  { %v5078_v12 = vmul.f32 0.2, %v4866_v63  ;;  %v4945_v41 = vpop.f32.mrf.mxu1 }
 0x37d   :  { %v5082_v2 = vmax.f32 %v4866_v63, %v5078_v12  ;;  %v4906_v28 = vpop.f32.mrf.mxu2 }
 0x37f   :  { %5086 = vst [vmem:[%s8753_s9 + $0x8] sm:$0xff] %v5082_v2 }
 0x380   :  { %v4867_v1 = vpop.f32.mrf.mxu3 }
 0x389   :  { %v4982_v16 = vpop.f32.mrf.mxu0 }
 0x38a   :  { %v4983_v3 = vadd.f32 %v4982_v16, %v3376_v0 }
 0x391   :  { %v4984_v19 = vpop.f32.mrf.mxu0 }
 0x393   :  { %v4995_v4 = vpop.f32.mrf.mxu1 }
 0x394   :  { %v4996_v53 = vadd.f32 %v4995_v4, %v4983_v3 }
 0x398   :  { %v4917_v8 = vpop.f32.mrf.mxu3 }
 0x399   :  { %v4956_v52 = vpop.f32.mrf.mxu2  ;;  %v4918_v9 = vadd.f32 %v4917_v8, %v4905_v23 }
 0x39b   :  { %v4931_v32 = vadd.f32 %v4930_v37, %v4918_v9  ;;  %v4997_v10 = vpop.f32.mrf.mxu1 }
 0x39d   :  { %v4944_v26 = vadd.f32 %v4943_v43, %v4931_v32 }
 0x39f   :  { %v4957_v51 = vadd.f32 %v4956_v52, %v4944_v26 }
 0x3a0   :  { %v4919_v11 = vpop.f32.mrf.mxu3 }
 0x3a1   :  { %v4958_v38 = vpop.f32.mrf.mxu2 }
 0x3a9   :  { %v5034_v59 = vpop.f32.mrf.mxu0 }
 0x3b1   :  { %v5036_v25 = vpop.f32.mrf.mxu0 }
 0x3b6   :  { %v5047_v29 = vpop.f32.mrf.mxu1  ;;  %v4969_v30 = vpop.f32.mrf.mxu3 }
 0x3b7   :  { %v4970_v31 = vadd.f32 %v4969_v30, %v4957_v51 }
 0x3b9   :  { %v5008_v17 = vpop.f32.mrf.mxu2  ;;  %v5079_v20 = vmul.f32 0.2, %v4970_v31 }
 0x3ba   :  { %v5009_v57 = vadd.f32 %v5008_v17, %v4996_v53 }
 0x3bb   :  { %v5083_v27 = vmax.f32 %v4970_v31, %v5079_v20 }
 0x3bd   :  { %5087 = vst [vmem:[%s8753_s9 + $0x10] sm:$0xff] %v5083_v27 }
 0x3be   :  { %v5049_v6 = vpop.f32.mrf.mxu1  ;;  %v4971_v24 = vpop.f32.mrf.mxu3 }
 0x3c1   :  { %v5010_v33 = vpop.f32.mrf.mxu2 }
 0x3d6   :  { %v5021_v56 = vpop.f32.mrf.mxu3 }
 0x3d7   :  { %v5022_v36 = vadd.f32 %v5021_v56, %v5009_v57 }
 0x3d9   :  { %v5060_v35 = vpop.f32.mrf.mxu2  ;;  %v5035_v18 = vadd.f32 %v5034_v59, %v5022_v36 }
 0x3db   :  { %v5048_v62 = vadd.f32 %v5047_v29, %v5035_v18 }
 0x3dd   :  { %v5061_v7 = vadd.f32 %v5060_v35, %v5048_v62 }
 0x3de   :  { %v5023_v22 = vpop.f32.mrf.mxu3 }
 0x3e1   :  { %v5062_v13 = vpop.f32.mrf.mxu2 }
 0x3f6   :  { %v5073_v39 = vpop.f32.mrf.mxu3 }
 0x3f7   :  { %v5074_v58 = vadd.f32 %v5073_v39, %v5061_v7 }
 0x3f9   :  { %v5080_v40 = vmul.f32 0.2, %v5074_v58 }
 0x3fb   :  { %v5084_v50 = vmax.f32 %v5074_v58, %v5080_v40 }
 0x3fd   :  { %5088 = vst [vmem:[%s8753_s9 + $0x18] sm:$0xff] %v5084_v50 }
 0x3fe   :  { %v5075_v15 = vpop.f32.mrf.mxu3 }
 0x3ff   :  { %5093 = vsyncpa [#allocation3], 1 }
 0x400   :  { %5094 = vsyncpa [#allocation5], 1 }
 0x401   :  { %5095 = vsyncpa [#allocation8], 1 }

</bundles_post_ra>
